<compile_context>
chip_gen: v7x
topology: tpu7x:2x2x1
jax: 0.10.0
libtpu: 0.0.40
codegen_flags: <defaults>
</compile_context>

<pallas_src>
import functools

import jax
import jax.numpy as jnp
from jax import lax
from jax.experimental import pallas as pl
from jax.experimental.pallas import tpu as pltpu


def _argmax_last(x, size, mx=None):
    """First index of the max along the last axis (deterministic tie-break)."""
    if mx is None:
        mx = jnp.max(x, axis=-1, keepdims=True)
    idx = lax.broadcasted_iota(jnp.int32, x.shape, x.ndim - 1)
    return jnp.min(jnp.where(x == mx, idx, size), axis=-1).astype(jnp.int32)


def _obverter_sender_kernel(*refs, sos_id, eos_id, greedy, output_len,
                            hidden_pad, vocab_pad):
    if greedy:
        (img_ref, w_in_ref, b_in_ref, w_hh_ref, emb_ref, bias_ref,
         w_out_ref, b_out_ref,
         tok_ref, seqlen_ref, ent_ref, sentp_ref) = refs
        gumbel_ref = None
    else:
        (img_ref, w_in_ref, b_in_ref, w_hh_ref, emb_ref, bias_ref,
         w_out_ref, b_out_ref, gumbel_ref,
         tok_ref, seqlen_ref, ent_ref, sentp_ref) = refs

    B = img_ref.shape[0]
    Hp = hidden_pad
    Vp = vocab_pad
    L = output_len
    f32 = jnp.float32
    bf16 = jnp.bfloat16

    # --- ObverterMetaVisualModule: Linear(meta_vocab_size -> hidden) ---
    h = jnp.dot(img_ref[...], w_in_ref[...], preferred_element_type=f32) + b_in_ref[...]
    c = jnp.zeros((B, Hp), f32)

    token = jnp.full((B,), sos_id, jnp.int32)
    tokens = [token]

    initial_length = L + 1
    seq_len = jnp.full((B,), initial_length, jnp.int32)
    entropy = jnp.zeros((B,), f32)
    sentp = jnp.zeros((B, Vp), f32)

    # Hoist weight loads AND bias broadcasts out of the unrolled loop.
    w_hh = w_hh_ref[...]                                        # (Hp, 4Hp) bf16
    emb_w = emb_ref[...]                                        # (Vp, 4Hp) bf16
    w_out = w_out_ref[...]                                      # (Hp, Vp)  bf16
    bias_b = jnp.broadcast_to(bias_ref[...], (B, 4 * Hp))       # (B, 4Hp) f32
    b_out_b = jnp.broadcast_to(b_out_ref[...], (B, Vp))         # (B, Vp)  f32

    # Static unroll over the (small) output length.
    for i in range(L):
        # One-hot of the current token; embedding lookup + input projection is
        # pre-folded into emb_w (= embedding @ W_ih).  Two aligned MXU dots,
        # no per-step concat copy.
        onehot = (lax.broadcasted_iota(jnp.int32, (B, Vp), 1)
                  == token[:, None]).astype(bf16)
        gates = (jnp.dot(h.astype(bf16), w_hh, preferred_element_type=f32)
                 + jnp.dot(onehot, emb_w, preferred_element_type=f32)
                 + bias_b)

        # PyTorch LSTMCell gate order (input, forget, cell, output); each slice
        # is lane-aligned because Hp is a multiple of 128.
        ig = jax.nn.sigmoid(gates[:, 0:Hp])
        fg = jax.nn.sigmoid(gates[:, Hp:2 * Hp])
        gg = jnp.tanh(gates[:, 2 * Hp:3 * Hp])
        og = jax.nn.sigmoid(gates[:, 3 * Hp:4 * Hp])
        c = fg * c + ig * gg
        h = og * jnp.tanh(c)

        # linear_out + softmax over the (lane-dense, padded) vocabulary.
        # Pad columns carry a ~-1e30 bias so exp underflows to exactly 0.
        logits = jnp.dot(h.astype(bf16), w_out, preferred_element_type=f32) + b_out_b
        m = jnp.max(logits, axis=-1, keepdims=True)
        e = jnp.exp(logits - m)
        z = jnp.sum(e, axis=-1, keepdims=True)
        p = e * pl.reciprocal(z, approx=True)

        # Categorical entropy via logsumexp (no per-element log over (B, Vp)).
        entropy = entropy + (m[:, 0] + jnp.log(z)[:, 0]
                             - jnp.sum(p * logits, axis=-1))
        sentp = sentp + p

        if greedy:
            token = _argmax_last(logits, Vp, mx=m)     # == argmax(p); reuse m
        else:
            # Categorical(p).sample() via Gumbel-max directly on logits.
            token = _argmax_last(logits + gumbel_ref[i], Vp)
        tokens.append(token)

        mask = (token == eos_id) & (seq_len == initial_length)
        seq_len = jnp.where(mask, jnp.int32(i + 2), seq_len)

    # Single writeback at the end (no per-step masked row stores).
    tok_ref[...] = jnp.stack(tokens, axis=0)
    seqlen_ref[0, :] = seq_len
    ent_ref[0, :] = entropy
    sentp_ref[...] = sentp


def init_obverter_params(key, *, meta_vocab_size, hidden_size, embedding_size, vocab_size):
    """Deterministic synthetic parameters (shapes match the PyTorch module).

    linear_out is initialised with small random values instead of the module's
    all-zero reset so the sampled tokens are non-trivial."""
    H, E, V, M = hidden_size, embedding_size, vocab_size, meta_vocab_size
    ks = jax.random.split(key, 5)
    f32 = jnp.float32
    b_hh = jnp.zeros((1, 4 * H), f32).at[0, H:2 * H].set(1.0)  # forget-gate bias = 1
    return dict(
        w_in=0.1 * jax.random.normal(ks[0], (M, H), f32),       # process_input.weight.T
        b_in=jnp.zeros((1, H), f32),                             # process_input.bias
        embedding=0.1 * jax.random.normal(ks[1], (V, E), f32),   # embedding
        w_ih=0.1 * jax.random.normal(ks[2], (E, 4 * H), f32),    # rnn.weight_ih.T
        b_ih=jnp.zeros((1, 4 * H), f32),                         # rnn.bias_ih
        w_hh=0.1 * jax.random.normal(ks[3], (H, 4 * H), f32),    # rnn.weight_hh.T
        b_hh=b_hh,                                               # rnn.bias_hh
        w_out=0.1 * jax.random.normal(ks[4], (H, V), f32),       # linear_out.weight.T
        b_out=jnp.zeros((1, V), f32),                            # linear_out.bias
    )


def _round_up(x, m):
    return ((x + m - 1) // m) * m


def _pad_last(x, new_size):
    pad = new_size - x.shape[-1]
    if pad == 0:
        return x
    cfg = [(0, 0)] * (x.ndim - 1) + [(0, pad)]
    return jnp.pad(x, cfg)


def _pad_gate_cols(w, H, Hp):
    """Zero-pad each of the 4 gate blocks along the last axis from H to Hp."""
    if H == Hp:
        return w
    lead = w.shape[:-1]
    w4 = w.reshape(lead + (4, H))
    w4 = _pad_last(w4, Hp)
    return w4.reshape(lead + (4 * Hp,))


def _const_spec(arr):
    nd = arr.ndim
    return pl.BlockSpec(arr.shape, lambda i, _nd=nd: (0,) * _nd)


def obverter_sender_forward(image_representation, params, *, vocab_size, output_len,
                            sos_id, eos_id=None, greedy=False, seed=0):
    if eos_id is None:
        eos_id = sos_id
    B = image_representation.shape[0]
    META = image_representation.shape[1]
    H = params["w_in"].shape[1]
    V = vocab_size
    L = output_len
    Hp = _round_up(H, 128)           # lane-align the gate slices
    Vp = _round_up(V, 128)           # lane-dense vocab for softmax/argmax/sentp
    f32 = jnp.float32
    bf16 = jnp.bfloat16

    # Batch padding / tiling: sublane-align; tile at 128 when large enough so a
    # parallel grid can shard across TensorCores (v7x) and bound per-core VMEM.
    B_TILE = 128 if B > 128 else max(_round_up(B, 8), 8)
    Bp = _round_up(max(B, 8), B_TILE)
    n_tiles = Bp // B_TILE

    # --- wrapper-side weight preparation (zero-padding keeps numerics of the
    # real hidden units exact; pad vocab logits are forced to ~-1e30) ---
    w_in = _pad_last(params["w_in"].astype(f32), Hp)                       # (META, Hp) f32
    b_in = _pad_last(params["b_in"].astype(f32), Hp)                       # (1, Hp)   f32
    w_ih_p = _pad_gate_cols(params["w_ih"].astype(f32), H, Hp)             # (E, 4Hp)
    emb_proj = params["embedding"].astype(f32) @ w_ih_p                    # (V, 4Hp)
    emb_proj = jnp.pad(emb_proj, ((0, Vp - V), (0, 0))).astype(bf16)       # (Vp, 4Hp) bf16
    w_hh_p = _pad_gate_cols(params["w_hh"].astype(f32), H, Hp)
    w_hh_p = jnp.pad(w_hh_p, ((0, Hp - H), (0, 0))).astype(bf16)           # (Hp, 4Hp) bf16
    bias = _pad_gate_cols((params["b_ih"] + params["b_hh"]).astype(f32), H, Hp)  # (1, 4Hp) f32
    w_out = jnp.pad(params["w_out"].astype(f32),
                    ((0, Hp - H), (0, Vp - V))).astype(bf16)               # (Hp, Vp) bf16
    b_out = jnp.pad(params["b_out"].astype(f32), ((0, 0), (0, Vp - V)),
                    constant_values=-1e30)                                 # (1, Vp) f32

    img = jnp.pad(image_representation.astype(f32), ((0, Bp - B), (0, 0)))  # (Bp, META)

    kernel = functools.partial(
        _obverter_sender_kernel,
        sos_id=sos_id, eos_id=eos_id, greedy=greedy,
        output_len=L, hidden_pad=Hp, vocab_pad=Vp)

    in_specs = [
        pl.BlockSpec((B_TILE, META), lambda i: (i, 0)),    # image (batch-tiled)
        _const_spec(w_in), _const_spec(b_in),
        _const_spec(w_hh_p), _const_spec(emb_proj), _const_spec(bias),
        _const_spec(w_out), _const_spec(b_out),
    ]
    args = [img, w_in, b_in, w_hh_p, emb_proj, bias, w_out, b_out]

    gumbel_bytes = 0
    if not greedy:
        # Gumbel noise for Categorical sampling (host-side PRNG; pad-vocab
        # columns are irrelevant since their logits are ~-1e30).
        gumbel = jax.random.gumbel(jax.random.PRNGKey(seed), (L, Bp, Vp), f32)
        in_specs.append(pl.BlockSpec((L, B_TILE, Vp), lambda i: (0, i, 0)))
        args.append(gumbel)
        gumbel_bytes = L * B_TILE * Vp * 4

    out_shape = (
        jax.ShapeDtypeStruct((L + 1, Bp), jnp.int32),    # tokens (seq-major)
        jax.ShapeDtypeStruct((1, Bp), jnp.int32),        # seq_lengths
        jax.ShapeDtypeStruct((1, Bp), jnp.float32),      # entropy sum per example
        jax.ShapeDtypeStruct((Bp, Vp), jnp.float32),     # sentence_probability
    )
    out_specs = (
        pl.BlockSpec((L + 1, B_TILE), lambda i: (0, i)),
        pl.BlockSpec((1, B_TILE), lambda i: (0, i)),
        pl.BlockSpec((1, B_TILE), lambda i: (0, i)),
        pl.BlockSpec((B_TILE, Vp), lambda i: (i, 0)),
    )

    # VMEM budget: resident weights + one batch tile of inputs/outputs, with
    # headroom for the in-loop intermediates (gates, probs) and double buffers.
    resident_bytes = (
        B_TILE * META * 4
        + w_in.size * 4 + b_in.size * 4 + bias.size * 4 + b_out.size * 4
        + w_hh_p.size * 2 + emb_proj.size * 2 + w_out.size * 2
        + gumbel_bytes
        + (L + 1) * B_TILE * 4 + 2 * B_TILE * 4 + B_TILE * Vp * 4
        + B_TILE * (4 * Hp + 3 * Vp) * 4)
    vmem_limit = int(min(max(4 * resident_bytes, 16 * 1024 * 1024), 48 * 1024 * 1024))

    toks, seqlen, ent, sentp = pl.pallas_call(
        kernel,
        grid=(n_tiles,),
        out_shape=out_shape,
        in_specs=in_specs,
        out_specs=out_specs,
        compiler_params=pltpu.CompilerParams(
            dimension_semantics=("parallel",),
            vmem_limit_bytes=vmem_limit),
    )(*args)

    output = toks.T[:B]                               # (B, L+1)
    seq_lengths = seqlen[0, :B]                       # (B,)
    entropy = jnp.mean(ent[0, :B]) / L                # scalar: mean(entropy)/output_len
    # embeds[i] = embedding[output[:, i]] for i in 0..L-1 -> gather in XLA.
    embeds = jnp.take(params["embedding"].astype(f32), output[:, :L], axis=0)  # (B, L, E)
    sentence_probability = sentp[:B, :V]              # (B, V)
    return output, seq_lengths, entropy, embeds, sentence_probability


if __name__ == "__main__":
    # Small shapes consistent with the module defaults (dataset_type='meta',
    # meta_vocab_size=13 -> process_input Linear(13, hidden)).
    B, META = 2, 13
    HIDDEN, EMBED = 32, 32
    VOCAB, OUT_LEN = 8, 6
    SOS_ID, EOS_ID = 0, 1

    key = jax.random.PRNGKey(0)
    k_img, k_par = jax.random.split(key)
    image_representation = jax.random.normal(k_img, (B, META), jnp.float32)
    params = init_obverter_params(
        k_par, meta_vocab_size=META, hidden_size=HIDDEN,
        embedding_size=EMBED, vocab_size=VOCAB)

    # Default module behaviour: greedy=False (Categorical sampling via Gumbel-max).
    outs_sampled = obverter_sender_forward(
        image_representation, params, vocab_size=VOCAB, output_len=OUT_LEN,
        sos_id=SOS_ID, eos_id=EOS_ID, greedy=False, seed=0)
    # Also exercise the greedy (deterministic argmax, no gumbel input) path.
    outs_greedy = obverter_sender_forward(
        image_representation, params, vocab_size=VOCAB, output_len=OUT_LEN,
        sos_id=SOS_ID, eos_id=EOS_ID, greedy=True, seed=0)

    jax.block_until_ready(outs_sampled)
    jax.block_until_ready(outs_greedy)

    for tokens, seq_lengths, entropy, embeds, sent_prob in (outs_sampled, outs_greedy):
        assert tokens.shape == (B, OUT_LEN + 1)
        assert seq_lengths.shape == (B,)
        assert embeds.shape == (B, OUT_LEN, EMBED)
        assert sent_prob.shape == (B, VOCAB)
        assert entropy.shape == ()
        assert bool(jnp.all(tokens[:, 0] == SOS_ID))
        assert bool(jnp.all((tokens >= 0) & (tokens < VOCAB)))
        assert bool(jnp.all((seq_lengths >= 2) & (seq_lengths <= OUT_LEN + 1)))
        # softmax rows sum to ~1 per step -> sentence_probability rows sum ~ L.
        assert bool(jnp.all(jnp.abs(jnp.sum(sent_prob, axis=-1) - OUT_LEN) < 1e-2))

    print("KERNEL_OK")
</pallas_src>

<mosaic_0001>
module attributes {stable_mosaic.version = 11 : i64} {
  func.func @_obverter_sender_kernel(%arg0: i32, %arg1: memref<8x13xf32, #tpu.memory_space<vmem>>, %arg2: memref<13x128xf32, #tpu.memory_space<vmem>>, %arg3: memref<1x128xf32, #tpu.memory_space<vmem>>, %arg4: memref<128x512xbf16, #tpu.memory_space<vmem>>, %arg5: memref<128x512xbf16, #tpu.memory_space<vmem>>, %arg6: memref<1x512xf32, #tpu.memory_space<vmem>>, %arg7: memref<128x128xbf16, #tpu.memory_space<vmem>>, %arg8: memref<1x128xf32, #tpu.memory_space<vmem>>, %arg9: memref<6x8x128xf32, #tpu.memory_space<vmem>>, %arg10: memref<7x8xi32, #tpu.memory_space<vmem>>, %arg11: memref<1x8xi32, #tpu.memory_space<vmem>>, %arg12: memref<1x8xf32, #tpu.memory_space<vmem>>, %arg13: memref<8x128xf32, #tpu.memory_space<vmem>>) attributes {dimension_semantics = [#tpu.dimension_semantics<parallel>], iteration_bounds = array<i64: 1>, scalar_prefetch = 0 : i64, scratch_operands = 0 : i64, tpu.core_type = #tpu.core_type<tc>, window_params = [{transform_indices = @transform_0, window_bounds = array<i64: 8, 13>}, {pipeline_mode = #tpu.pipeline_mode<synchronous>, transform_indices = @transform_1, window_bounds = array<i64: 13, 128>}, {pipeline_mode = #tpu.pipeline_mode<synchronous>, transform_indices = @transform_2, window_bounds = array<i64: 1, 128>}, {pipeline_mode = #tpu.pipeline_mode<synchronous>, transform_indices = @transform_3, window_bounds = array<i64: 128, 512>}, {pipeline_mode = #tpu.pipeline_mode<synchronous>, transform_indices = @transform_4, window_bounds = array<i64: 128, 512>}, {pipeline_mode = #tpu.pipeline_mode<synchronous>, transform_indices = @transform_5, window_bounds = array<i64: 1, 512>}, {pipeline_mode = #tpu.pipeline_mode<synchronous>, transform_indices = @transform_6, window_bounds = array<i64: 128, 128>}, {pipeline_mode = #tpu.pipeline_mode<synchronous>, transform_indices = @transform_7, window_bounds = array<i64: 1, 128>}, {transform_indices = @transform_8, window_bounds = array<i64: 6, 8, 128>}, {transform_indices = @transform_9, window_bounds = array<i64: 7, 8>}, {transform_indices = @transform_10, window_bounds = array<i64: 1, 8>}, {transform_indices = @transform_11, window_bounds = array<i64: 1, 8>}, {transform_indices = @transform_12, window_bounds = array<i64: 8, 128>}]} {
    %c0 = arith.constant 0 : index
    %c0_0 = arith.constant 0 : index
    %0 = vector.load %arg1[%c0, %c0_0] : memref<8x13xf32, #tpu.memory_space<vmem>>, vector<8x13xf32>
    %c0_1 = arith.constant 0 : index
    %c0_2 = arith.constant 0 : index
    %1 = vector.load %arg2[%c0_1, %c0_2] : memref<13x128xf32, #tpu.memory_space<vmem>>, vector<13x128xf32>
    %cst = arith.constant dense<0.000000e+00> : vector<8x128xf32>
    %2 = tpu.matmul %0, %1, %cst {dimension_numbers = #tpu.dot_dimension_numbers<[1], [0], [0], [1], [0, 0, 1, 1], [], []>} : vector<8x13xf32>, vector<13x128xf32>, vector<8x128xf32> -> vector<8x128xf32>
    %c0_3 = arith.constant 0 : index
    %c0_4 = arith.constant 0 : index
    %3 = vector.load %arg3[%c0_3, %c0_4] : memref<1x128xf32, #tpu.memory_space<vmem>>, vector<1x128xf32>
    %4 = vector.broadcast %3 : vector<1x128xf32> to vector<8x128xf32>
    %5 = arith.addf %2, %4 : vector<8x128xf32>
    %cst_5 = arith.constant 0.000000e+00 : f32
    %6 = vector.broadcast %cst_5 : f32 to vector<8x128xf32>
    %c0_i32 = arith.constant 0 : i32
    %7 = vector.broadcast %c0_i32 : i32 to vector<8xi32>
    %c7_i32 = arith.constant 7 : i32
    %8 = vector.broadcast %c7_i32 : i32 to vector<8xi32>
    %cst_6 = arith.constant 0.000000e+00 : f32
    %9 = vector.broadcast %cst_6 : f32 to vector<8xf32>
    %cst_7 = arith.constant 0.000000e+00 : f32
    %10 = vector.broadcast %cst_7 : f32 to vector<8x128xf32>
    %c0_8 = arith.constant 0 : index
    %c0_9 = arith.constant 0 : index
    %11 = vector.load %arg4[%c0_8, %c0_9] : memref<128x512xbf16, #tpu.memory_space<vmem>>, vector<128x512xbf16>
    %c0_10 = arith.constant 0 : index
    %c0_11 = arith.constant 0 : index
    %12 = vector.load %arg5[%c0_10, %c0_11] : memref<128x512xbf16, #tpu.memory_space<vmem>>, vector<128x512xbf16>
    %c0_12 = arith.constant 0 : index
    %c0_13 = arith.constant 0 : index
    %13 = vector.load %arg7[%c0_12, %c0_13] : memref<128x128xbf16, #tpu.memory_space<vmem>>, vector<128x128xbf16>
    %c0_14 = arith.constant 0 : index
    %c0_15 = arith.constant 0 : index
    %14 = vector.load %arg6[%c0_14, %c0_15] : memref<1x512xf32, #tpu.memory_space<vmem>>, vector<1x512xf32>
    %15 = vector.shape_cast %14 : vector<1x512xf32> to vector<1x512xf32>
    %16 = vector.broadcast %15 : vector<1x512xf32> to vector<8x512xf32>
    %c0_16 = arith.constant 0 : index
    %c0_17 = arith.constant 0 : index
    %17 = vector.load %arg8[%c0_16, %c0_17] : memref<1x128xf32, #tpu.memory_space<vmem>>, vector<1x128xf32>
    %18 = vector.shape_cast %17 : vector<1x128xf32> to vector<1x128xf32>
    %19 = vector.broadcast %18 : vector<1x128xf32> to vector<8x128xf32>
    %20 = tpu.iota {dimensions = array<i32: 1>} : vector<8x128xi32>
    %21 = vector.shape_cast %7 : vector<8xi32> to vector<8x1xi32>
    %22 = vector.broadcast %21 : vector<8x1xi32> to vector<8x128xi32>
    %23 = arith.cmpi eq, %20, %22 : vector<8x128xi32>
    %24 = arith.extui %23 : vector<8x128xi1> to vector<8x128xi32>
    %25 = arith.sitofp %24 : vector<8x128xi32> to vector<8x128xf32>
    %26 = arith.truncf %25 : vector<8x128xf32> to vector<8x128xbf16>
    %27 = arith.truncf %5 : vector<8x128xf32> to vector<8x128xbf16>
    %cst_18 = arith.constant dense<0.000000e+00> : vector<8x512xf32>
    %28 = tpu.matmul %27, %11, %cst_18 {dimension_numbers = #tpu.dot_dimension_numbers<[1], [0], [0], [1], [0, 0, 1, 1], [], []>} : vector<8x128xbf16>, vector<128x512xbf16>, vector<8x512xf32> -> vector<8x512xf32>
    %cst_19 = arith.constant dense<0.000000e+00> : vector<8x512xf32>
    %29 = tpu.matmul %26, %12, %cst_19 {dimension_numbers = #tpu.dot_dimension_numbers<[1], [0], [0], [1], [0, 0, 1, 1], [], []>} : vector<8x128xbf16>, vector<128x512xbf16>, vector<8x512xf32> -> vector<8x512xf32>
    %30 = arith.addf %28, %29 : vector<8x512xf32>
    %31 = arith.addf %30, %16 : vector<8x512xf32>
    %32 = vector.extract_strided_slice %31 {offsets = [0, 0], sizes = [8, 128], strides = [1, 1]} : vector<8x512xf32> to vector<8x128xf32>
    %33 = arith.negf %32 : vector<8x128xf32>
    %34 = math.exp %33 : vector<8x128xf32>
    %cst_20 = arith.constant 1.000000e+00 : f32
    %35 = vector.broadcast %cst_20 : f32 to vector<8x128xf32>
    %36 = arith.addf %35, %34 : vector<8x128xf32>
    %37 = arith.divf %35, %36 : vector<8x128xf32>
    %38 = vector.extract_strided_slice %31 {offsets = [0, 128], sizes = [8, 128], strides = [1, 1]} : vector<8x512xf32> to vector<8x128xf32>
    %39 = arith.negf %38 : vector<8x128xf32>
    %40 = math.exp %39 : vector<8x128xf32>
    %cst_21 = arith.constant 1.000000e+00 : f32
    %41 = vector.broadcast %cst_21 : f32 to vector<8x128xf32>
    %42 = arith.addf %41, %40 : vector<8x128xf32>
    %43 = arith.divf %41, %42 : vector<8x128xf32>
    %44 = vector.extract_strided_slice %31 {offsets = [0, 256], sizes = [8, 128], strides = [1, 1]} : vector<8x512xf32> to vector<8x128xf32>
    %45 = math.tanh %44 : vector<8x128xf32>
    %46 = vector.extract_strided_slice %31 {offsets = [0, 384], sizes = [8, 128], strides = [1, 1]} : vector<8x512xf32> to vector<8x128xf32>
    %47 = arith.negf %46 : vector<8x128xf32>
    %48 = math.exp %47 : vector<8x128xf32>
    %cst_22 = arith.constant 1.000000e+00 : f32
    %49 = vector.broadcast %cst_22 : f32 to vector<8x128xf32>
    %50 = arith.addf %49, %48 : vector<8x128xf32>
    %51 = arith.divf %49, %50 : vector<8x128xf32>
    %52 = arith.mulf %43, %6 : vector<8x128xf32>
    %53 = arith.mulf %37, %45 : vector<8x128xf32>
    %54 = arith.addf %52, %53 : vector<8x128xf32>
    %55 = math.tanh %54 : vector<8x128xf32>
    %56 = arith.mulf %51, %55 : vector<8x128xf32>
    %57 = arith.truncf %56 : vector<8x128xf32> to vector<8x128xbf16>
    %cst_23 = arith.constant dense<0.000000e+00> : vector<8x128xf32>
    %58 = tpu.matmul %57, %13, %cst_23 {dimension_numbers = #tpu.dot_dimension_numbers<[1], [0], [0], [1], [0, 0, 1, 1], [], []>} : vector<8x128xbf16>, vector<128x128xbf16>, vector<8x128xf32> -> vector<8x128xf32>
    %59 = arith.addf %58, %19 : vector<8x128xf32>
    %cst_24 = arith.constant dense<0xFF800000> : vector<8xf32>
    %60 = vector.multi_reduction <maximumf>, %59, %cst_24 [1] : vector<8x128xf32> to vector<8xf32>
    %61 = vector.shape_cast %60 : vector<8xf32> to vector<8x1xf32>
    %62 = vector.broadcast %61 : vector<8x1xf32> to vector<8x128xf32>
    %63 = arith.subf %59, %62 : vector<8x128xf32>
    %64 = math.exp %63 : vector<8x128xf32>
    %cst_25 = arith.constant dense<0.000000e+00> : vector<8xf32>
    %65 = vector.multi_reduction <add>, %64, %cst_25 [1] : vector<8x128xf32> to vector<8xf32>
    %66 = vector.shape_cast %65 : vector<8xf32> to vector<8x1xf32>
    %67 = tpu.reciprocal %66 {approx = true} : vector<8x1xf32> -> vector<8x1xf32>
    %68 = vector.broadcast %67 : vector<8x1xf32> to vector<8x128xf32>
    %69 = arith.mulf %64, %68 : vector<8x128xf32>
    %70 = vector.shape_cast %61 : vector<8x1xf32> to vector<8xf32>
    %71 = math.log %66 : vector<8x1xf32>
    %72 = vector.shape_cast %71 : vector<8x1xf32> to vector<8xf32>
    %73 = arith.addf %70, %72 : vector<8xf32>
    %74 = arith.mulf %69, %59 : vector<8x128xf32>
    %cst_26 = arith.constant dense<0.000000e+00> : vector<8xf32>
    %75 = vector.multi_reduction <add>, %74, %cst_26 [1] : vector<8x128xf32> to vector<8xf32>
    %76 = arith.subf %73, %75 : vector<8xf32>
    %77 = arith.addf %9, %76 : vector<8xf32>
    %78 = arith.addf %10, %69 : vector<8x128xf32>
    %c0_27 = arith.constant 0 : index
    %c0_28 = arith.constant 0 : index
    %c0_29 = arith.constant 0 : index
    %79 = vector.load %arg9[%c0_27, %c0_28, %c0_29] : memref<6x8x128xf32, #tpu.memory_space<vmem>>, vector<1x8x128xf32>
    %80 = vector.shape_cast %79 : vector<1x8x128xf32> to vector<8x128xf32>
    %81 = arith.addf %59, %80 : vector<8x128xf32>
    %cst_30 = arith.constant dense<0xFF800000> : vector<8xf32>
    %82 = vector.multi_reduction <maximumf>, %81, %cst_30 [1] : vector<8x128xf32> to vector<8xf32>
    %83 = vector.shape_cast %82 : vector<8xf32> to vector<8x1xf32>
    %84 = tpu.iota {dimensions = array<i32: 1>} : vector<8x128xi32>
    %85 = vector.broadcast %83 : vector<8x1xf32> to vector<8x128xf32>
    %86 = arith.cmpf oeq, %81, %85 : vector<8x128xf32>
    %c128_i32 = arith.constant 128 : i32
    %87 = vector.broadcast %c128_i32 : i32 to vector<8x128xi32>
    %88 = arith.select %86, %84, %87 : vector<8x128xi1>, vector<8x128xi32>
    %cst_31 = arith.constant dense<2147483647> : vector<8xi32>
    %89 = vector.multi_reduction <minsi>, %88, %cst_31 [1] : vector<8x128xi32> to vector<8xi32>
    %c1_i32 = arith.constant 1 : i32
    %90 = vector.broadcast %c1_i32 : i32 to vector<8xi32>
    %91 = arith.cmpi eq, %89, %90 : vector<8xi32>
    %c7_i32_32 = arith.constant 7 : i32
    %92 = vector.broadcast %c7_i32_32 : i32 to vector<8xi32>
    %93 = arith.cmpi eq, %8, %92 : vector<8xi32>
    %94 = arith.andi %91, %93 : vector<8xi1>
    %c2_i32 = arith.constant 2 : i32
    %95 = vector.broadcast %c2_i32 : i32 to vector<8xi32>
    %96 = arith.select %94, %95, %8 : vector<8xi1>, vector<8xi32>
    %97 = tpu.iota {dimensions = array<i32: 1>} : vector<8x128xi32>
    %98 = vector.shape_cast %89 : vector<8xi32> to vector<8x1xi32>
    %99 = vector.broadcast %98 : vector<8x1xi32> to vector<8x128xi32>
    %100 = arith.cmpi eq, %97, %99 : vector<8x128xi32>
    %101 = arith.extui %100 : vector<8x128xi1> to vector<8x128xi32>
    %102 = arith.sitofp %101 : vector<8x128xi32> to vector<8x128xf32>
    %103 = arith.truncf %102 : vector<8x128xf32> to vector<8x128xbf16>
    %104 = arith.truncf %56 : vector<8x128xf32> to vector<8x128xbf16>
    %cst_33 = arith.constant dense<0.000000e+00> : vector<8x512xf32>
    %105 = tpu.matmul %104, %11, %cst_33 {dimension_numbers = #tpu.dot_dimension_numbers<[1], [0], [0], [1], [0, 0, 1, 1], [], []>} : vector<8x128xbf16>, vector<128x512xbf16>, vector<8x512xf32> -> vector<8x512xf32>
    %cst_34 = arith.constant dense<0.000000e+00> : vector<8x512xf32>
    %106 = tpu.matmul %103, %12, %cst_34 {dimension_numbers = #tpu.dot_dimension_numbers<[1], [0], [0], [1], [0, 0, 1, 1], [], []>} : vector<8x128xbf16>, vector<128x512xbf16>, vector<8x512xf32> -> vector<8x512xf32>
    %107 = arith.addf %105, %106 : vector<8x512xf32>
    %108 = arith.addf %107, %16 : vector<8x512xf32>
    %109 = vector.extract_strided_slice %108 {offsets = [0, 0], sizes = [8, 128], strides = [1, 1]} : vector<8x512xf32> to vector<8x128xf32>
    %110 = arith.negf %109 : vector<8x128xf32>
    %111 = math.exp %110 : vector<8x128xf32>
    %cst_35 = arith.constant 1.000000e+00 : f32
    %112 = vector.broadcast %cst_35 : f32 to vector<8x128xf32>
    %113 = arith.addf %112, %111 : vector<8x128xf32>
    %114 = arith.divf %112, %113 : vector<8x128xf32>
    %115 = vector.extract_strided_slice %108 {offsets = [0, 128], sizes = [8, 128], strides = [1, 1]} : vector<8x512xf32> to vector<8x128xf32>
    %116 = arith.negf %115 : vector<8x128xf32>
    %117 = math.exp %116 : vector<8x128xf32>
    %cst_36 = arith.constant 1.000000e+00 : f32
    %118 = vector.broadcast %cst_36 : f32 to vector<8x128xf32>
    %119 = arith.addf %118, %117 : vector<8x128xf32>
    %120 = arith.divf %118, %119 : vector<8x128xf32>
    %121 = vector.extract_strided_slice %108 {offsets = [0, 256], sizes = [8, 128], strides = [1, 1]} : vector<8x512xf32> to vector<8x128xf32>
    %122 = math.tanh %121 : vector<8x128xf32>
    %123 = vector.extract_strided_slice %108 {offsets = [0, 384], sizes = [8, 128], strides = [1, 1]} : vector<8x512xf32> to vector<8x128xf32>
    %124 = arith.negf %123 : vector<8x128xf32>
    %125 = math.exp %124 : vector<8x128xf32>
    %cst_37 = arith.constant 1.000000e+00 : f32
    %126 = vector.broadcast %cst_37 : f32 to vector<8x128xf32>
    %127 = arith.addf %126, %125 : vector<8x128xf32>
    %128 = arith.divf %126, %127 : vector<8x128xf32>
    %129 = arith.mulf %120, %54 : vector<8x128xf32>
    %130 = arith.mulf %114, %122 : vector<8x128xf32>
    %131 = arith.addf %129, %130 : vector<8x128xf32>
    %132 = math.tanh %131 : vector<8x128xf32>
    %133 = arith.mulf %128, %132 : vector<8x128xf32>
    %134 = arith.truncf %133 : vector<8x128xf32> to vector<8x128xbf16>
    %cst_38 = arith.constant dense<0.000000e+00> : vector<8x128xf32>
    %135 = tpu.matmul %134, %13, %cst_38 {dimension_numbers = #tpu.dot_dimension_numbers<[1], [0], [0], [1], [0, 0, 1, 1], [], []>} : vector<8x128xbf16>, vector<128x128xbf16>, vector<8x128xf32> -> vector<8x128xf32>
    %136 = arith.addf %135, %19 : vector<8x128xf32>
    %cst_39 = arith.constant dense<0xFF800000> : vector<8xf32>
    %137 = vector.multi_reduction <maximumf>, %136, %cst_39 [1] : vector<8x128xf32> to vector<8xf32>
    %138 = vector.shape_cast %137 : vector<8xf32> to vector<8x1xf32>
    %139 = vector.broadcast %138 : vector<8x1xf32> to vector<8x128xf32>
    %140 = arith.subf %136, %139 : vector<8x128xf32>
    %141 = math.exp %140 : vector<8x128xf32>
    %cst_40 = arith.constant dense<0.000000e+00> : vector<8xf32>
    %142 = vector.multi_reduction <add>, %141, %cst_40 [1] : vector<8x128xf32> to vector<8xf32>
    %143 = vector.shape_cast %142 : vector<8xf32> to vector<8x1xf32>
    %144 = tpu.reciprocal %143 {approx = true} : vector<8x1xf32> -> vector<8x1xf32>
    %145 = vector.broadcast %144 : vector<8x1xf32> to vector<8x128xf32>
    %146 = arith.mulf %141, %145 : vector<8x128xf32>
    %147 = vector.shape_cast %138 : vector<8x1xf32> to vector<8xf32>
    %148 = math.log %143 : vector<8x1xf32>
    %149 = vector.shape_cast %148 : vector<8x1xf32> to vector<8xf32>
    %150 = arith.addf %147, %149 : vector<8xf32>
    %151 = arith.mulf %146, %136 : vector<8x128xf32>
    %cst_41 = arith.constant dense<0.000000e+00> : vector<8xf32>
    %152 = vector.multi_reduction <add>, %151, %cst_41 [1] : vector<8x128xf32> to vector<8xf32>
    %153 = arith.subf %150, %152 : vector<8xf32>
    %154 = arith.addf %77, %153 : vector<8xf32>
    %155 = arith.addf %78, %146 : vector<8x128xf32>
    %c1 = arith.constant 1 : index
    %c0_42 = arith.constant 0 : index
    %c0_43 = arith.constant 0 : index
    %156 = vector.load %arg9[%c1, %c0_42, %c0_43] : memref<6x8x128xf32, #tpu.memory_space<vmem>>, vector<1x8x128xf32>
    %157 = vector.shape_cast %156 : vector<1x8x128xf32> to vector<8x128xf32>
    %158 = arith.addf %136, %157 : vector<8x128xf32>
    %cst_44 = arith.constant dense<0xFF800000> : vector<8xf32>
    %159 = vector.multi_reduction <maximumf>, %158, %cst_44 [1] : vector<8x128xf32> to vector<8xf32>
    %160 = vector.shape_cast %159 : vector<8xf32> to vector<8x1xf32>
    %161 = tpu.iota {dimensions = array<i32: 1>} : vector<8x128xi32>
    %162 = vector.broadcast %160 : vector<8x1xf32> to vector<8x128xf32>
    %163 = arith.cmpf oeq, %158, %162 : vector<8x128xf32>
    %c128_i32_45 = arith.constant 128 : i32
    %164 = vector.broadcast %c128_i32_45 : i32 to vector<8x128xi32>
    %165 = arith.select %163, %161, %164 : vector<8x128xi1>, vector<8x128xi32>
    %cst_46 = arith.constant dense<2147483647> : vector<8xi32>
    %166 = vector.multi_reduction <minsi>, %165, %cst_46 [1] : vector<8x128xi32> to vector<8xi32>
    %c1_i32_47 = arith.constant 1 : i32
    %167 = vector.broadcast %c1_i32_47 : i32 to vector<8xi32>
    %168 = arith.cmpi eq, %166, %167 : vector<8xi32>
    %c7_i32_48 = arith.constant 7 : i32
    %169 = vector.broadcast %c7_i32_48 : i32 to vector<8xi32>
    %170 = arith.cmpi eq, %96, %169 : vector<8xi32>
    %171 = arith.andi %168, %170 : vector<8xi1>
    %c3_i32 = arith.constant 3 : i32
    %172 = vector.broadcast %c3_i32 : i32 to vector<8xi32>
    %173 = arith.select %171, %172, %96 : vector<8xi1>, vector<8xi32>
    %174 = tpu.iota {dimensions = array<i32: 1>} : vector<8x128xi32>
    %175 = vector.shape_cast %166 : vector<8xi32> to vector<8x1xi32>
    %176 = vector.broadcast %175 : vector<8x1xi32> to vector<8x128xi32>
    %177 = arith.cmpi eq, %174, %176 : vector<8x128xi32>
    %178 = arith.extui %177 : vector<8x128xi1> to vector<8x128xi32>
    %179 = arith.sitofp %178 : vector<8x128xi32> to vector<8x128xf32>
    %180 = arith.truncf %179 : vector<8x128xf32> to vector<8x128xbf16>
    %181 = arith.truncf %133 : vector<8x128xf32> to vector<8x128xbf16>
    %cst_49 = arith.constant dense<0.000000e+00> : vector<8x512xf32>
    %182 = tpu.matmul %181, %11, %cst_49 {dimension_numbers = #tpu.dot_dimension_numbers<[1], [0], [0], [1], [0, 0, 1, 1], [], []>} : vector<8x128xbf16>, vector<128x512xbf16>, vector<8x512xf32> -> vector<8x512xf32>
    %cst_50 = arith.constant dense<0.000000e+00> : vector<8x512xf32>
    %183 = tpu.matmul %180, %12, %cst_50 {dimension_numbers = #tpu.dot_dimension_numbers<[1], [0], [0], [1], [0, 0, 1, 1], [], []>} : vector<8x128xbf16>, vector<128x512xbf16>, vector<8x512xf32> -> vector<8x512xf32>
    %184 = arith.addf %182, %183 : vector<8x512xf32>
    %185 = arith.addf %184, %16 : vector<8x512xf32>
    %186 = vector.extract_strided_slice %185 {offsets = [0, 0], sizes = [8, 128], strides = [1, 1]} : vector<8x512xf32> to vector<8x128xf32>
    %187 = arith.negf %186 : vector<8x128xf32>
    %188 = math.exp %187 : vector<8x128xf32>
    %cst_51 = arith.constant 1.000000e+00 : f32
    %189 = vector.broadcast %cst_51 : f32 to vector<8x128xf32>
    %190 = arith.addf %189, %188 : vector<8x128xf32>
    %191 = arith.divf %189, %190 : vector<8x128xf32>
    %192 = vector.extract_strided_slice %185 {offsets = [0, 128], sizes = [8, 128], strides = [1, 1]} : vector<8x512xf32> to vector<8x128xf32>
    %193 = arith.negf %192 : vector<8x128xf32>
    %194 = math.exp %193 : vector<8x128xf32>
    %cst_52 = arith.constant 1.000000e+00 : f32
    %195 = vector.broadcast %cst_52 : f32 to vector<8x128xf32>
    %196 = arith.addf %195, %194 : vector<8x128xf32>
    %197 = arith.divf %195, %196 : vector<8x128xf32>
    %198 = vector.extract_strided_slice %185 {offsets = [0, 256], sizes = [8, 128], strides = [1, 1]} : vector<8x512xf32> to vector<8x128xf32>
    %199 = math.tanh %198 : vector<8x128xf32>
    %200 = vector.extract_strided_slice %185 {offsets = [0, 384], sizes = [8, 128], strides = [1, 1]} : vector<8x512xf32> to vector<8x128xf32>
    %201 = arith.negf %200 : vector<8x128xf32>
    %202 = math.exp %201 : vector<8x128xf32>
    %cst_53 = arith.constant 1.000000e+00 : f32
    %203 = vector.broadcast %cst_53 : f32 to vector<8x128xf32>
    %204 = arith.addf %203, %202 : vector<8x128xf32>
    %205 = arith.divf %203, %204 : vector<8x128xf32>
    %206 = arith.mulf %197, %131 : vector<8x128xf32>
    %207 = arith.mulf %191, %199 : vector<8x128xf32>
    %208 = arith.addf %206, %207 : vector<8x128xf32>
    %209 = math.tanh %208 : vector<8x128xf32>
    %210 = arith.mulf %205, %209 : vector<8x128xf32>
    %211 = arith.truncf %210 : vector<8x128xf32> to vector<8x128xbf16>
    %cst_54 = arith.constant dense<0.000000e+00> : vector<8x128xf32>
    %212 = tpu.matmul %211, %13, %cst_54 {dimension_numbers = #tpu.dot_dimension_numbers<[1], [0], [0], [1], [0, 0, 1, 1], [], []>} : vector<8x128xbf16>, vector<128x128xbf16>, vector<8x128xf32> -> vector<8x128xf32>
    %213 = arith.addf %212, %19 : vector<8x128xf32>
    %cst_55 = arith.constant dense<0xFF800000> : vector<8xf32>
    %214 = vector.multi_reduction <maximumf>, %213, %cst_55 [1] : vector<8x128xf32> to vector<8xf32>
    %215 = vector.shape_cast %214 : vector<8xf32> to vector<8x1xf32>
    %216 = vector.broadcast %215 : vector<8x1xf32> to vector<8x128xf32>
    %217 = arith.subf %213, %216 : vector<8x128xf32>
    %218 = math.exp %217 : vector<8x128xf32>
    %cst_56 = arith.constant dense<0.000000e+00> : vector<8xf32>
    %219 = vector.multi_reduction <add>, %218, %cst_56 [1] : vector<8x128xf32> to vector<8xf32>
    %220 = vector.shape_cast %219 : vector<8xf32> to vector<8x1xf32>
    %221 = tpu.reciprocal %220 {approx = true} : vector<8x1xf32> -> vector<8x1xf32>
    %222 = vector.broadcast %221 : vector<8x1xf32> to vector<8x128xf32>
    %223 = arith.mulf %218, %222 : vector<8x128xf32>
    %224 = vector.shape_cast %215 : vector<8x1xf32> to vector<8xf32>
    %225 = math.log %220 : vector<8x1xf32>
    %226 = vector.shape_cast %225 : vector<8x1xf32> to vector<8xf32>
    %227 = arith.addf %224, %226 : vector<8xf32>
    %228 = arith.mulf %223, %213 : vector<8x128xf32>
    %cst_57 = arith.constant dense<0.000000e+00> : vector<8xf32>
    %229 = vector.multi_reduction <add>, %228, %cst_57 [1] : vector<8x128xf32> to vector<8xf32>
    %230 = arith.subf %227, %229 : vector<8xf32>
    %231 = arith.addf %154, %230 : vector<8xf32>
    %232 = arith.addf %155, %223 : vector<8x128xf32>
    %c2 = arith.constant 2 : index
    %c0_58 = arith.constant 0 : index
    %c0_59 = arith.constant 0 : index
    %233 = vector.load %arg9[%c2, %c0_58, %c0_59] : memref<6x8x128xf32, #tpu.memory_space<vmem>>, vector<1x8x128xf32>
    %234 = vector.shape_cast %233 : vector<1x8x128xf32> to vector<8x128xf32>
    %235 = arith.addf %213, %234 : vector<8x128xf32>
    %cst_60 = arith.constant dense<0xFF800000> : vector<8xf32>
    %236 = vector.multi_reduction <maximumf>, %235, %cst_60 [1] : vector<8x128xf32> to vector<8xf32>
    %237 = vector.shape_cast %236 : vector<8xf32> to vector<8x1xf32>
    %238 = tpu.iota {dimensions = array<i32: 1>} : vector<8x128xi32>
    %239 = vector.broadcast %237 : vector<8x1xf32> to vector<8x128xf32>
    %240 = arith.cmpf oeq, %235, %239 : vector<8x128xf32>
    %c128_i32_61 = arith.constant 128 : i32
    %241 = vector.broadcast %c128_i32_61 : i32 to vector<8x128xi32>
    %242 = arith.select %240, %238, %241 : vector<8x128xi1>, vector<8x128xi32>
    %cst_62 = arith.constant dense<2147483647> : vector<8xi32>
    %243 = vector.multi_reduction <minsi>, %242, %cst_62 [1] : vector<8x128xi32> to vector<8xi32>
    %c1_i32_63 = arith.constant 1 : i32
    %244 = vector.broadcast %c1_i32_63 : i32 to vector<8xi32>
    %245 = arith.cmpi eq, %243, %244 : vector<8xi32>
    %c7_i32_64 = arith.constant 7 : i32
    %246 = vector.broadcast %c7_i32_64 : i32 to vector<8xi32>
    %247 = arith.cmpi eq, %173, %246 : vector<8xi32>
    %248 = arith.andi %245, %247 : vector<8xi1>
    %c4_i32 = arith.constant 4 : i32
    %249 = vector.broadcast %c4_i32 : i32 to vector<8xi32>
    %250 = arith.select %248, %249, %173 : vector<8xi1>, vector<8xi32>
    %251 = tpu.iota {dimensions = array<i32: 1>} : vector<8x128xi32>
    %252 = vector.shape_cast %243 : vector<8xi32> to vector<8x1xi32>
    %253 = vector.broadcast %252 : vector<8x1xi32> to vector<8x128xi32>
    %254 = arith.cmpi eq, %251, %253 : vector<8x128xi32>
    %255 = arith.extui %254 : vector<8x128xi1> to vector<8x128xi32>
    %256 = arith.sitofp %255 : vector<8x128xi32> to vector<8x128xf32>
    %257 = arith.truncf %256 : vector<8x128xf32> to vector<8x128xbf16>
    %258 = arith.truncf %210 : vector<8x128xf32> to vector<8x128xbf16>
    %cst_65 = arith.constant dense<0.000000e+00> : vector<8x512xf32>
    %259 = tpu.matmul %258, %11, %cst_65 {dimension_numbers = #tpu.dot_dimension_numbers<[1], [0], [0], [1], [0, 0, 1, 1], [], []>} : vector<8x128xbf16>, vector<128x512xbf16>, vector<8x512xf32> -> vector<8x512xf32>
    %cst_66 = arith.constant dense<0.000000e+00> : vector<8x512xf32>
    %260 = tpu.matmul %257, %12, %cst_66 {dimension_numbers = #tpu.dot_dimension_numbers<[1], [0], [0], [1], [0, 0, 1, 1], [], []>} : vector<8x128xbf16>, vector<128x512xbf16>, vector<8x512xf32> -> vector<8x512xf32>
    %261 = arith.addf %259, %260 : vector<8x512xf32>
    %262 = arith.addf %261, %16 : vector<8x512xf32>
    %263 = vector.extract_strided_slice %262 {offsets = [0, 0], sizes = [8, 128], strides = [1, 1]} : vector<8x512xf32> to vector<8x128xf32>
    %264 = arith.negf %263 : vector<8x128xf32>
    %265 = math.exp %264 : vector<8x128xf32>
    %cst_67 = arith.constant 1.000000e+00 : f32
    %266 = vector.broadcast %cst_67 : f32 to vector<8x128xf32>
    %267 = arith.addf %266, %265 : vector<8x128xf32>
    %268 = arith.divf %266, %267 : vector<8x128xf32>
    %269 = vector.extract_strided_slice %262 {offsets = [0, 128], sizes = [8, 128], strides = [1, 1]} : vector<8x512xf32> to vector<8x128xf32>
    %270 = arith.negf %269 : vector<8x128xf32>
    %271 = math.exp %270 : vector<8x128xf32>
    %cst_68 = arith.constant 1.000000e+00 : f32
    %272 = vector.broadcast %cst_68 : f32 to vector<8x128xf32>
    %273 = arith.addf %272, %271 : vector<8x128xf32>
    %274 = arith.divf %272, %273 : vector<8x128xf32>
    %275 = vector.extract_strided_slice %262 {offsets = [0, 256], sizes = [8, 128], strides = [1, 1]} : vector<8x512xf32> to vector<8x128xf32>
    %276 = math.tanh %275 : vector<8x128xf32>
    %277 = vector.extract_strided_slice %262 {offsets = [0, 384], sizes = [8, 128], strides = [1, 1]} : vector<8x512xf32> to vector<8x128xf32>
    %278 = arith.negf %277 : vector<8x128xf32>
    %279 = math.exp %278 : vector<8x128xf32>
    %cst_69 = arith.constant 1.000000e+00 : f32
    %280 = vector.broadcast %cst_69 : f32 to vector<8x128xf32>
    %281 = arith.addf %280, %279 : vector<8x128xf32>
    %282 = arith.divf %280, %281 : vector<8x128xf32>
    %283 = arith.mulf %274, %208 : vector<8x128xf32>
    %284 = arith.mulf %268, %276 : vector<8x128xf32>
    %285 = arith.addf %283, %284 : vector<8x128xf32>
    %286 = math.tanh %285 : vector<8x128xf32>
    %287 = arith.mulf %282, %286 : vector<8x128xf32>
    %288 = arith.truncf %287 : vector<8x128xf32> to vector<8x128xbf16>
    %cst_70 = arith.constant dense<0.000000e+00> : vector<8x128xf32>
    %289 = tpu.matmul %288, %13, %cst_70 {dimension_numbers = #tpu.dot_dimension_numbers<[1], [0], [0], [1], [0, 0, 1, 1], [], []>} : vector<8x128xbf16>, vector<128x128xbf16>, vector<8x128xf32> -> vector<8x128xf32>
    %290 = arith.addf %289, %19 : vector<8x128xf32>
    %cst_71 = arith.constant dense<0xFF800000> : vector<8xf32>
    %291 = vector.multi_reduction <maximumf>, %290, %cst_71 [1] : vector<8x128xf32> to vector<8xf32>
    %292 = vector.shape_cast %291 : vector<8xf32> to vector<8x1xf32>
    %293 = vector.broadcast %292 : vector<8x1xf32> to vector<8x128xf32>
    %294 = arith.subf %290, %293 : vector<8x128xf32>
    %295 = math.exp %294 : vector<8x128xf32>
    %cst_72 = arith.constant dense<0.000000e+00> : vector<8xf32>
    %296 = vector.multi_reduction <add>, %295, %cst_72 [1] : vector<8x128xf32> to vector<8xf32>
    %297 = vector.shape_cast %296 : vector<8xf32> to vector<8x1xf32>
    %298 = tpu.reciprocal %297 {approx = true} : vector<8x1xf32> -> vector<8x1xf32>
    %299 = vector.broadcast %298 : vector<8x1xf32> to vector<8x128xf32>
    %300 = arith.mulf %295, %299 : vector<8x128xf32>
    %301 = vector.shape_cast %292 : vector<8x1xf32> to vector<8xf32>
    %302 = math.log %297 : vector<8x1xf32>
    %303 = vector.shape_cast %302 : vector<8x1xf32> to vector<8xf32>
    %304 = arith.addf %301, %303 : vector<8xf32>
    %305 = arith.mulf %300, %290 : vector<8x128xf32>
    %cst_73 = arith.constant dense<0.000000e+00> : vector<8xf32>
    %306 = vector.multi_reduction <add>, %305, %cst_73 [1] : vector<8x128xf32> to vector<8xf32>
    %307 = arith.subf %304, %306 : vector<8xf32>
    %308 = arith.addf %231, %307 : vector<8xf32>
    %309 = arith.addf %232, %300 : vector<8x128xf32>
    %c3 = arith.constant 3 : index
    %c0_74 = arith.constant 0 : index
    %c0_75 = arith.constant 0 : index
    %310 = vector.load %arg9[%c3, %c0_74, %c0_75] : memref<6x8x128xf32, #tpu.memory_space<vmem>>, vector<1x8x128xf32>
    %311 = vector.shape_cast %310 : vector<1x8x128xf32> to vector<8x128xf32>
    %312 = arith.addf %290, %311 : vector<8x128xf32>
    %cst_76 = arith.constant dense<0xFF800000> : vector<8xf32>
    %313 = vector.multi_reduction <maximumf>, %312, %cst_76 [1] : vector<8x128xf32> to vector<8xf32>
    %314 = vector.shape_cast %313 : vector<8xf32> to vector<8x1xf32>
    %315 = tpu.iota {dimensions = array<i32: 1>} : vector<8x128xi32>
    %316 = vector.broadcast %314 : vector<8x1xf32> to vector<8x128xf32>
    %317 = arith.cmpf oeq, %312, %316 : vector<8x128xf32>
    %c128_i32_77 = arith.constant 128 : i32
    %318 = vector.broadcast %c128_i32_77 : i32 to vector<8x128xi32>
    %319 = arith.select %317, %315, %318 : vector<8x128xi1>, vector<8x128xi32>
    %cst_78 = arith.constant dense<2147483647> : vector<8xi32>
    %320 = vector.multi_reduction <minsi>, %319, %cst_78 [1] : vector<8x128xi32> to vector<8xi32>
    %c1_i32_79 = arith.constant 1 : i32
    %321 = vector.broadcast %c1_i32_79 : i32 to vector<8xi32>
    %322 = arith.cmpi eq, %320, %321 : vector<8xi32>
    %c7_i32_80 = arith.constant 7 : i32
    %323 = vector.broadcast %c7_i32_80 : i32 to vector<8xi32>
    %324 = arith.cmpi eq, %250, %323 : vector<8xi32>
    %325 = arith.andi %322, %324 : vector<8xi1>
    %c5_i32 = arith.constant 5 : i32
    %326 = vector.broadcast %c5_i32 : i32 to vector<8xi32>
    %327 = arith.select %325, %326, %250 : vector<8xi1>, vector<8xi32>
    %328 = tpu.iota {dimensions = array<i32: 1>} : vector<8x128xi32>
    %329 = vector.shape_cast %320 : vector<8xi32> to vector<8x1xi32>
    %330 = vector.broadcast %329 : vector<8x1xi32> to vector<8x128xi32>
    %331 = arith.cmpi eq, %328, %330 : vector<8x128xi32>
    %332 = arith.extui %331 : vector<8x128xi1> to vector<8x128xi32>
    %333 = arith.sitofp %332 : vector<8x128xi32> to vector<8x128xf32>
    %334 = arith.truncf %333 : vector<8x128xf32> to vector<8x128xbf16>
    %335 = arith.truncf %287 : vector<8x128xf32> to vector<8x128xbf16>
    %cst_81 = arith.constant dense<0.000000e+00> : vector<8x512xf32>
    %336 = tpu.matmul %335, %11, %cst_81 {dimension_numbers = #tpu.dot_dimension_numbers<[1], [0], [0], [1], [0, 0, 1, 1], [], []>} : vector<8x128xbf16>, vector<128x512xbf16>, vector<8x512xf32> -> vector<8x512xf32>
    %cst_82 = arith.constant dense<0.000000e+00> : vector<8x512xf32>
    %337 = tpu.matmul %334, %12, %cst_82 {dimension_numbers = #tpu.dot_dimension_numbers<[1], [0], [0], [1], [0, 0, 1, 1], [], []>} : vector<8x128xbf16>, vector<128x512xbf16>, vector<8x512xf32> -> vector<8x512xf32>
    %338 = arith.addf %336, %337 : vector<8x512xf32>
    %339 = arith.addf %338, %16 : vector<8x512xf32>
    %340 = vector.extract_strided_slice %339 {offsets = [0, 0], sizes = [8, 128], strides = [1, 1]} : vector<8x512xf32> to vector<8x128xf32>
    %341 = arith.negf %340 : vector<8x128xf32>
    %342 = math.exp %341 : vector<8x128xf32>
    %cst_83 = arith.constant 1.000000e+00 : f32
    %343 = vector.broadcast %cst_83 : f32 to vector<8x128xf32>
    %344 = arith.addf %343, %342 : vector<8x128xf32>
    %345 = arith.divf %343, %344 : vector<8x128xf32>
    %346 = vector.extract_strided_slice %339 {offsets = [0, 128], sizes = [8, 128], strides = [1, 1]} : vector<8x512xf32> to vector<8x128xf32>
    %347 = arith.negf %346 : vector<8x128xf32>
    %348 = math.exp %347 : vector<8x128xf32>
    %cst_84 = arith.constant 1.000000e+00 : f32
    %349 = vector.broadcast %cst_84 : f32 to vector<8x128xf32>
    %350 = arith.addf %349, %348 : vector<8x128xf32>
    %351 = arith.divf %349, %350 : vector<8x128xf32>
    %352 = vector.extract_strided_slice %339 {offsets = [0, 256], sizes = [8, 128], strides = [1, 1]} : vector<8x512xf32> to vector<8x128xf32>
    %353 = math.tanh %352 : vector<8x128xf32>
    %354 = vector.extract_strided_slice %339 {offsets = [0, 384], sizes = [8, 128], strides = [1, 1]} : vector<8x512xf32> to vector<8x128xf32>
    %355 = arith.negf %354 : vector<8x128xf32>
    %356 = math.exp %355 : vector<8x128xf32>
    %cst_85 = arith.constant 1.000000e+00 : f32
    %357 = vector.broadcast %cst_85 : f32 to vector<8x128xf32>
    %358 = arith.addf %357, %356 : vector<8x128xf32>
    %359 = arith.divf %357, %358 : vector<8x128xf32>
    %360 = arith.mulf %351, %285 : vector<8x128xf32>
    %361 = arith.mulf %345, %353 : vector<8x128xf32>
    %362 = arith.addf %360, %361 : vector<8x128xf32>
    %363 = math.tanh %362 : vector<8x128xf32>
    %364 = arith.mulf %359, %363 : vector<8x128xf32>
    %365 = arith.truncf %364 : vector<8x128xf32> to vector<8x128xbf16>
    %cst_86 = arith.constant dense<0.000000e+00> : vector<8x128xf32>
    %366 = tpu.matmul %365, %13, %cst_86 {dimension_numbers = #tpu.dot_dimension_numbers<[1], [0], [0], [1], [0, 0, 1, 1], [], []>} : vector<8x128xbf16>, vector<128x128xbf16>, vector<8x128xf32> -> vector<8x128xf32>
    %367 = arith.addf %366, %19 : vector<8x128xf32>
    %cst_87 = arith.constant dense<0xFF800000> : vector<8xf32>
    %368 = vector.multi_reduction <maximumf>, %367, %cst_87 [1] : vector<8x128xf32> to vector<8xf32>
    %369 = vector.shape_cast %368 : vector<8xf32> to vector<8x1xf32>
    %370 = vector.broadcast %369 : vector<8x1xf32> to vector<8x128xf32>
    %371 = arith.subf %367, %370 : vector<8x128xf32>
    %372 = math.exp %371 : vector<8x128xf32>
    %cst_88 = arith.constant dense<0.000000e+00> : vector<8xf32>
    %373 = vector.multi_reduction <add>, %372, %cst_88 [1] : vector<8x128xf32> to vector<8xf32>
    %374 = vector.shape_cast %373 : vector<8xf32> to vector<8x1xf32>
    %375 = tpu.reciprocal %374 {approx = true} : vector<8x1xf32> -> vector<8x1xf32>
    %376 = vector.broadcast %375 : vector<8x1xf32> to vector<8x128xf32>
    %377 = arith.mulf %372, %376 : vector<8x128xf32>
    %378 = vector.shape_cast %369 : vector<8x1xf32> to vector<8xf32>
    %379 = math.log %374 : vector<8x1xf32>
    %380 = vector.shape_cast %379 : vector<8x1xf32> to vector<8xf32>
    %381 = arith.addf %378, %380 : vector<8xf32>
    %382 = arith.mulf %377, %367 : vector<8x128xf32>
    %cst_89 = arith.constant dense<0.000000e+00> : vector<8xf32>
    %383 = vector.multi_reduction <add>, %382, %cst_89 [1] : vector<8x128xf32> to vector<8xf32>
    %384 = arith.subf %381, %383 : vector<8xf32>
    %385 = arith.addf %308, %384 : vector<8xf32>
    %386 = arith.addf %309, %377 : vector<8x128xf32>
    %c4 = arith.constant 4 : index
    %c0_90 = arith.constant 0 : index
    %c0_91 = arith.constant 0 : index
    %387 = vector.load %arg9[%c4, %c0_90, %c0_91] : memref<6x8x128xf32, #tpu.memory_space<vmem>>, vector<1x8x128xf32>
    %388 = vector.shape_cast %387 : vector<1x8x128xf32> to vector<8x128xf32>
    %389 = arith.addf %367, %388 : vector<8x128xf32>
    %cst_92 = arith.constant dense<0xFF800000> : vector<8xf32>
    %390 = vector.multi_reduction <maximumf>, %389, %cst_92 [1] : vector<8x128xf32> to vector<8xf32>
    %391 = vector.shape_cast %390 : vector<8xf32> to vector<8x1xf32>
    %392 = tpu.iota {dimensions = array<i32: 1>} : vector<8x128xi32>
    %393 = vector.broadcast %391 : vector<8x1xf32> to vector<8x128xf32>
    %394 = arith.cmpf oeq, %389, %393 : vector<8x128xf32>
    %c128_i32_93 = arith.constant 128 : i32
    %395 = vector.broadcast %c128_i32_93 : i32 to vector<8x128xi32>
    %396 = arith.select %394, %392, %395 : vector<8x128xi1>, vector<8x128xi32>
    %cst_94 = arith.constant dense<2147483647> : vector<8xi32>
    %397 = vector.multi_reduction <minsi>, %396, %cst_94 [1] : vector<8x128xi32> to vector<8xi32>
    %c1_i32_95 = arith.constant 1 : i32
    %398 = vector.broadcast %c1_i32_95 : i32 to vector<8xi32>
    %399 = arith.cmpi eq, %397, %398 : vector<8xi32>
    %c7_i32_96 = arith.constant 7 : i32
    %400 = vector.broadcast %c7_i32_96 : i32 to vector<8xi32>
    %401 = arith.cmpi eq, %327, %400 : vector<8xi32>
    %402 = arith.andi %399, %401 : vector<8xi1>
    %c6_i32 = arith.constant 6 : i32
    %403 = vector.broadcast %c6_i32 : i32 to vector<8xi32>
    %404 = arith.select %402, %403, %327 : vector<8xi1>, vector<8xi32>
    %405 = tpu.iota {dimensions = array<i32: 1>} : vector<8x128xi32>
    %406 = vector.shape_cast %397 : vector<8xi32> to vector<8x1xi32>
    %407 = vector.broadcast %406 : vector<8x1xi32> to vector<8x128xi32>
    %408 = arith.cmpi eq, %405, %407 : vector<8x128xi32>
    %409 = arith.extui %408 : vector<8x128xi1> to vector<8x128xi32>
    %410 = arith.sitofp %409 : vector<8x128xi32> to vector<8x128xf32>
    %411 = arith.truncf %410 : vector<8x128xf32> to vector<8x128xbf16>
    %412 = arith.truncf %364 : vector<8x128xf32> to vector<8x128xbf16>
    %cst_97 = arith.constant dense<0.000000e+00> : vector<8x512xf32>
    %413 = tpu.matmul %412, %11, %cst_97 {dimension_numbers = #tpu.dot_dimension_numbers<[1], [0], [0], [1], [0, 0, 1, 1], [], []>} : vector<8x128xbf16>, vector<128x512xbf16>, vector<8x512xf32> -> vector<8x512xf32>
    %cst_98 = arith.constant dense<0.000000e+00> : vector<8x512xf32>
    %414 = tpu.matmul %411, %12, %cst_98 {dimension_numbers = #tpu.dot_dimension_numbers<[1], [0], [0], [1], [0, 0, 1, 1], [], []>} : vector<8x128xbf16>, vector<128x512xbf16>, vector<8x512xf32> -> vector<8x512xf32>
    %415 = arith.addf %413, %414 : vector<8x512xf32>
    %416 = arith.addf %415, %16 : vector<8x512xf32>
    %417 = vector.extract_strided_slice %416 {offsets = [0, 0], sizes = [8, 128], strides = [1, 1]} : vector<8x512xf32> to vector<8x128xf32>
    %418 = arith.negf %417 : vector<8x128xf32>
    %419 = math.exp %418 : vector<8x128xf32>
    %cst_99 = arith.constant 1.000000e+00 : f32
    %420 = vector.broadcast %cst_99 : f32 to vector<8x128xf32>
    %421 = arith.addf %420, %419 : vector<8x128xf32>
    %422 = arith.divf %420, %421 : vector<8x128xf32>
    %423 = vector.extract_strided_slice %416 {offsets = [0, 128], sizes = [8, 128], strides = [1, 1]} : vector<8x512xf32> to vector<8x128xf32>
    %424 = arith.negf %423 : vector<8x128xf32>
    %425 = math.exp %424 : vector<8x128xf32>
    %cst_100 = arith.constant 1.000000e+00 : f32
    %426 = vector.broadcast %cst_100 : f32 to vector<8x128xf32>
    %427 = arith.addf %426, %425 : vector<8x128xf32>
    %428 = arith.divf %426, %427 : vector<8x128xf32>
    %429 = vector.extract_strided_slice %416 {offsets = [0, 256], sizes = [8, 128], strides = [1, 1]} : vector<8x512xf32> to vector<8x128xf32>
    %430 = math.tanh %429 : vector<8x128xf32>
    %431 = vector.extract_strided_slice %416 {offsets = [0, 384], sizes = [8, 128], strides = [1, 1]} : vector<8x512xf32> to vector<8x128xf32>
    %432 = arith.negf %431 : vector<8x128xf32>
    %433 = math.exp %432 : vector<8x128xf32>
    %cst_101 = arith.constant 1.000000e+00 : f32
    %434 = vector.broadcast %cst_101 : f32 to vector<8x128xf32>
    %435 = arith.addf %434, %433 : vector<8x128xf32>
    %436 = arith.divf %434, %435 : vector<8x128xf32>
    %437 = arith.mulf %428, %362 : vector<8x128xf32>
    %438 = arith.mulf %422, %430 : vector<8x128xf32>
    %439 = arith.addf %437, %438 : vector<8x128xf32>
    %440 = math.tanh %439 : vector<8x128xf32>
    %441 = arith.mulf %436, %440 : vector<8x128xf32>
    %442 = arith.truncf %441 : vector<8x128xf32> to vector<8x128xbf16>
    %cst_102 = arith.constant dense<0.000000e+00> : vector<8x128xf32>
    %443 = tpu.matmul %442, %13, %cst_102 {dimension_numbers = #tpu.dot_dimension_numbers<[1], [0], [0], [1], [0, 0, 1, 1], [], []>} : vector<8x128xbf16>, vector<128x128xbf16>, vector<8x128xf32> -> vector<8x128xf32>
    %444 = arith.addf %443, %19 : vector<8x128xf32>
    %cst_103 = arith.constant dense<0xFF800000> : vector<8xf32>
    %445 = vector.multi_reduction <maximumf>, %444, %cst_103 [1] : vector<8x128xf32> to vector<8xf32>
    %446 = vector.shape_cast %445 : vector<8xf32> to vector<8x1xf32>
    %447 = vector.broadcast %446 : vector<8x1xf32> to vector<8x128xf32>
    %448 = arith.subf %444, %447 : vector<8x128xf32>
    %449 = math.exp %448 : vector<8x128xf32>
    %cst_104 = arith.constant dense<0.000000e+00> : vector<8xf32>
    %450 = vector.multi_reduction <add>, %449, %cst_104 [1] : vector<8x128xf32> to vector<8xf32>
    %451 = vector.shape_cast %450 : vector<8xf32> to vector<8x1xf32>
    %452 = tpu.reciprocal %451 {approx = true} : vector<8x1xf32> -> vector<8x1xf32>
    %453 = vector.broadcast %452 : vector<8x1xf32> to vector<8x128xf32>
    %454 = arith.mulf %449, %453 : vector<8x128xf32>
    %455 = vector.shape_cast %446 : vector<8x1xf32> to vector<8xf32>
    %456 = math.log %451 : vector<8x1xf32>
    %457 = vector.shape_cast %456 : vector<8x1xf32> to vector<8xf32>
    %458 = arith.addf %455, %457 : vector<8xf32>
    %459 = arith.mulf %454, %444 : vector<8x128xf32>
    %cst_105 = arith.constant dense<0.000000e+00> : vector<8xf32>
    %460 = vector.multi_reduction <add>, %459, %cst_105 [1] : vector<8x128xf32> to vector<8xf32>
    %461 = arith.subf %458, %460 : vector<8xf32>
    %462 = arith.addf %385, %461 : vector<8xf32>
    %463 = arith.addf %386, %454 : vector<8x128xf32>
    %c5 = arith.constant 5 : index
    %c0_106 = arith.constant 0 : index
    %c0_107 = arith.constant 0 : index
    %464 = vector.load %arg9[%c5, %c0_106, %c0_107] : memref<6x8x128xf32, #tpu.memory_space<vmem>>, vector<1x8x128xf32>
    %465 = vector.shape_cast %464 : vector<1x8x128xf32> to vector<8x128xf32>
    %466 = arith.addf %444, %465 : vector<8x128xf32>
    %cst_108 = arith.constant dense<0xFF800000> : vector<8xf32>
    %467 = vector.multi_reduction <maximumf>, %466, %cst_108 [1] : vector<8x128xf32> to vector<8xf32>
    %468 = vector.shape_cast %467 : vector<8xf32> to vector<8x1xf32>
    %469 = tpu.iota {dimensions = array<i32: 1>} : vector<8x128xi32>
    %470 = vector.broadcast %468 : vector<8x1xf32> to vector<8x128xf32>
    %471 = arith.cmpf oeq, %466, %470 : vector<8x128xf32>
    %c128_i32_109 = arith.constant 128 : i32
    %472 = vector.broadcast %c128_i32_109 : i32 to vector<8x128xi32>
    %473 = arith.select %471, %469, %472 : vector<8x128xi1>, vector<8x128xi32>
    %cst_110 = arith.constant dense<2147483647> : vector<8xi32>
    %474 = vector.multi_reduction <minsi>, %473, %cst_110 [1] : vector<8x128xi32> to vector<8xi32>
    %c1_i32_111 = arith.constant 1 : i32
    %475 = vector.broadcast %c1_i32_111 : i32 to vector<8xi32>
    %476 = arith.cmpi eq, %474, %475 : vector<8xi32>
    %c7_i32_112 = arith.constant 7 : i32
    %477 = vector.broadcast %c7_i32_112 : i32 to vector<8xi32>
    %478 = arith.cmpi eq, %404, %477 : vector<8xi32>
    %479 = arith.andi %476, %478 : vector<8xi1>
    %c7_i32_113 = arith.constant 7 : i32
    %480 = vector.broadcast %c7_i32_113 : i32 to vector<8xi32>
    %481 = arith.select %479, %480, %404 : vector<8xi1>, vector<8xi32>
    %482 = vector.shape_cast %7 : vector<8xi32> to vector<1x8xi32>
    %483 = vector.shape_cast %89 : vector<8xi32> to vector<1x8xi32>
    %484 = vector.shape_cast %166 : vector<8xi32> to vector<1x8xi32>
    %485 = vector.shape_cast %243 : vector<8xi32> to vector<1x8xi32>
    %486 = vector.shape_cast %320 : vector<8xi32> to vector<1x8xi32>
    %487 = vector.shape_cast %397 : vector<8xi32> to vector<1x8xi32>
    %488 = vector.shape_cast %474 : vector<8xi32> to vector<1x8xi32>
    %489 = tpu.concatenate %482, %483, %484, %485, %486, %487, %488 in 0 : vector<1x8xi32>, vector<1x8xi32>, vector<1x8xi32>, vector<1x8xi32>, vector<1x8xi32>, vector<1x8xi32>, vector<1x8xi32> -> vector<7x8xi32>
    %c0_114 = arith.constant 0 : index
    %c0_115 = arith.constant 0 : index
    %490 = vector.load %arg10[%c0_114, %c0_115] : memref<7x8xi32, #tpu.memory_space<vmem>>, vector<7x8xi32>
    tpu.vector_store %arg10[%c0_114, %c0_115], %489 {strides = array<i32>} : memref<7x8xi32, #tpu.memory_space<vmem>>, vector<7x8xi32>,
    %c0_116 = arith.constant 0 : index
    %c0_117 = arith.constant 0 : index
    %491 = vector.load %arg11[%c0_116, %c0_117] : memref<1x8xi32, #tpu.memory_space<vmem>>, vector<1x8xi32>
    %492 = vector.shape_cast %491 : vector<1x8xi32> to vector<8xi32>
    %493 = vector.shape_cast %481 : vector<8xi32> to vector<1x8xi32>
    tpu.vector_store %arg11[%c0_116, %c0_117], %493 {strides = array<i32>} : memref<1x8xi32, #tpu.memory_space<vmem>>, vector<1x8xi32>,
    %c0_118 = arith.constant 0 : index
    %c0_119 = arith.constant 0 : index
    %494 = vector.load %arg12[%c0_118, %c0_119] : memref<1x8xf32, #tpu.memory_space<vmem>>, vector<1x8xf32>
    %495 = vector.shape_cast %494 : vector<1x8xf32> to vector<8xf32>
    %496 = vector.shape_cast %462 : vector<8xf32> to vector<1x8xf32>
    tpu.vector_store %arg12[%c0_118, %c0_119], %496 {strides = array<i32>} : memref<1x8xf32, #tpu.memory_space<vmem>>, vector<1x8xf32>,
    %c0_120 = arith.constant 0 : index
    %c0_121 = arith.constant 0 : index
    %497 = vector.load %arg13[%c0_120, %c0_121] : memref<8x128xf32, #tpu.memory_space<vmem>>, vector<8x128xf32>
    tpu.vector_store %arg13[%c0_120, %c0_121], %463 {strides = array<i32>} : memref<8x128xf32, #tpu.memory_space<vmem>>, vector<8x128xf32>,
    return
  }
  func.func @transform_0(%arg0: i32) -> (i32, i32) {
    %c0_i32 = arith.constant 0 : i32
    %c0_i32_0 = arith.constant 0 : i32
    return %arg0, %c0_i32 : i32, i32
  }
  func.func @transform_1(%arg0: i32) -> (i32, i32) {
    %c0_i32 = arith.constant 0 : i32
    %c0_i32_0 = arith.constant 0 : i32
    %c0_i32_1 = arith.constant 0 : i32
    return %c0_i32, %c0_i32_0 : i32, i32
  }
  func.func @transform_2(%arg0: i32) -> (i32, i32) {
    %c0_i32 = arith.constant 0 : i32
    %c0_i32_0 = arith.constant 0 : i32
    %c0_i32_1 = arith.constant 0 : i32
    return %c0_i32, %c0_i32_0 : i32, i32
  }
  func.func @transform_3(%arg0: i32) -> (i32, i32) {
    %c0_i32 = arith.constant 0 : i32
    %c0_i32_0 = arith.constant 0 : i32
    %c0_i32_1 = arith.constant 0 : i32
    return %c0_i32, %c0_i32_0 : i32, i32
  }
  func.func @transform_4(%arg0: i32) -> (i32, i32) {
    %c0_i32 = arith.constant 0 : i32
    %c0_i32_0 = arith.constant 0 : i32
    %c0_i32_1 = arith.constant 0 : i32
    return %c0_i32, %c0_i32_0 : i32, i32
  }
  func.func @transform_5(%arg0: i32) -> (i32, i32) {
    %c0_i32 = arith.constant 0 : i32
    %c0_i32_0 = arith.constant 0 : i32
    %c0_i32_1 = arith.constant 0 : i32
    return %c0_i32, %c0_i32_0 : i32, i32
  }
  func.func @transform_6(%arg0: i32) -> (i32, i32) {
    %c0_i32 = arith.constant 0 : i32
    %c0_i32_0 = arith.constant 0 : i32
    %c0_i32_1 = arith.constant 0 : i32
    return %c0_i32, %c0_i32_0 : i32, i32
  }
  func.func @transform_7(%arg0: i32) -> (i32, i32) {
    %c0_i32 = arith.constant 0 : i32
    %c0_i32_0 = arith.constant 0 : i32
    %c0_i32_1 = arith.constant 0 : i32
    return %c0_i32, %c0_i32_0 : i32, i32
  }
  func.func @transform_8(%arg0: i32) -> (i32, i32, i32) {
    %c0_i32 = arith.constant 0 : i32
    %c0_i32_0 = arith.constant 0 : i32
    %c0_i32_1 = arith.constant 0 : i32
    return %c0_i32, %arg0, %c0_i32_0 : i32, i32, i32
  }
  func.func @transform_9(%arg0: i32) -> (i32, i32) {
    %c0_i32 = arith.constant 0 : i32
    %c0_i32_0 = arith.constant 0 : i32
    return %c0_i32, %arg0 : i32, i32
  }
  func.func @transform_10(%arg0: i32) -> (i32, i32) {
    %c0_i32 = arith.constant 0 : i32
    %c0_i32_0 = arith.constant 0 : i32
    return %c0_i32, %arg0 : i32, i32
  }
  func.func @transform_11(%arg0: i32) -> (i32, i32) {
    %c0_i32 = arith.constant 0 : i32
    %c0_i32_0 = arith.constant 0 : i32
    return %c0_i32, %arg0 : i32, i32
  }
  func.func @transform_12(%arg0: i32) -> (i32, i32) {
    %c0_i32 = arith.constant 0 : i32
    %c0_i32_0 = arith.constant 0 : i32
    return %arg0, %c0_i32 : i32, i32
  }
}

</mosaic_0001>

<bundles_post_ra>
// kernel: tpu_custom_call.1
= control target key start
LH: loop header
LB: loop body
LE: loop exit
PB: predicated region body
PF: predicated region fallthrough
CT: control target
= control target key end

     0   :  { %18 = vsyncpa [#allocation3], 0  ;;  %s4648_s0 = inlined_call_operand.hbm [shape: f32[8,13], index: 0, kind: input, shape index: {}]   ;;  %s4649_s1 = inlined_call_operand.hbm [shape: f32[13,128], index: 1, kind: input, shape index: {}]   ;;  %s4650_s2 = inlined_call_operand.vmem [shape: f32[1,128], index: 2, kind: input, shape index: {}]   ;;  %s4651_s3 = inlined_call_operand.hbm [shape: bf16[128,512], index: 3, kind: input, shape index: {}]   ;;  %s4652_s4 = inlined_call_operand.hbm [shape: bf16[128,512], index: 4, kind: input, shape index: {}]   ;;  %s4653_s5 = inlined_call_operand.vmem [shape: f32[1,512], index: 5, kind: input, shape index: {}]   ;;  %s4654_s6 = inlined_call_operand.hbm [shape: bf16[128,128], index: 6, kind: input, shape index: {}]   ;;  %s4655_s7 = inlined_call_operand.vmem [shape: f32[1,128], index: 7, kind: input, shape index: {}]   ;;  %s4656_s8 = inlined_call_operand.hbm [shape: f32[6,8,128], index: 8, kind: input, shape index: {}]   ;;  %s4657_s9 = inlined_call_operand.hbm [shape: s32[7,8], index: 9, kind: output, shape index: {0}]   ;;  %s4658_s10 = inlined_call_operand.hbm [shape: s32[1,8], index: 10, kind: output, shape index: {1}]   ;;  %s4659_s11 = inlined_call_operand.hbm [shape: f32[1,8], index: 11, kind: output, shape index: {2}]   ;;  %s4660_s12 = inlined_call_operand.hbm [shape: f32[8,128], index: 12, kind: output, shape index: {3}]  }
   0x1   :  { %19 = vsyncpa [#allocation6], 0 }
   0x2   :  { %20 = vsyncpa [#allocation9], 0 }
   0x3   :  { %21 = vsyncpa [#allocation12], 0 }
   0x4   :  { %22 = vsyncpa [#allocation4], 0 }
   0x5   :  { %23 = vsyncpa [#allocation15], 0 }
   0x6   :  { %24 = vsyncpa [#allocation18], 0  ;;  %s3353_s21 = smov [#allocation5]   ;;  %s3119_s25 = scalar_lea.hbm %s4649_s1, 256 }
   0x7   :  { %s40_s22 = sshll.u32 %s3353_s21, 4  ;;  %p3120_p0 = scmp.ne.s32.totalorder %s4649_s1, %s3119_s25  ;;  %s41_s22 = int_to_ptr.vmem [resolvable:$true] %s40_s22 }
   0x8   :  { %p3123_p1 = scmp.lt.u32.totalorder %s3119_s25, %s4649_s1 }
   0xa   :  { %p3125_p2 = pnand %p3123_p1, %p3120_p0 }
   0xc   :  { %3128 = shalt.err (!%p3125_p2)
}
   0xd   :  { %s3129_s30 = scalar_lea.vmem %s41_s22, 256  ;;  %p3134_p4 = scmp.lt.s32.totalorder %s41_s22, %s41_s22 }
   0xe   :  { %p3130_p3 = scmp.ne.s32.totalorder %s41_s22, %s3129_s30  ;;  %p3135_p5 = scmp.lt.s32.totalorder %s3129_s30, %s3129_s30 }
  0x10   :  { %p3136_p6 = por %p3135_p5, %p3134_p4 }
  0x12   :  { %p3137_p7 = pnand %p3136_p6, %p3130_p3 }
  0x14   :  { %3140 = shalt.err (!%p3137_p7)
}
  0x15   :  { %s3354_s13 = smov 128   ;;  %s3355_s14 = smov 8  }
  0x16   :  { %46 = dma.hbm_to_vmem [thread:$0]  %s4649_s1, 256, %s41_s22, [#allocation6], %s3354_s13, %s3354_s13, %s3355_s14  }
  0x17   :  { %s3356_s17 = smov [#allocation8]   ;;  %s3357_s19 = smov [#allocation2]  }
  0x18   :  { %s66_s18 = sshll.u32 %s3356_s17, 4  ;;  %s31_s20 = sshll.u32 %s3357_s19, 4  ;;  %s67_s18 = int_to_ptr.vmem [resolvable:$true] %s66_s18  ;;  %s32_s20 = int_to_ptr.vmem [resolvable:$true] %s31_s20 }
  0x19   :  { %s3141_s24 = scalar_lea.hbm %s4652_s4, 4096 }
  0x1a   :  { %p3142_p8 = scmp.ne.s32.totalorder %s4652_s4, %s3141_s24  ;;  %p3145_p9 = scmp.lt.u32.totalorder %s3141_s24, %s4652_s4 }
  0x1c   :  { %p3147_p10 = pnand %p3145_p9, %p3142_p8 }
  0x1e   :  { %3150 = shalt.err (!%p3147_p10)
}
  0x1f   :  { %s3151_s1 = scalar_lea.vmem %s67_s18, 4096  ;;  %p3156_p12 = scmp.lt.s32.totalorder %s67_s18, %s67_s18 }
  0x20   :  { %p3152_p11 = scmp.ne.s32.totalorder %s67_s18, %s3151_s1  ;;  %p3157_p13 = scmp.lt.s32.totalorder %s3151_s1, %s3151_s1 }
  0x22   :  { %p3158_p0 = por %p3157_p13, %p3156_p12 }
  0x24   :  { %p3159_p1 = pnand %p3158_p0, %p3152_p11 }
  0x26   :  { %3162 = shalt.err (!%p3159_p1)
}
  0x27   :  { %s3358_s22 = smov 256   ;;  %s3359_s29 = smov 16  }
  0x28   :  { %72 = dma.hbm_to_vmem [thread:$0]  %s4652_s4, 4096, %s67_s18, [#allocation9], %s3358_s22, %s3358_s22, %s3359_s29  }
  0x29   :  { %s3163_s19 = scalar_lea.hbm %s4648_s0, 128 }
  0x2a   :  { %p3164_p2 = scmp.ne.s32.totalorder %s4648_s0, %s3163_s19  ;;  %p3167_p3 = scmp.lt.u32.totalorder %s3163_s19, %s4648_s0 }
  0x2c   :  { %p3169_p4 = pnand %p3167_p3, %p3164_p2 }
  0x2e   :  { %3172 = shalt.err (!%p3169_p4)
}
  0x2f   :  { %s3173_s26 = scalar_lea.vmem %s32_s20, 128  ;;  %p3178_p6 = scmp.lt.s32.totalorder %s32_s20, %s32_s20 }
  0x30   :  { %p3174_p5 = scmp.ne.s32.totalorder %s32_s20, %s3173_s26  ;;  %p3179_p7 = scmp.lt.s32.totalorder %s3173_s26, %s3173_s26 }
  0x32   :  { %p3180_p8 = por %p3179_p7, %p3178_p6 }
  0x34   :  { %p3181_p9 = pnand %p3180_p8, %p3174_p5 }
  0x36   :  { %3184 = shalt.err (!%p3181_p9)
}
  0x37   :  { %34 = dma.hbm_to_vmem [thread:$0]  %s4648_s0, 128, %s32_s20, [#allocation3]  }
  0x38   :  { %s3360_s27 = smov [#allocation7]   ;;  %s3361_s1 = smov [#allocation10]  }
  0x39   :  { %s54_s28 = sshll.u32 %s3360_s27, 4  ;;  %s80_s30 = sshll.u32 %s3361_s1, 4  ;;  %s55_s28 = int_to_ptr.vmem [resolvable:$true] %s54_s28  ;;  %s81_s30 = int_to_ptr.vmem [resolvable:$true] %s80_s30 }
  0x3a   :  { %s3185_s17 = scalar_lea.hbm %s4651_s3, 4096 }
  0x3b   :  { %p3186_p10 = scmp.ne.s32.totalorder %s4651_s3, %s3185_s17  ;;  %p3189_p11 = scmp.lt.u32.totalorder %s3185_s17, %s4651_s3 }
  0x3d   :  { %p3191_p12 = pnand %p3189_p11, %p3186_p10 }
  0x3f   :  { %3194 = shalt.err (!%p3191_p12)
}
  0x40   :  { %s3195_s0 = scalar_lea.vmem %s55_s28, 4096  ;;  %p3200_p0 = scmp.lt.s32.totalorder %s55_s28, %s55_s28 }
  0x41   :  { %p3196_p13 = scmp.ne.s32.totalorder %s55_s28, %s3195_s0  ;;  %p3201_p1 = scmp.lt.s32.totalorder %s3195_s0, %s3195_s0 }
  0x43   :  { %p3202_p2 = por %p3201_p1, %p3200_p0 }
  0x45   :  { %p3203_p3 = pnand %p3202_p2, %p3196_p13 }
  0x47   :  { %3206 = shalt.err (!%p3203_p3)
}
  0x48   :  { %60 = dma.hbm_to_vmem [thread:$0]  %s4651_s3, 4096, %s55_s28, [#allocation6], %s3358_s22, %s3358_s22, %s3359_s29  }
  0x49   :  { %s3207_s18 = scalar_lea.hbm %s4654_s6, 1024 }
  0x4a   :  { %p3208_p4 = scmp.ne.s32.totalorder %s4654_s6, %s3207_s18  ;;  %p3211_p5 = scmp.lt.u32.totalorder %s3207_s18, %s4654_s6 }
  0x4c   :  { %p3213_p6 = pnand %p3211_p5, %p3208_p4 }
  0x4e   :  { %3216 = shalt.err (!%p3213_p6)
}
  0x4f   :  { %s3217_s17 = scalar_lea.vmem %s81_s30, 1024  ;;  %p3222_p8 = scmp.lt.s32.totalorder %s81_s30, %s81_s30 }
  0x50   :  { %p3218_p7 = scmp.ne.s32.totalorder %s81_s30, %s3217_s17  ;;  %p3223_p9 = scmp.lt.s32.totalorder %s3217_s17, %s3217_s17 }
  0x52   :  { %p3224_p10 = por %p3223_p9, %p3222_p8 }
  0x54   :  { %p3225_p11 = pnand %p3224_p10, %p3218_p7 }
  0x56   :  { %3228 = shalt.err (!%p3225_p11)
}
  0x57   :  { %s3362_s3 = smov 64   ;;  %s3363_s22 = smov 4  }
  0x58   :  { %86 = dma.hbm_to_vmem [thread:$0]  %s4654_s6, 1024, %s81_s30, [#allocation9], %s3362_s3, %s3362_s3, %s3363_s22  }
  0x59   :  { %s3364_s19 = smov [#allocation11]   ;;  %s3229_s0 = scalar_lea.hbm %s4656_s8, 768 }
  0x5a   :  { %s94_s21 = sshll.u32 %s3364_s19, 4  ;;  %p3230_p12 = scmp.ne.s32.totalorder %s4656_s8, %s3229_s0  ;;  %s95_s21 = int_to_ptr.vmem [resolvable:$true] %s94_s21 }
  0x5b   :  { %p3233_p13 = scmp.lt.u32.totalorder %s3229_s0, %s4656_s8 }
  0x5d   :  { %p3235_p0 = pnand %p3233_p13, %p3230_p12 }
  0x5f   :  { %3238 = shalt.err (!%p3235_p0)
}
  0x60   :  { %s3239_s18 = scalar_lea.vmem %s95_s21, 768  ;;  %p3244_p2 = scmp.lt.s32.totalorder %s95_s21, %s95_s21 }
  0x61   :  { %p3240_p1 = scmp.ne.s32.totalorder %s95_s21, %s3239_s18  ;;  %p3245_p3 = scmp.lt.s32.totalorder %s3239_s18, %s3239_s18 }
  0x63   :  { %p3246_p4 = por %p3245_p3, %p3244_p2 }
  0x65   :  { %p3247_p5 = pnand %p3246_p4, %p3240_p1 }
  0x67   :  { %3250 = shalt.err (!%p3247_p5)
}
  0x68   :  { %100 = dma.hbm_to_vmem [thread:$0]  %s4656_s8, 768, %s95_s21, [#allocation12], %s3354_s13, %s3354_s13, %s3355_s14  }
  0x69   :  { %3339 = dma.done.wait [#allocation3], 128  }
  0x6a   :  { %3340 = vsyncadd [#allocation3], 4294967168 }
  0x6b   :  { %3341 = dma.done.wait [#allocation6], 4352  }
  0x6c   :  { %3342 = vsyncadd [#allocation6], 4294962944 }
  0x6d   :  { %3343 = dma.done.wait [#allocation9], 5120  }
  0x6e   :  { %3344 = vsyncadd [#allocation9], 4294962176 }
  0x6f   :  { %3345 = dma.done.wait [#allocation12], 768  }
  0x70   :  { %3346 = vsyncadd [#allocation12], 4294966528  ;;  %v3365_v0 = vmov 0.0|0.0   ;;  %vm3366_vm0 = vmmov 0   ;;  %v4666_v1 = vmov 0.0   ;;  %v4664_v2 = vmov 0  }
  0x71   :  { %2783 = vmatprep.subr.bf16.mxu0 %v3365_v0  ;;  %2660 = vmatprep.mubr.msk.f32.mxu0 %vm3366_vm0, %v4666_v1  ;;  %vm134_vm1 = vcmask 1044480   ;;  %v121_v3 = vld [vmem:[#allocation5] sm:$0xff]  ;;  %v122_v4 = vld [vmem:[#allocation5 + $0x8] sm:$0x1f]  ;;  %vm3369_vm2 = vmmov 1   ;;  %v120_v6 = vld [vmem:[#allocation2] sm:$0xff]  ;;  %v4663_v31 = vlaneseq }
  0x72   :  { %516 = vmatprep.mubr.bf16.mxu1 %v4664_v2  ;;  %vm2785_vm3 = vmpackc.low %vm134_vm1, %vm3369_vm2  ;;  %v2784_v5 = vpack.c.bf16 %v122_v4, %v121_v3  ;;  %v3529_v7 = vld [vmem:[#allocation8 + $0x4] ss:$16 sps:$4 sm:$0xff]   ;;  %v3531_v8 = vld [vmem:[#allocation8] ss:$16 sps:$4 sm:$0xff]   ;;  %vm130_vm4 = vcmask 105472   ;;  %vm2389_vm14 = vcmask 1040384  }
  0x73   :  { %4805 = vst [vmem:[#allocation26_spill] sm:$0xff] %v3529_v7  ;;  %4806 = vst [vmem:[#allocation27_spill] sm:$0xff] %v3531_v8  ;;  %484 = vmatprep.subr.bf16.mxu1 %v3529_v7  ;;  %v3534_v9 = vld [vmem:[#allocation8 + $0xc] ss:$16 sps:$4 sm:$0xff]   ;;  %v3536_v10 = vld [vmem:[#allocation8 + $0x8] ss:$16 sps:$4 sm:$0xff]  }
  0x74   :  { %2786 = vmatpush3.bf16.msk.msra.mxu0 %vm2785_vm3, %v2784_v5  ;;  %4807 = vst [vmem:[#allocation28_spill] sm:$0xff] %v3534_v9  ;;  %485 = vmatpush1.bf16.msra.mxu1 %v3531_v8  ;;  %v3539_v11 = vld [vmem:[#allocation8 + $0x24] ss:$16 sps:$4 sm:$0xff]   ;;  %v3541_v12 = vld [vmem:[#allocation8 + $0x20] ss:$16 sps:$4 sm:$0xff]   ;;  %v3611_v36 = vand.u32 127, %v4663_v31 }
  0x75   :  { %4808 = vst [vmem:[#allocation29_spill] sm:$0xff] %v3539_v11  ;;  %4809 = vst [vmem:[#allocation30_spill] sm:$0xff] %v3541_v12  ;;  %525 = vmatprep.subr.bf16.mxu0 %v3534_v9  ;;  %v3544_v13 = vld [vmem:[#allocation8 + $0x2c] ss:$16 sps:$4 sm:$0xff]   ;;  %486 = vmatprep.subr.bf16.mxu1 %v3539_v11  ;;  %v3548_v14 = vld [vmem:[#allocation8 + $0x28] ss:$16 sps:$4 sm:$0xff]  }
  0x76   :  { %v3550_v15 = vld [vmem:[#allocation8 + $0x44] ss:$16 sps:$4 sm:$0xff]   ;;  %v3555_v16 = vld [vmem:[#allocation8 + $0x40] ss:$16 sps:$4 sm:$0xff]   ;;  %v3557_v17 = vld [vmem:[#allocation8 + $0x4c] ss:$16 sps:$4 sm:$0xff]  }
  0x77   :  { %2661 = vmatmul.mubr.msk.f32.vlgmr.msra.gmra.mrb[0].mxu0 %vm130_vm4, %v120_v6  ;;  %4810 = vst [vmem:[#allocation31_spill] sm:$0xff] %v3550_v15  ;;  %4811 = vst [vmem:[#allocation32_spill] sm:$0xff] %v3555_v16  ;;  %v3560_v18 = vld [vmem:[#allocation8 + $0x64] ss:$16 sps:$4 sm:$0xff]   ;;  %v3563_v19 = vld [vmem:[#allocation8 + $0x48] ss:$16 sps:$4 sm:$0xff]  }
  0x78   :  { %526 = vmatpush1.bf16.msra.mxu0 %v3536_v10  ;;  %557 = vmatprep.mubr.bf16.mxu0 %v4664_v2  ;;  %4812 = vst [vmem:[#allocation33_spill] sm:$0xff] %v3560_v18  ;;  %v3567_v20 = vld [vmem:[#allocation8 + $0x60] ss:$16 sps:$4 sm:$0xff]   ;;  %v3569_v21 = vld [vmem:[#allocation8 + $0x6c] ss:$16 sps:$4 sm:$0xff]   ;;  %vm319_vm5 = vcmp.eq.s32.totalorder %v3611_v36, 0 }
  0x79   :  { %487 = vmatpush1.bf16.msra.mxu1 %v3541_v12  ;;  %527 = vmatprep.subr.bf16.mxu0 %v3544_v13  ;;  %4813 = vst [vmem:[#allocation34_spill] sm:$0xff] %v3567_v20  ;;  %v3572_v22 = vld [vmem:[#allocation8 + $0x84] ss:$16 sps:$4 sm:$0xff]   ;;  %v3575_v23 = vld [vmem:[#allocation8 + $0x68] ss:$16 sps:$4 sm:$0xff]   ;;  %vm3631_vm6 = vmpackc.low %vm319_vm5, %vm319_vm5  ;;  %vm2391_vm15 = vcmask 1041408  }
  0x7a   :  { %488 = vmatprep.subr.bf16.mxu1 %v3550_v15  ;;  %4814 = vst [vmem:[#allocation35_spill] sm:$0xff] %v3572_v22  ;;  %v3579_v24 = vld [vmem:[#allocation8 + $0x80] ss:$16 sps:$4 sm:$0xff]   ;;  %v3581_v25 = vld [vmem:[#allocation8 + $0x8c] ss:$16 sps:$4 sm:$0xff]  }
  0x7b   :  { %4815 = vst [vmem:[#allocation36_spill] sm:$0xff] %v3579_v24  ;;  %v3584_v26 = vld [vmem:[#allocation8 + $0xa4] ss:$16 sps:$4 sm:$0xff]   ;;  %v3587_v27 = vld [vmem:[#allocation8 + $0x88] ss:$16 sps:$4 sm:$0xff]  }
  0x7c   :  { %528 = vmatpush1.bf16.msra.mxu0 %v3548_v14  ;;  %4816 = vst [vmem:[#allocation37_spill] sm:$0xff] %v3584_v26  ;;  %v3591_v28 = vld [vmem:[#allocation8 + $0xa0] ss:$16 sps:$4 sm:$0xff]   ;;  %v3593_v29 = vld [vmem:[#allocation8 + $0xac] ss:$16 sps:$4 sm:$0xff]  }
  0x7d   :  { %489 = vmatpush1.bf16.msra.mxu1 %v3555_v16  ;;  %529 = vmatprep.subr.bf16.mxu0 %v3557_v17  ;;  %4817 = vst [vmem:[#allocation38_spill] sm:$0xff] %v3591_v28  ;;  %v3596_v30 = vld [vmem:[#allocation8 + $0xc4] ss:$16 sps:$4 sm:$0xff]   ;;  %v3599_v32 = vld [vmem:[#allocation8 + $0xa8] ss:$16 sps:$4 sm:$0xff]  }
  0x7e   :  { %490 = vmatprep.subr.bf16.mxu1 %v3560_v18  ;;  %4818 = vst [vmem:[#allocation39_spill] sm:$0xff] %v3596_v30  ;;  %v3603_v33 = vld [vmem:[#allocation8 + $0xc0] ss:$16 sps:$4 sm:$0xff]   ;;  %v3605_v34 = vld [vmem:[#allocation8 + $0xcc] ss:$16 sps:$4 sm:$0xff]  }
  0x7f   :  { %4819 = vst [vmem:[#allocation40_spill] sm:$0xff] %v3603_v33  ;;  %v3608_v35 = vld [vmem:[#allocation8 + $0xe4] ss:$16 sps:$4 sm:$0xff]   ;;  %v3614_v37 = vld [vmem:[#allocation8 + $0xc8] ss:$16 sps:$4 sm:$0xff]  }
  0x80   :  { %530 = vmatpush1.bf16.msra.mxu0 %v3563_v19  ;;  %4820 = vst [vmem:[#allocation41_spill] sm:$0xff] %v3608_v35  ;;  %v3616_v38 = vld [vmem:[#allocation8 + $0xe0] ss:$16 sps:$4 sm:$0xff]   ;;  %v3620_v39 = vld [vmem:[#allocation8 + $0xec] ss:$16 sps:$4 sm:$0xff]  }
  0x81   :  { %491 = vmatpush1.bf16.msra.mxu1 %v3567_v20  ;;  %531 = vmatprep.subr.bf16.mxu0 %v3569_v21  ;;  %4821 = vst [vmem:[#allocation42_spill] sm:$0xff] %v3616_v38  ;;  %v3624_v40 = vld [vmem:[#allocation7 + $0x4] ss:$16 sps:$4 sm:$0xff]   ;;  %v3627_v41 = vld [vmem:[#allocation8 + $0xe8] ss:$16 sps:$4 sm:$0xff]  }
  0x82   :  { %492 = vmatprep.subr.bf16.mxu1 %v3572_v22  ;;  %4822 = vst [vmem:[#allocation43_spill] sm:$0xff] %v3624_v40  ;;  %v3635_v43 = vld [vmem:[#allocation7 + $0xc] ss:$16 sps:$4 sm:$0xff]   ;;  %v3637_v44 = vld [vmem:[#allocation7] ss:$16 sps:$4 sm:$0xff]  }
  0x83   :  { %v3640_v45 = vld [vmem:[#allocation7 + $0x24] ss:$16 sps:$4 sm:$0xff]   ;;  %v4661_v46 = vmov 1.0|1.0   ;;  %v3646_v47 = vld [vmem:[#allocation7 + $0x8] ss:$16 sps:$4 sm:$0xff]  }
  0x84   :  { %532 = vmatpush1.bf16.msra.mxu0 %v3575_v23  ;;  %v3648_v48 = vld [vmem:[#allocation7 + $0x2c] ss:$16 sps:$4 sm:$0xff]   ;;  %v3652_v49 = vld [vmem:[#allocation7 + $0x20] ss:$16 sps:$4 sm:$0xff]   ;;  %v3655_v50 = vld [vmem:[#allocation7 + $0x44] ss:$16 sps:$4 sm:$0xff]  }
  0x85   :  { %493 = vmatpush1.bf16.msra.mxu1 %v3579_v24  ;;  %533 = vmatprep.subr.bf16.mxu0 %v3581_v25  ;;  %v3662_v51 = vld [vmem:[#allocation7 + $0x28] ss:$16 sps:$4 sm:$0xff]   ;;  %v3667_v52 = vld [vmem:[#allocation7 + $0x4c] ss:$16 sps:$4 sm:$0xff]   ;;  %v3669_v53 = vld [vmem:[#allocation7 + $0x40] ss:$16 sps:$4 sm:$0xff]  }
  0x86   :  { %494 = vmatprep.subr.bf16.mxu1 %v3584_v26  ;;  %v3672_v54 = vld [vmem:[#allocation7 + $0x48] ss:$16 sps:$4 sm:$0xff]   ;;  %v3674_v55 = vld [vmem:[#allocation7 + $0x64] ss:$16 sps:$4 sm:$0xff]   ;;  %v3676_v56 = vld [vmem:[#allocation7 + $0x6c] ss:$16 sps:$4 sm:$0xff]  }
  0x87   :  { %v3678_v57 = vld [vmem:[#allocation7 + $0x60] ss:$16 sps:$4 sm:$0xff]   ;;  %v3681_v58 = vld [vmem:[#allocation7 + $0x84] ss:$16 sps:$4 sm:$0xff]   ;;  %v3686_v59 = vld [vmem:[#allocation7 + $0x68] ss:$16 sps:$4 sm:$0xff]  }
  0x88   :  { %534 = vmatpush1.bf16.msra.mxu0 %v3587_v27  ;;  %v3691_v60 = vld [vmem:[#allocation7 + $0x8c] ss:$16 sps:$4 sm:$0xff]   ;;  %v3693_v61 = vld [vmem:[#allocation7 + $0x80] ss:$16 sps:$4 sm:$0xff]   ;;  %v3696_v62 = vld [vmem:[#allocation7 + $0xa4] ss:$16 sps:$4 sm:$0xff]  }
  0x89   :  { %495 = vmatpush1.bf16.msra.mxu1 %v3591_v28  ;;  %535 = vmatprep.subr.bf16.mxu0 %v3593_v29  ;;  %4825 = vst [vmem:[#allocation44_spill] sm:$0xff] %v3691_v60  ;;  %4826 = vst [vmem:[#allocation45_spill] sm:$0xff] %v3693_v61  ;;  %v3699_v63 = vld [vmem:[#allocation7 + $0x88] ss:$16 sps:$4 sm:$0xff]   ;;  %v3703_v0 = vld [vmem:[#allocation7 + $0xac] ss:$16 sps:$4 sm:$0xff]  }
  0x8a   :  { %496 = vmatprep.subr.bf16.mxu1 %v3596_v30  ;;  %4827 = vst [vmem:[#allocation46_spill] sm:$0xff] %v3696_v62  ;;  %4828 = vst [vmem:[#allocation47_spill] sm:$0xff] %v3699_v63  ;;  %v3705_v3 = vld [vmem:[#allocation7 + $0xa0] ss:$16 sps:$4 sm:$0xff]   ;;  %v3708_v4 = vld [vmem:[#allocation7 + $0xc4] ss:$16 sps:$4 sm:$0xff]  }
  0x8b   :  { %4829 = vst [vmem:[#allocation48_spill] sm:$0xff] %v3703_v0  ;;  %4830 = vst [vmem:[#allocation49_spill] sm:$0xff] %v3705_v3  ;;  %v3711_v5 = vld [vmem:[#allocation7 + $0xa8] ss:$16 sps:$4 sm:$0xff]   ;;  %v3715_v6 = vld [vmem:[#allocation7 + $0xcc] ss:$16 sps:$4 sm:$0xff]  }
  0x8c   :  { %536 = vmatpush1.bf16.msra.mxu0 %v3599_v32  ;;  %4831 = vst [vmem:[#allocation50_spill] sm:$0xff] %v3708_v4  ;;  %4832 = vst [vmem:[#allocation51_spill] sm:$0xff] %v3711_v5  ;;  %v3717_v42 = vld [vmem:[#allocation7 + $0xc0] ss:$16 sps:$4 sm:$0xff]   ;;  %v3726_v31 = vld [vmem:[#allocation7 + $0xe4] ss:$16 sps:$4 sm:$0xff]  }
  0x8d   :  { %497 = vmatpush1.bf16.msra.mxu1 %v3603_v33  ;;  %537 = vmatprep.subr.bf16.mxu0 %v3605_v34  ;;  %4833 = vst [vmem:[#allocation52_spill] sm:$0xff] %v3715_v6  ;;  %4834 = vst [vmem:[#allocation53_spill] sm:$0xff] %v3717_v42  ;;  %v3730_v1 = vld [vmem:[#allocation7 + $0xe0] ss:$16 sps:$4 sm:$0xff]  }
  0x8e   :  { %498 = vmatprep.subr.bf16.mxu1 %v3608_v35  ;;  %4836 = vst [vmem:[#allocation55_spill] sm:$0xff] %v3726_v31  ;;  %4838 = vst [vmem:[#allocation57_spill] sm:$0xff] %v3730_v1 }
  0x90   :  { %538 = vmatpush1.bf16.msra.mxu0 %v3614_v37 }
  0x91   :  { %499 = vmatpush1.bf16.msra.mxu1 %v3616_v38  ;;  %539 = vmatprep.subr.bf16.mxu0 %v3620_v39 }
  0x92   :  { %726 = vmatprep.subr.bf16.mxu1 %v3624_v40 }
  0x94   :  { %540 = vmatpush1.bf16.msra.mxu0 %v3627_v41  ;;  %2513 = vmatmul.mubr.msk.bf16.vlgmr.msra.gmra.mrb[0].mxu1 %vm3631_vm6, %v4661_v46 }
  0x95   :  { %767 = vmatprep.subr.bf16.mxu0 %v3635_v43  ;;  %727 = vmatpush1.bf16.msra.mxu1 %v3637_v44 }
  0x96   :  { %728 = vmatprep.subr.bf16.mxu1 %v3640_v45  ;;  %758 = vmatprep.mubr.bf16.mxu1 %v4664_v2 }
  0x97   :  { %2515 = vmatmul.mubr.msk.bf16.vlgmr.msra.gmra.mrb[4].mxu0 %vm3631_vm6, %v4661_v46  ;;  %v3721_v46 = vld [vmem:[#allocation7 + $0xc8] ss:$16 sps:$4 sm:$0xff]  }
  0x98   :  { %768 = vmatpush1.bf16.msra.mxu0 %v3646_v47  ;;  %799 = vmatprep.mubr.bf16.mxu0 %v4664_v2  ;;  %4835 = vst [vmem:[#allocation54_spill] sm:$0xff] %v3721_v46  ;;  %v3728_v2 = vld [vmem:[#allocation7 + $0xec] ss:$16 sps:$4 sm:$0xff]  }
  0x99   :  { %769 = vmatprep.subr.bf16.mxu0 %v3648_v48  ;;  %729 = vmatpush1.bf16.msra.mxu1 %v3652_v49  ;;  %4837 = vst [vmem:[#allocation56_spill] sm:$0xff] %v3728_v2 }
  0x9a   :  { %730 = vmatprep.subr.bf16.mxu1 %v3655_v50 }
  0x9c   :  { %770 = vmatpush1.bf16.msra.mxu0 %v3662_v51 }
  0x9d   :  { %771 = vmatprep.subr.bf16.mxu0 %v3667_v52  ;;  %731 = vmatpush1.bf16.msra.mxu1 %v3669_v53 }
  0x9e   :  { %732 = vmatprep.subr.bf16.mxu1 %v3674_v55 }
  0xa0   :  { %772 = vmatpush1.bf16.msra.mxu0 %v3672_v54 }
  0xa1   :  { %773 = vmatprep.subr.bf16.mxu0 %v3676_v56  ;;  %733 = vmatpush1.bf16.msra.mxu1 %v3678_v57 }
  0xa2   :  { %734 = vmatprep.subr.bf16.mxu1 %v3681_v58 }
  0xa4   :  { %774 = vmatpush1.bf16.msra.mxu0 %v3686_v59 }
  0xa5   :  { %775 = vmatprep.subr.bf16.mxu0 %v3691_v60  ;;  %735 = vmatpush1.bf16.msra.mxu1 %v3693_v61 }
  0xa6   :  { %736 = vmatprep.subr.bf16.mxu1 %v3696_v62 }
  0xa8   :  { %776 = vmatpush1.bf16.msra.mxu0 %v3699_v63 }
  0xa9   :  { %777 = vmatprep.subr.bf16.mxu0 %v3703_v0  ;;  %737 = vmatpush1.bf16.msra.mxu1 %v3705_v3  ;;  %v3732_v3 = vld [vmem:[#allocation7 + $0xe8] ss:$16 sps:$4 sm:$0xff]  }
  0xaa   :  { %738 = vmatprep.subr.bf16.mxu1 %v3708_v4  ;;  %4839 = vst [vmem:[#allocation58_spill] sm:$0xff] %v3732_v3 }
  0xac   :  { %778 = vmatpush1.bf16.msra.mxu0 %v3711_v5 }
  0xad   :  { %779 = vmatprep.subr.bf16.mxu0 %v3715_v6  ;;  %739 = vmatpush1.bf16.msra.mxu1 %v3717_v42  ;;  %v4840_v6 = vmov 0.0  }
  0xae   :  { %740 = vmatprep.subr.bf16.mxu1 %v3726_v31 }
  0xb0   :  { %780 = vmatpush1.bf16.msra.mxu0 %v3721_v46  ;;  %v2475_v46 = vld [vmem:[%s4650_s2] ss:$0 sm:$0xff] }
  0xb1   :  { %781 = vmatprep.subr.bf16.mxu0 %v3728_v2  ;;  %741 = vmatpush1.bf16.msra.mxu1 %v3730_v1 }
  0xb2   :  { %2663 = vmatprep.subr.bf16.mxu1 %v4840_v6 }
  0xb4   :  { %782 = vmatpush1.bf16.msra.mxu0 %v3732_v3  ;;  %v4841_v3 = vmov 0  }
  0xb5   :  { %969 = vmatprep.subr.bf16.mxu0 %v3529_v7 }
 0x14a   :  { %v204_v42 = vpop.f32.mrb[0].mxu0 }
 0x14b   :  { %v205_v4 = vadd.f32 %v2475_v46, %v204_v42  ;;  %v2662_v5 = vpop.f32.mrb[1].mxu0 }
 0x14d   :  { %v323_v0 = vpack.c.bf16 %v205_v4, %v205_v4 }
 0x14f   :  { %759 = vmatmul.mubr.bf16.vlgmr.msra.gmra.mrb[4].mxu1 %v323_v0  ;;  %800 = vmatmul.mubr.bf16.vlgmr.msra.gmra.mrb[8].mxu0 %v323_v0 }
 0x150   :  { %2679 = vmatprep.mubr.msk.bf16.mxu1 %vm3366_vm0, %v4840_v6  ;;  %970 = vmatpush1.bf16.msra.mxu0 %v3531_v8 }
 0x151   :  { %971 = vmatprep.subr.bf16.mxu0 %v3539_v11  ;;  %1001 = vmatprep.mubr.bf16.mxu0 %v4841_v3 }
 0x154   :  { %972 = vmatpush1.bf16.msra.mxu0 %v3541_v12 }
 0x155   :  { %973 = vmatprep.subr.bf16.mxu0 %v3550_v15 }
 0x158   :  { %974 = vmatpush1.bf16.msra.mxu0 %v3555_v16 }
 0x159   :  { %975 = vmatprep.subr.bf16.mxu0 %v3560_v18 }
 0x15c   :  { %976 = vmatpush1.bf16.msra.mxu0 %v3567_v20 }
 0x15d   :  { %977 = vmatprep.subr.bf16.mxu0 %v3572_v22 }
 0x160   :  { %978 = vmatpush1.bf16.msra.mxu0 %v3579_v24 }
 0x161   :  { %979 = vmatprep.subr.bf16.mxu0 %v3584_v26  ;;  %v3762_v26 = vld [vmem:[#allocation10] sm:$0xff]  }
 0x162   :  { %4842 = vst [vmem:[#allocation59_spill] sm:$0xff] %v3762_v26  ;;  %2664 = vmatpush3.bf16.msra.mxu1 %v3762_v26 }
 0x163   :  { %2665 = vmatprep.subr.bf16.mxu1 %v4840_v6 }
 0x164   :  { %980 = vmatpush1.bf16.msra.mxu0 %v3591_v28 }
 0x165   :  { %981 = vmatprep.subr.bf16.mxu0 %v3596_v30  ;;  %v3766_v30 = vld [vmem:[#allocation10 + $0x8] sm:$0xff]  }
 0x166   :  { %4843 = vst [vmem:[#allocation60_spill] sm:$0xff] %v3766_v30  ;;  %2666 = vmatpush3.bf16.msra.mxu1 %v3766_v30 }
 0x167   :  { %v518_v46 = vpop.f32.mrb[0].mxu1  ;;  %2667 = vmatprep.subr.bf16.mxu1 %v4840_v6 }
 0x168   :  { %v520_v0 = vpop.f32.mrb[1].mxu1  ;;  %982 = vmatpush1.bf16.msra.mxu0 %v3603_v33 }
 0x169   :  { %v522_v4 = vpop.f32.mrb[2].mxu1  ;;  %983 = vmatprep.subr.bf16.mxu0 %v3608_v35  ;;  %v4850_v35 = vlaneseq }
 0x16a   :  { %v523_v5 = vpop.f32.mrb[3].mxu1  ;;  %v559_v42 = vpop.f32.mrb[4].mxu0  ;;  %v3770_v4 = vld [vmem:[#allocation10 + $0x10] sm:$0xff]  }
 0x16b   :  { %v561_v20 = vpop.f32.mrb[5].mxu0  ;;  %4844 = vst [vmem:[#allocation61_spill] sm:$0xff] %v3770_v4  ;;  %2668 = vmatpush3.bf16.msra.mxu1 %v3770_v4  ;;  %v3781_v5 = vld [vmem:[#allocation10 + $0x28] sm:$0xff]   ;;  %v3795_v33 = vshrl.u32 %v4850_v35, 7 }
 0x16c   :  { %v563_v18 = vpop.f32.mrb[6].mxu0  ;;  %984 = vmatpush1.bf16.msra.mxu0 %v3616_v38  ;;  %2669 = vmatprep.subr.bf16.mxu1 %v4840_v6  ;;  %4847 = vst [vmem:[#allocation64_spill] sm:$0xff] %v3781_v5  ;;  %v3789_v38 = vld [vmem:[#allocation10 + $0x38] sm:$0xff]  }
 0x16d   :  { %v564_v24 = vpop.f32.mrb[7].mxu0  ;;  %1051 = vmatprep.subr.bf16.mxu0 %v3624_v40  ;;  %v3774_v18 = vld [vmem:[#allocation10 + $0x18] sm:$0xff]   ;;  %v3785_v40 = vld [vmem:[#allocation10 + $0x30] sm:$0xff]   ;;  %4849 = vst [vmem:[#allocation66_spill] sm:$0xff] %v3789_v38  ;;  %v292_v28 = vsub.s32 0, %v3795_v33  ;;  %v304_v12 = vsub.s32 3, %v3795_v33 }
 0x16e   :  { %4845 = vst [vmem:[#allocation62_spill] sm:$0xff] %v3774_v18  ;;  %v3778_v24 = vld [vmem:[#allocation10 + $0x20] sm:$0xff]   ;;  %4848 = vst [vmem:[#allocation65_spill] sm:$0xff] %v3785_v40 }
 0x16f   :  { %2670 = vmatpush3.bf16.msra.mxu1 %v3774_v18  ;;  %4846 = vst [vmem:[#allocation63_spill] sm:$0xff] %v3778_v24 }
 0x170   :  { %2671 = vmatprep.subr.bf16.mxu1 %v4840_v6 }
 0x173   :  { %2672 = vmatpush3.bf16.msra.mxu1 %v3778_v24  ;;  %v296_v24 = vsub.s32 1, %v3795_v33 }
 0x174   :  { %2673 = vmatprep.subr.bf16.mxu1 %v4840_v6 }
 0x177   :  { %2674 = vmatpush3.bf16.msra.mxu1 %v3781_v5  ;;  %v288_v5 = vld [vmem:[%s4653_s5] sm:$0xf] }
 0x178   :  { %2675 = vmatprep.subr.bf16.mxu1 %v4840_v6  ;;  %v3804_v16 = vrot.slane %v288_v5, %v296_v24  ;;  %v3809_v24 = vrot.slane %v288_v5, %v304_v12 }
 0x17b   :  { %2676 = vmatpush3.bf16.msra.mxu1 %v3785_v40  ;;  %v3802_v40 = vrot.slane %v288_v5, %v292_v28 }
 0x17c   :  { %2677 = vmatprep.subr.bf16.mxu1 %v4840_v6 }
 0x17f   :  { %2678 = vmatpush3.bf16.msra.mxu1 %v3789_v38 }
 0x180   :  { %1010 = vmatprep.subr.bf16.mxu1 %v3534_v9 }
 0x222   :  { %v760_v22 = vpop.f32.mrb[4].mxu1  ;;  %v801_v18 = vpop.f32.mrb[8].mxu0 }
 0x223   :  { %v761_v38 = vadd.f32 %v760_v22, %v518_v46  ;;  %v802_v4 = vadd.f32 %v801_v18, %v559_v42  ;;  %v762_v9 = vpop.f32.mrb[5].mxu1  ;;  %v803_v15 = vpop.f32.mrb[9].mxu0  ;;  %v300_v22 = vsub.s32 2, %v3795_v33 }
 0x224   :  { %v763_v35 = vadd.f32 %v762_v9, %v520_v0  ;;  %v804_v30 = vadd.f32 %v803_v15, %v561_v20  ;;  %v764_v11 = vpop.f32.mrb[6].mxu1  ;;  %v805_v8 = vpop.f32.mrb[10].mxu0 }
 0x225   :  { %v808_v26 = vadd.f32 %v761_v38, %v3802_v40  ;;  %v765_v7 = vpop.f32.mrb[7].mxu1  ;;  %v806_v6 = vpop.f32.mrb[11].mxu0  ;;  %v3813_v46 = vrot.slane %v288_v5, %v300_v22 }
 0x226   :  { %v809_v28 = vadd.f32 %v763_v35, %v3804_v16  ;;  %v811_v9 = vadd.f32 %v804_v30, %v3809_v24 }
 0x227   :  { %v2548_v1 = vmul.f32 -1.442695, %v808_v26  ;;  %v810_v8 = vadd.f32 %v802_v4, %v3813_v46 }
 0x228   :  { %v2549_v2 = vmul.f32 -1.442695, %v809_v28  ;;  %v2550_v11 = vmul.f32 -1.442695, %v811_v9  ;;  %v3842_v28 = vld [vmem:[%s4655_s7] ss:$0 sm:$0xff] }
 0x229   :  { %2914 = vpow2.f32 %v2548_v1  ;;  %v943_v9 = vld [vmem:[#allocation11] sm:$0xff] }
 0x22a   :  { %2916 = vpow2.f32 %v2549_v2 }
 0x22b   :  { %2918 = vpow2.f32 %v2550_v11 }
 0x22c   :  { %2920 = vtanh.f32 %v810_v8 }
 0x233   :  { %v2915_v15 = vpop.eup %2914 }
 0x234   :  { %v2917_v7 = vpop.eup %2916  ;;  %v815_v20 = vadd.f32 1.0, %v2915_v15 }
 0x235   :  { %v821_v26 = vadd.f32 1.0, %v2917_v7  ;;  %v2919_v12 = vpop.eup %2918 }
 0x236   :  { %2922 = vrcp.f32 %v815_v20  ;;  %v2921_v1 = vpop.eup %2920  ;;  %v828_v0 = vadd.f32 1.0, %v2919_v12 }
 0x237   :  { %2924 = vrcp.f32 %v821_v26 }
 0x238   :  { %2926 = vrcp.f32 %v828_v0 }
 0x240   :  { %v2923_v38 = vpop.eup %2922 }
 0x241   :  { %v2925_v6 = vpop.eup %2924  ;;  %v832_v2 = vmul.f32 %v2923_v38, %v2921_v1 }
 0x242   :  { %v831_v30 = vmul.f32 0.0, %v2925_v6  ;;  %v2927_v4 = vpop.eup %2926 }
 0x244   :  { %v3816_v42 = vadd.f32 %v832_v2, %v831_v30 }
 0x246   :  { %2928 = vtanh.f32 %v3816_v42 }
 0x250   :  { %v2929_v18 = vpop.eup %2928 }
 0x251   :  { %v835_v5 = vmul.f32 %v2929_v18, %v2927_v4 }
 0x253   :  { %v3819_v35 = vpack.c.bf16 %v835_v5, %v835_v5 }
 0x255   :  { %2680 = vmatmul.mubr.bf16.vlgmr.msra.gmra.mrb[8].mxu1 %v3819_v35 }
 0x256   :  { %1011 = vmatpush1.bf16.msra.mxu1 %v3536_v10  ;;  %1042 = vmatprep.mubr.bf16.mxu1 %v4841_v3 }
 0x257   :  { %1012 = vmatprep.subr.bf16.mxu1 %v3544_v13 }
 0x25a   :  { %1013 = vmatpush1.bf16.msra.mxu1 %v3548_v14 }
 0x25b   :  { %1014 = vmatprep.subr.bf16.mxu1 %v3557_v17 }
 0x25e   :  { %1015 = vmatpush1.bf16.msra.mxu1 %v3563_v19 }
 0x25f   :  { %1016 = vmatprep.subr.bf16.mxu1 %v3569_v21 }
 0x262   :  { %1017 = vmatpush1.bf16.msra.mxu1 %v3575_v23 }
 0x263   :  { %1018 = vmatprep.subr.bf16.mxu1 %v3581_v25 }
 0x266   :  { %1019 = vmatpush1.bf16.msra.mxu1 %v3587_v27 }
 0x267   :  { %1020 = vmatprep.subr.bf16.mxu1 %v3593_v29 }
 0x26a   :  { %1021 = vmatpush1.bf16.msra.mxu1 %v3599_v32 }
 0x26b   :  { %1022 = vmatprep.subr.bf16.mxu1 %v3605_v34 }
 0x26e   :  { %1023 = vmatpush1.bf16.msra.mxu1 %v3614_v37 }
 0x26f   :  { %1024 = vmatprep.subr.bf16.mxu1 %v3620_v39 }
 0x272   :  { %1025 = vmatpush1.bf16.msra.mxu1 %v3627_v41 }
 0x273   :  { %1092 = vmatprep.subr.bf16.mxu1 %v3635_v43 }
 0x328   :  { %v919_v22 = vpop.f32.mrb[8].mxu1 }
 0x329   :  { %v3845_v11 = vadd.f32 %v3842_v28, %v919_v22  ;;  %v2681_v8 = vpop.f32.mrb[9].mxu1 }
 0x32a   :  { %v922_v15 = vpop.f32.mrb[10].mxu1 }
 0x32b   :  { %4851 = vst [vmem:[#allocation67_spill] sm:$0xff] %v3845_v11  ;;  %v2682_v7 = vpop.f32.mrb[11].mxu1  ;;  %v944_v20 = vadd.f32 %v943_v9, %v3845_v11  ;;  %v4852_v9 = vmov 1.0|1.0   ;;  %v4853_v15 = vld [vmem:[#allocation48_spill] sm:$0xff] }
 0x32c   :  { %v4854_v7 = vld [vmem:[#allocation49_spill] sm:$0xff]  ;;  %v4868_v11 = vld [vmem:[#allocation60_spill] sm:$0xff] }
 0x32d   :  { %945 = vmax.xlane.f32.xlu0 %v944_v20 }
 0x3ba   :  { %v946_v26 = vpop.xlane.xlu0 %945 }
 0x3bb   :  { %vm947_vm7 = vcmp.eq.f32.partialorder %v944_v20, %v946_v26  ;;  %v4855_v20 = vld [vmem:[#allocation51_spill] sm:$0xff]  ;;  %v4856_v26 = vld [vmem:[#allocation50_spill] sm:$0xff] }
 0x3bc   :  { %v948_v12 = vsel %vm947_vm7, %v3611_v36, 128 }
 0x3bd   :  { %v950_v1 = vshra.s32 %v948_v12, 16  ;;  %v949_v6 = vand.u32 65535, %v948_v12  ;;  %v4857_v12 = vld [vmem:[#allocation52_spill] sm:$0xff] }
 0x3bf   :  { %v952_v38 = vcvt.s32.f32 %v950_v1  ;;  %v951_v0 = vcvt.s32.f32 %v949_v6  ;;  %v4858_v1 = vld [vmem:[#allocation53_spill] sm:$0xff]  ;;  %v4860_v6 = vld [vmem:[#allocation56_spill] sm:$0xff] }
 0x3c1   :  { %953 = vmin.xlane.f32.xlu0 %v952_v38 }
 0x44e   :  { %v954_v2 = vpop.xlane.xlu0 %953 }
 0x44f   :  { %vm955_vm8 = vcmp.eq.f32.partialorder %v952_v38, %v954_v2  ;;  %v960_v4 = vcvt.f32.s32 %v954_v2  ;;  %v4859_v38 = vld [vmem:[#allocation54_spill] sm:$0xff]  ;;  %v4861_v2 = vld [vmem:[#allocation57_spill] sm:$0xff] }
 0x450   :  { %v956_v30 = vsel %vm955_vm8, %v951_v0, inf  ;;  %v4862_v0 = vld [vmem:[#allocation58_spill] sm:$0xff] }
 0x451   :  { %957 = vmin.xlane.f32.xlu1 %v956_v30  ;;  %v961_v5 = vshll.u32 %v960_v4, 16  ;;  %v4863_v30 = vmov 0.0   ;;  %v4864_v4 = vld [vmem:[#allocation26_spill] sm:$0xff] }
 0x4de   :  { %v958_v18 = vpop.xlane.xlu1 %957 }
 0x4df   :  { %v959_v22 = vcvt.f32.s32 %v958_v18  ;;  %v4865_v18 = vld [vmem:[#allocation59_spill] sm:$0xff] }
 0x4e1   :  { %v3849_v8 = vadd.s32 %v961_v5, %v959_v22  ;;  %v4866_v5 = vld [vmem:[#allocation27_spill] sm:$0xff]  ;;  %v4867_v22 = vld [vmem:[#allocation29_spill] sm:$0xff] }
 0x4e3   :  { %vm965_vm9 = vcmp.eq.s32.totalorder %v3611_v36, %v3849_v8  ;;  %vm963_vm13 = vcmp.eq.s32.totalorder %v3849_v8, 1 }
 0x4e4   :  { %vm2560_vm10 = vmpackc.low %vm965_vm9, %vm965_vm9  ;;  %vm2393_vm9 = vcmask 1042432  }
 0x4e5   :  { %2561 = vmatmul.mubr.msk.bf16.vlgmr.msra.gmra.mrb[12].mxu0 %vm2560_vm10, %v4852_v9  ;;  %2563 = vmatmul.mubr.msk.bf16.vlgmr.msra.gmra.mrb[12].mxu1 %vm2560_vm10, %v4852_v9 }
 0x4e6   :  { %1052 = vmatpush1.bf16.msra.mxu0 %v3637_v44  ;;  %1093 = vmatpush1.bf16.msra.mxu1 %v3646_v47 }
 0x4e7   :  { %1053 = vmatprep.subr.bf16.mxu0 %v3640_v45  ;;  %1094 = vmatprep.subr.bf16.mxu1 %v3648_v48 }
 0x4e8   :  { %1083 = vmatprep.mubr.bf16.mxu0 %v4841_v3  ;;  %1124 = vmatprep.mubr.bf16.mxu1 %v4841_v3 }
 0x4ea   :  { %1054 = vmatpush1.bf16.msra.mxu0 %v3652_v49  ;;  %1095 = vmatpush1.bf16.msra.mxu1 %v3662_v51 }
 0x4eb   :  { %1055 = vmatprep.subr.bf16.mxu0 %v3655_v50  ;;  %1096 = vmatprep.subr.bf16.mxu1 %v3667_v52 }
 0x4ee   :  { %1056 = vmatpush1.bf16.msra.mxu0 %v3669_v53  ;;  %1097 = vmatpush1.bf16.msra.mxu1 %v3672_v54 }
 0x4ef   :  { %1057 = vmatprep.subr.bf16.mxu0 %v3674_v55  ;;  %1098 = vmatprep.subr.bf16.mxu1 %v3676_v56 }
 0x4f2   :  { %1058 = vmatpush1.bf16.msra.mxu0 %v3678_v57  ;;  %1099 = vmatpush1.bf16.msra.mxu1 %v3686_v59 }
 0x4f3   :  { %1059 = vmatprep.subr.bf16.mxu0 %v3681_v58  ;;  %1100 = vmatprep.subr.bf16.mxu1 %v3691_v60 }
 0x4f6   :  { %1060 = vmatpush1.bf16.msra.mxu0 %v3693_v61  ;;  %1101 = vmatpush1.bf16.msra.mxu1 %v3699_v63 }
 0x4f7   :  { %1061 = vmatprep.subr.bf16.mxu0 %v3696_v62  ;;  %1102 = vmatprep.subr.bf16.mxu1 %v4853_v15 }
 0x4fa   :  { %1062 = vmatpush1.bf16.msra.mxu0 %v4854_v7  ;;  %1103 = vmatpush1.bf16.msra.mxu1 %v4855_v20 }
 0x4fb   :  { %1063 = vmatprep.subr.bf16.mxu0 %v4856_v26  ;;  %1104 = vmatprep.subr.bf16.mxu1 %v4857_v12 }
 0x4fe   :  { %1064 = vmatpush1.bf16.msra.mxu0 %v4858_v1  ;;  %1105 = vmatpush1.bf16.msra.mxu1 %v4859_v38 }
 0x4ff   :  { %1065 = vmatprep.subr.bf16.mxu0 %v3726_v31  ;;  %1106 = vmatprep.subr.bf16.mxu1 %v4860_v6  ;;  %v4877_v6 = vld [vmem:[#allocation63_spill] sm:$0xff] }
 0x502   :  { %1066 = vmatpush1.bf16.msra.mxu0 %v4861_v2  ;;  %1107 = vmatpush1.bf16.msra.mxu1 %v4862_v0  ;;  %v4872_v0 = vld [vmem:[#allocation32_spill] sm:$0xff]  ;;  %v4873_v2 = vld [vmem:[#allocation33_spill] sm:$0xff] }
 0x503   :  { %2683 = vmatprep.subr.bf16.mxu0 %v4863_v30  ;;  %1249 = vmatprep.subr.bf16.mxu1 %v4864_v4  ;;  %v4869_v4 = vld [vmem:[#allocation30_spill] sm:$0xff] }
 0x505   :  { %1084 = vmatmul.mubr.bf16.vlgmr.msra.gmra.mrb[16].mxu0 %v3819_v35  ;;  %1125 = vmatmul.mubr.bf16.vlgmr.msra.gmra.mrb[16].mxu1 %v3819_v35  ;;  %v4870_v35 = vld [vmem:[#allocation31_spill] sm:$0xff] }
 0x506   :  { %2684 = vmatpush3.bf16.msra.mxu0 %v4865_v18  ;;  %2699 = vmatprep.mubr.msk.bf16.mxu0 %vm3366_vm0, %v4863_v30  ;;  %v4871_v18 = vld [vmem:[#allocation61_spill] sm:$0xff] }
 0x507   :  { %2685 = vmatprep.subr.bf16.mxu0 %v4863_v30  ;;  %1250 = vmatpush1.bf16.msra.mxu1 %v4866_v5  ;;  %v4874_v5 = vld [vmem:[#allocation62_spill] sm:$0xff] }
 0x508   :  { %1251 = vmatprep.subr.bf16.mxu1 %v4867_v22  ;;  %1281 = vmatprep.mubr.bf16.mxu1 %v4841_v3  ;;  %v4875_v22 = vld [vmem:[#allocation34_spill] sm:$0xff] }
 0x50a   :  { %2686 = vmatpush3.bf16.msra.mxu0 %v4868_v11  ;;  %v4876_v11 = vld [vmem:[#allocation35_spill] sm:$0xff] }
 0x50b   :  { %2687 = vmatprep.subr.bf16.mxu0 %v4863_v30  ;;  %1252 = vmatpush1.bf16.msra.mxu1 %v4869_v4  ;;  %v4878_v4 = vld [vmem:[#allocation36_spill] sm:$0xff] }
 0x50c   :  { %1253 = vmatprep.subr.bf16.mxu1 %v4870_v35  ;;  %v4879_v35 = vld [vmem:[#allocation37_spill] sm:$0xff] }
 0x50e   :  { %2688 = vmatpush3.bf16.msra.mxu0 %v4871_v18  ;;  %v4880_v18 = vld [vmem:[#allocation64_spill] sm:$0xff] }
 0x50f   :  { %2689 = vmatprep.subr.bf16.mxu0 %v4863_v30  ;;  %1254 = vmatpush1.bf16.msra.mxu1 %v4872_v0  ;;  %v4882_v0 = vld [vmem:[#allocation39_spill] sm:$0xff] }
 0x510   :  { %1255 = vmatprep.subr.bf16.mxu1 %v4873_v2  ;;  %v4881_v2 = vld [vmem:[#allocation38_spill] sm:$0xff] }
 0x512   :  { %2690 = vmatpush3.bf16.msra.mxu0 %v4874_v5  ;;  %v4883_v5 = vld [vmem:[#allocation65_spill] sm:$0xff] }
 0x513   :  { %2691 = vmatprep.subr.bf16.mxu0 %v4863_v30  ;;  %1256 = vmatpush1.bf16.msra.mxu1 %v4875_v22  ;;  %v4885_v22 = vld [vmem:[#allocation41_spill] sm:$0xff] }
 0x514   :  { %1257 = vmatprep.subr.bf16.mxu1 %v4876_v11  ;;  %v4884_v11 = vld [vmem:[#allocation40_spill] sm:$0xff] }
 0x516   :  { %2692 = vmatpush3.bf16.msra.mxu0 %v4877_v6  ;;  %v4886_v6 = vld [vmem:[#allocation66_spill] sm:$0xff] }
 0x517   :  { %2693 = vmatprep.subr.bf16.mxu0 %v4863_v30  ;;  %1258 = vmatpush1.bf16.msra.mxu1 %v4878_v4  ;;  %v4887_v4 = vld [vmem:[#allocation28_spill] sm:$0xff] }
 0x518   :  { %1259 = vmatprep.subr.bf16.mxu1 %v4879_v35  ;;  %v4888_v35 = vld [vmem:[#allocation42_spill] sm:$0xff] }
 0x51a   :  { %2694 = vmatpush3.bf16.msra.mxu0 %v4880_v18  ;;  %v4889_v18 = vld [vmem:[#allocation43_spill] sm:$0xff] }
 0x51b   :  { %2695 = vmatprep.subr.bf16.mxu0 %v4863_v30  ;;  %1260 = vmatpush1.bf16.msra.mxu1 %v4881_v2 }
 0x51c   :  { %1261 = vmatprep.subr.bf16.mxu1 %v4882_v0 }
 0x51e   :  { %2696 = vmatpush3.bf16.msra.mxu0 %v4883_v5 }
 0x51f   :  { %2697 = vmatprep.subr.bf16.mxu0 %v4863_v30  ;;  %1262 = vmatpush1.bf16.msra.mxu1 %v4884_v11 }
 0x520   :  { %1263 = vmatprep.subr.bf16.mxu1 %v4885_v22 }
 0x522   :  { %2698 = vmatpush3.bf16.msra.mxu0 %v4886_v6 }
 0x523   :  { %1290 = vmatprep.subr.bf16.mxu0 %v4887_v4  ;;  %1264 = vmatpush1.bf16.msra.mxu1 %v4888_v35 }
 0x524   :  { %1331 = vmatprep.subr.bf16.mxu1 %v4889_v18 }
 0x5b8   :  { %v1003_v31 = vpop.f32.mrb[12].mxu0  ;;  %v1044_v2 = vpop.f32.mrb[12].mxu1 }
 0x5b9   :  { %v1005_v38 = vpop.f32.mrb[13].mxu0  ;;  %v1046_v0 = vpop.f32.mrb[13].mxu1 }
 0x5ba   :  { %v1007_v1 = vpop.f32.mrb[14].mxu0  ;;  %v1048_v5 = vpop.f32.mrb[14].mxu1 }
 0x5bb   :  { %v1008_v12 = vpop.f32.mrb[15].mxu0  ;;  %v1049_v30 = vpop.f32.mrb[15].mxu1 }
 0x5d8   :  { %v1085_v26 = vpop.f32.mrb[16].mxu0  ;;  %v1126_v11 = vpop.f32.mrb[16].mxu1 }
 0x5d9   :  { %v1086_v20 = vadd.f32 %v1085_v26, %v1003_v31  ;;  %v1127_v22 = vadd.f32 %v1126_v11, %v1044_v2  ;;  %v1087_v7 = vpop.f32.mrb[17].mxu0  ;;  %v1128_v6 = vpop.f32.mrb[17].mxu1 }
 0x5da   :  { %v1088_v15 = vadd.f32 %v1087_v7, %v1005_v38  ;;  %v1129_v4 = vadd.f32 %v1128_v6, %v1046_v0  ;;  %v1089_v62 = vpop.f32.mrb[18].mxu0  ;;  %v1130_v35 = vpop.f32.mrb[18].mxu1 }
 0x5db   :  { %v1133_v18 = vadd.f32 %v1086_v20, %v3802_v40  ;;  %v1090_v63 = vpop.f32.mrb[19].mxu0  ;;  %v1131_v61 = vpop.f32.mrb[19].mxu1  ;;  %v1135_v26 = vadd.f32 %v1127_v22, %v3813_v46 }
 0x5dc   :  { %v1134_v60 = vadd.f32 %v1088_v15, %v3804_v16  ;;  %v1136_v12 = vadd.f32 %v1129_v4, %v3809_v24 }
 0x5dd   :  { %v2564_v1 = vmul.f32 -1.442695, %v1133_v18 }
 0x5de   :  { %v2565_v5 = vmul.f32 -1.442695, %v1134_v60  ;;  %v2566_v31 = vmul.f32 -1.442695, %v1136_v12  ;;  %v3371_v12 = vmov 7  }
 0x5df   :  { %2930 = vpow2.f32 %v2564_v1 }
 0x5e0   :  { %2932 = vpow2.f32 %v2565_v5 }
 0x5e1   :  { %2934 = vpow2.f32 %v2566_v31  ;;  %v964_v31 = vsel %vm963_vm13, 2, %v3371_v12 }
 0x5e2   :  { %2936 = vtanh.f32 %v1135_v26  ;;  %vm1242_vm2 = vcmp.eq.s32.totalorder %v964_v31, 7 }
 0x5e9   :  { %v2931_v30 = vpop.eup %2930 }
 0x5ea   :  { %v2933_v7 = vpop.eup %2932  ;;  %v1140_v38 = vadd.f32 1.0, %v2931_v30 }
 0x5eb   :  { %v1146_v62 = vadd.f32 1.0, %v2933_v7  ;;  %v2935_v61 = vpop.eup %2934 }
 0x5ec   :  { %2938 = vrcp.f32 %v1140_v38  ;;  %v2937_v63 = vpop.eup %2936  ;;  %v1153_v6 = vadd.f32 1.0, %v2935_v61  ;;  %v4007_v61 = vld [vmem:[#allocation8 + $0x4] ss:$16 sps:$4 sm:$0xff]  }
 0x5ed   :  { %2940 = vrcp.f32 %v1146_v62  ;;  %4907 = vst [vmem:[#allocation27_spill] sm:$0xff] %v4007_v61 }
 0x5ee   :  { %2942 = vrcp.f32 %v1153_v6  ;;  %v4025_v6 = vld [vmem:[#allocation8 + $0x20] ss:$16 sps:$4 sm:$0xff]  }
 0x5ef   :  { %4912 = vst [vmem:[#allocation31_spill] sm:$0xff] %v4025_v6 }
 0x5f6   :  { %v2939_v15 = vpop.eup %2938 }
 0x5f7   :  { %v2941_v20 = vpop.eup %2940  ;;  %v1157_v60 = vmul.f32 %v2939_v15, %v2937_v63  ;;  %v4908_v63 = vld [vmem:[#allocation59_spill] sm:$0xff] }
 0x5f8   :  { %v1156_v2 = vmul.f32 %v2941_v20, %v3816_v42  ;;  %v2943_v11 = vpop.eup %2942  ;;  %v3961_v42 = vsub.s32 %v3611_v36, %v3795_v33  ;;  %v4016_v15 = vld [vmem:[#allocation8] ss:$16 sps:$4 sm:$0xff]   ;;  %v4019_v20 = vld [vmem:[#allocation8 + $0x24] ss:$16 sps:$4 sm:$0xff]  }
 0x5f9   :  { %4909 = vst [vmem:[#allocation29_spill] sm:$0xff] %v4016_v15  ;;  %4910 = vst [vmem:[#allocation30_spill] sm:$0xff] %v4019_v20 }
 0x5fa   :  { %v3931_v0 = vadd.f32 %v1157_v60, %v1156_v2  ;;  %v2368_v26 = vrot.slane %v3849_v8, %v3961_v42  ;;  %v4906_v8 = vmov 0.0   ;;  %v4911_v60 = vld [vmem:[#allocation60_spill] sm:$0xff] }
 0x5fb   :  { %v4028_v2 = vld [vmem:[#allocation8 + $0x44] ss:$16 sps:$4 sm:$0xff]  }
 0x5fc   :  { %2944 = vtanh.f32 %v3931_v0  ;;  %v2390_v33 = vsel %vm2389_vm14, 0, %v2368_v26  ;;  %4913 = vst [vmem:[#allocation32_spill] sm:$0xff] %v4028_v2 }
 0x606   :  { %v2945_v22 = vpop.eup %2944 }
 0x607   :  { %v1160_v4 = vmul.f32 %v2945_v22, %v2943_v11  ;;  %v4914_v11 = vld [vmem:[#allocation61_spill] sm:$0xff] }
 0x608   :  { %v4033_v22 = vld [vmem:[#allocation8 + $0x40] ss:$16 sps:$4 sm:$0xff]  }
 0x609   :  { %v3934_v35 = vpack.c.bf16 %v1160_v4, %v1160_v4  ;;  %4915 = vst [vmem:[#allocation33_spill] sm:$0xff] %v4033_v22  ;;  %v4036_v4 = vld [vmem:[#allocation8 + $0x64] ss:$16 sps:$4 sm:$0xff]  }
 0x60a   :  { %4916 = vst [vmem:[#allocation34_spill] sm:$0xff] %v4036_v4 }
 0x60b   :  { %2700 = vmatmul.mubr.bf16.vlgmr.msra.gmra.mrb[20].mxu0 %v3934_v35 }
 0x60c   :  { %1291 = vmatpush1.bf16.msra.mxu0 %v3536_v10  ;;  %1322 = vmatprep.mubr.bf16.mxu0 %v4841_v3 }
 0x60d   :  { %1292 = vmatprep.subr.bf16.mxu0 %v3544_v13  ;;  %v1221_v13 = vld [vmem:[#allocation11 + $0x8] sm:$0xff] }
 0x610   :  { %1293 = vmatpush1.bf16.msra.mxu0 %v3548_v14 }
 0x611   :  { %1294 = vmatprep.subr.bf16.mxu0 %v3557_v17 }
 0x614   :  { %1295 = vmatpush1.bf16.msra.mxu0 %v3563_v19 }
 0x615   :  { %1296 = vmatprep.subr.bf16.mxu0 %v3569_v21 }
 0x618   :  { %1297 = vmatpush1.bf16.msra.mxu0 %v3575_v23 }
 0x619   :  { %1298 = vmatprep.subr.bf16.mxu0 %v3581_v25 }
 0x61c   :  { %1299 = vmatpush1.bf16.msra.mxu0 %v3587_v27 }
 0x61d   :  { %1300 = vmatprep.subr.bf16.mxu0 %v3593_v29 }
 0x620   :  { %1301 = vmatpush1.bf16.msra.mxu0 %v3599_v32 }
 0x621   :  { %1302 = vmatprep.subr.bf16.mxu0 %v3605_v34 }
 0x624   :  { %1303 = vmatpush1.bf16.msra.mxu0 %v3614_v37 }
 0x625   :  { %1304 = vmatprep.subr.bf16.mxu0 %v3620_v39 }
 0x628   :  { %1305 = vmatpush1.bf16.msra.mxu0 %v3627_v41 }
 0x629   :  { %1372 = vmatprep.subr.bf16.mxu0 %v3635_v43 }
 0x6de   :  { %v1196_v10 = vpop.f32.mrb[20].mxu0 }
 0x6df   :  { %v3955_v14 = vadd.f32 %v3842_v28, %v1196_v10  ;;  %v2701_v17 = vpop.f32.mrb[21].mxu0  ;;  %v4041_v10 = vld [vmem:[#allocation8 + $0x60] ss:$16 sps:$4 sm:$0xff]  }
 0x6e0   :  { %v1199_v19 = vpop.f32.mrb[22].mxu0  ;;  %4918 = vst [vmem:[#allocation35_spill] sm:$0xff] %v4041_v10  ;;  %v4920_v17 = vld [vmem:[#allocation63_spill] sm:$0xff] }
 0x6e1   :  { %4890 = vst [vmem:[#allocation26_spill] sm:$0xff] %v3955_v14  ;;  %v2702_v21 = vpop.f32.mrb[23].mxu0  ;;  %v1222_v23 = vadd.f32 %v1221_v13, %v3955_v14  ;;  %v4044_v13 = vld [vmem:[#allocation8 + $0x84] ss:$16 sps:$4 sm:$0xff]   ;;  %v4049_v19 = vld [vmem:[#allocation8 + $0x80] ss:$16 sps:$4 sm:$0xff]  }
 0x6e2   :  { %4919 = vst [vmem:[#allocation36_spill] sm:$0xff] %v4044_v13  ;;  %4921 = vst [vmem:[#allocation37_spill] sm:$0xff] %v4049_v19  ;;  %v4052_v21 = vld [vmem:[#allocation8 + $0xa4] ss:$16 sps:$4 sm:$0xff]   ;;  %v4204_v14 = vld [vmem:[#allocation7 + $0x8c] ss:$16 sps:$4 sm:$0xff]  }
 0x6e3   :  { %1223 = vmax.xlane.f32.xlu1 %v1222_v23  ;;  %4922 = vst [vmem:[#allocation38_spill] sm:$0xff] %v4052_v21 }
 0x770   :  { %v1224_v25 = vpop.xlane.xlu1 %1223 }
 0x771   :  { %vm1225_vm11 = vcmp.eq.f32.partialorder %v1222_v23, %v1224_v25  ;;  %v4923_v23 = vld [vmem:[#allocation64_spill] sm:$0xff]  ;;  %v4057_v25 = vld [vmem:[#allocation8 + $0xa0] ss:$16 sps:$4 sm:$0xff]  }
 0x772   :  { %v1226_v27 = vsel %vm1225_vm11, %v3611_v36, 128  ;;  %4924 = vst [vmem:[#allocation39_spill] sm:$0xff] %v4057_v25 }
 0x773   :  { %v1228_v29 = vshra.s32 %v1226_v27, 16  ;;  %v1227_v34 = vand.u32 65535, %v1226_v27  ;;  %v4060_v27 = vld [vmem:[#allocation8 + $0xc4] ss:$16 sps:$4 sm:$0xff]  }
 0x774   :  { %4925 = vst [vmem:[#allocation40_spill] sm:$0xff] %v4060_v27 }
 0x775   :  { %v1230_v32 = vcvt.s32.f32 %v1228_v29  ;;  %v1229_v39 = vcvt.s32.f32 %v1227_v34  ;;  %v4926_v29 = vld [vmem:[#allocation65_spill] sm:$0xff]  ;;  %v4068_v34 = vld [vmem:[#allocation8 + $0xe4] ss:$16 sps:$4 sm:$0xff]  }
 0x776   :  { %4928 = vst [vmem:[#allocation28_spill] sm:$0xff] %v4068_v34 }
 0x777   :  { %1231 = vmin.xlane.f32.xlu0 %v1230_v32 }
 0x804   :  { %v1232_v37 = vpop.xlane.xlu0 %1231 }
 0x805   :  { %vm1233_vm12 = vcmp.eq.f32.partialorder %v1230_v32, %v1232_v37  ;;  %v1238_v43 = vcvt.f32.s32 %v1232_v37  ;;  %v4065_v32 = vld [vmem:[#allocation8 + $0xc0] ss:$16 sps:$4 sm:$0xff]   ;;  %v4929_v37 = vld [vmem:[#allocation66_spill] sm:$0xff] }
 0x806   :  { %v1234_v41 = vsel %vm1233_vm12, %v1229_v39, inf  ;;  %4927 = vst [vmem:[#allocation41_spill] sm:$0xff] %v4065_v32  ;;  %v4072_v39 = vld [vmem:[#allocation8 + $0xc] ss:$16 sps:$4 sm:$0xff]  }
 0x807   :  { %1235 = vmin.xlane.f32.xlu1 %v1234_v41  ;;  %v1239_v1 = vshll.u32 %v1238_v43, 16  ;;  %4930 = vst [vmem:[#allocation42_spill] sm:$0xff] %v4072_v39  ;;  %v4075_v41 = vld [vmem:[#allocation8 + $0xe0] ss:$16 sps:$4 sm:$0xff]   ;;  %v4078_v43 = vld [vmem:[#allocation7 + $0x4] ss:$16 sps:$4 sm:$0xff]  }
 0x808   :  { %4931 = vst [vmem:[#allocation43_spill] sm:$0xff] %v4075_v41 }
 0x894   :  { %v1236_v18 = vpop.xlane.xlu1 %1235 }
 0x895   :  { %v1237_v5 = vcvt.f32.s32 %v1236_v18 }
 0x897   :  { %v1240_v30 = vadd.s32 %v1239_v1, %v1237_v5 }
 0x899   :  { %vm1241_vm3 = vcmp.eq.s32.totalorder %v1240_v30, 1  ;;  %v2372_v7 = vrot.slane %v1240_v30, %v3961_v42  ;;  %vm1245_vm4 = vcmp.eq.s32.totalorder %v3611_v36, %v1240_v30 }
 0x89a   :  { %vm1243_vm5 = vmand %vm1241_vm3, %vm1242_vm2  ;;  %vm2395_vm3 = vcmask 1043456  }
 0x89b   :  { %v3968_v38 = vsel %vm1243_vm5, 3, %v964_v31  ;;  %v3970_v62 = vsel %vm2391_vm15, %v2390_v33, %v2372_v7  ;;  %vm2568_vm6 = vmpackc.low %vm1245_vm4, %vm1245_vm4 }
 0x89c   :  { %2569 = vmatmul.mubr.msk.bf16.vlgmr.msra.gmra.mrb[20].mxu1 %vm2568_vm6, %v4852_v9  ;;  %2571 = vmatmul.mubr.msk.bf16.vlgmr.msra.gmra.mrb[24].mxu0 %vm2568_vm6, %v4852_v9  ;;  %vm1522_vm10 = vcmp.eq.s32.totalorder %v3968_v38, 7 }
 0x89d   :  { %1332 = vmatpush1.bf16.msra.mxu1 %v3637_v44  ;;  %1373 = vmatpush1.bf16.msra.mxu0 %v3646_v47  ;;  %v4891_v44 = vld [vmem:[#allocation44_spill] sm:$0xff]  ;;  %v4893_v47 = vld [vmem:[#allocation47_spill] sm:$0xff] }
 0x89e   :  { %1333 = vmatprep.subr.bf16.mxu1 %v3640_v45  ;;  %1374 = vmatprep.subr.bf16.mxu0 %v3648_v48  ;;  %v4892_v45 = vld [vmem:[#allocation45_spill] sm:$0xff]  ;;  %v4894_v48 = vld [vmem:[#allocation46_spill] sm:$0xff]  ;;  %4932 = vst [vmem:[#allocation44_spill] sm:$0xff] %v4078_v43 }
 0x89f   :  { %1363 = vmatprep.mubr.bf16.mxu1 %v4841_v3  ;;  %1404 = vmatprep.mubr.bf16.mxu0 %v4841_v3 }
 0x8a1   :  { %1334 = vmatpush1.bf16.msra.mxu1 %v3652_v49  ;;  %1375 = vmatpush1.bf16.msra.mxu0 %v3662_v51  ;;  %v4895_v49 = vld [vmem:[#allocation48_spill] sm:$0xff]  ;;  %v4897_v51 = vld [vmem:[#allocation51_spill] sm:$0xff] }
 0x8a2   :  { %1335 = vmatprep.subr.bf16.mxu1 %v3655_v50  ;;  %1376 = vmatprep.subr.bf16.mxu0 %v3667_v52  ;;  %v4896_v50 = vld [vmem:[#allocation49_spill] sm:$0xff]  ;;  %v4898_v52 = vld [vmem:[#allocation50_spill] sm:$0xff]  ;;  %4938 = vst [vmem:[#allocation51_spill] sm:$0xff] %v4204_v14 }
 0x8a5   :  { %1336 = vmatpush1.bf16.msra.mxu1 %v3669_v53  ;;  %1377 = vmatpush1.bf16.msra.mxu0 %v3672_v54  ;;  %v4899_v53 = vld [vmem:[#allocation52_spill] sm:$0xff]  ;;  %v4900_v54 = vld [vmem:[#allocation53_spill] sm:$0xff] }
 0x8a6   :  { %1337 = vmatprep.subr.bf16.mxu1 %v3674_v55  ;;  %1378 = vmatprep.subr.bf16.mxu0 %v3676_v56  ;;  %v4901_v55 = vld [vmem:[#allocation54_spill] sm:$0xff]  ;;  %v4902_v56 = vld [vmem:[#allocation55_spill] sm:$0xff] }
 0x8a9   :  { %1338 = vmatpush1.bf16.msra.mxu1 %v3678_v57  ;;  %1379 = vmatpush1.bf16.msra.mxu0 %v3686_v59  ;;  %v4903_v57 = vld [vmem:[#allocation56_spill] sm:$0xff]  ;;  %v4905_v59 = vld [vmem:[#allocation58_spill] sm:$0xff] }
 0x8aa   :  { %1339 = vmatprep.subr.bf16.mxu1 %v3681_v58  ;;  %1380 = vmatprep.subr.bf16.mxu0 %v4891_v44  ;;  %v4904_v58 = vld [vmem:[#allocation57_spill] sm:$0xff] }
 0x8ad   :  { %1340 = vmatpush1.bf16.msra.mxu1 %v4892_v45  ;;  %1381 = vmatpush1.bf16.msra.mxu0 %v4893_v47 }
 0x8ae   :  { %1341 = vmatprep.subr.bf16.mxu1 %v4894_v48  ;;  %1382 = vmatprep.subr.bf16.mxu0 %v4895_v49 }
 0x8b1   :  { %1342 = vmatpush1.bf16.msra.mxu1 %v4896_v50  ;;  %1383 = vmatpush1.bf16.msra.mxu0 %v4897_v51 }
 0x8b2   :  { %1343 = vmatprep.subr.bf16.mxu1 %v4898_v52  ;;  %1384 = vmatprep.subr.bf16.mxu0 %v4899_v53 }
 0x8b5   :  { %1344 = vmatpush1.bf16.msra.mxu1 %v4900_v54  ;;  %1385 = vmatpush1.bf16.msra.mxu0 %v4901_v55 }
 0x8b6   :  { %1345 = vmatprep.subr.bf16.mxu1 %v4902_v56  ;;  %1386 = vmatprep.subr.bf16.mxu0 %v4903_v57 }
 0x8b9   :  { %1346 = vmatpush1.bf16.msra.mxu1 %v4904_v58  ;;  %1387 = vmatpush1.bf16.msra.mxu0 %v4905_v59 }
 0x8ba   :  { %2703 = vmatprep.subr.bf16.mxu1 %v4906_v8  ;;  %1529 = vmatprep.subr.bf16.mxu0 %v4007_v61 }
 0x8bc   :  { %1364 = vmatmul.mubr.bf16.vlgmr.msra.gmra.mrb[24].mxu1 %v3934_v35  ;;  %1405 = vmatmul.mubr.bf16.vlgmr.msra.gmra.mrb[28].mxu0 %v3934_v35  ;;  %v4917_v35 = vld [vmem:[#allocation62_spill] sm:$0xff] }
 0x8bd   :  { %2704 = vmatpush3.bf16.msra.mxu1 %v4908_v63  ;;  %2719 = vmatprep.mubr.msk.bf16.mxu1 %vm3366_vm0, %v4906_v8 }
 0x8be   :  { %2705 = vmatprep.subr.bf16.mxu1 %v4906_v8  ;;  %1530 = vmatpush1.bf16.msra.mxu0 %v4016_v15 }
 0x8bf   :  { %1531 = vmatprep.subr.bf16.mxu0 %v4019_v20  ;;  %1561 = vmatprep.mubr.bf16.mxu0 %v4841_v3 }
 0x8c1   :  { %2706 = vmatpush3.bf16.msra.mxu1 %v4911_v60 }
 0x8c2   :  { %2707 = vmatprep.subr.bf16.mxu1 %v4906_v8  ;;  %1532 = vmatpush1.bf16.msra.mxu0 %v4025_v6 }
 0x8c3   :  { %1533 = vmatprep.subr.bf16.mxu0 %v4028_v2 }
 0x8c5   :  { %2708 = vmatpush3.bf16.msra.mxu1 %v4914_v11 }
 0x8c6   :  { %2709 = vmatprep.subr.bf16.mxu1 %v4906_v8  ;;  %1534 = vmatpush1.bf16.msra.mxu0 %v4033_v22 }
 0x8c7   :  { %1535 = vmatprep.subr.bf16.mxu0 %v4036_v4 }
 0x8c9   :  { %2710 = vmatpush3.bf16.msra.mxu1 %v4917_v35 }
 0x8ca   :  { %2711 = vmatprep.subr.bf16.mxu1 %v4906_v8  ;;  %1536 = vmatpush1.bf16.msra.mxu0 %v4041_v10 }
 0x8cb   :  { %1537 = vmatprep.subr.bf16.mxu0 %v4044_v13 }
 0x8cd   :  { %2712 = vmatpush3.bf16.msra.mxu1 %v4920_v17 }
 0x8ce   :  { %2713 = vmatprep.subr.bf16.mxu1 %v4906_v8  ;;  %1538 = vmatpush1.bf16.msra.mxu0 %v4049_v19 }
 0x8cf   :  { %1539 = vmatprep.subr.bf16.mxu0 %v4052_v21 }
 0x8d1   :  { %2714 = vmatpush3.bf16.msra.mxu1 %v4923_v23 }
 0x8d2   :  { %2715 = vmatprep.subr.bf16.mxu1 %v4906_v8  ;;  %1540 = vmatpush1.bf16.msra.mxu0 %v4057_v25 }
 0x8d3   :  { %1541 = vmatprep.subr.bf16.mxu0 %v4060_v27 }
 0x8d5   :  { %2716 = vmatpush3.bf16.msra.mxu1 %v4926_v29 }
 0x8d6   :  { %2717 = vmatprep.subr.bf16.mxu1 %v4906_v8  ;;  %1542 = vmatpush1.bf16.msra.mxu0 %v4065_v32 }
 0x8d7   :  { %1543 = vmatprep.subr.bf16.mxu0 %v4068_v34 }
 0x8d9   :  { %2718 = vmatpush3.bf16.msra.mxu1 %v4929_v37 }
 0x8da   :  { %1570 = vmatprep.subr.bf16.mxu1 %v4072_v39  ;;  %1544 = vmatpush1.bf16.msra.mxu0 %v4075_v41 }
 0x8db   :  { %1611 = vmatprep.subr.bf16.mxu0 %v4078_v43 }
 0x96f   :  { %v1283_v18 = vpop.f32.mrb[20].mxu1  ;;  %v1324_v1 = vpop.f32.mrb[24].mxu0 }
 0x970   :  { %v1285_v5 = vpop.f32.mrb[21].mxu1  ;;  %v1326_v12 = vpop.f32.mrb[25].mxu0 }
 0x971   :  { %v1287_v31 = vpop.f32.mrb[22].mxu1  ;;  %v1328_v26 = vpop.f32.mrb[26].mxu0 }
 0x972   :  { %v1288_v30 = vpop.f32.mrb[23].mxu1  ;;  %v1329_v7 = vpop.f32.mrb[27].mxu0 }
 0x98f   :  { %v1365_v33 = vpop.f32.mrb[24].mxu1  ;;  %v1406_v44 = vpop.f32.mrb[28].mxu0 }
 0x990   :  { %v1366_v45 = vadd.f32 %v1365_v33, %v1283_v18  ;;  %v1407_v47 = vadd.f32 %v1406_v44, %v1324_v1  ;;  %v1367_v48 = vpop.f32.mrb[25].mxu1  ;;  %v1408_v49 = vpop.f32.mrb[29].mxu0 }
 0x991   :  { %v1368_v50 = vadd.f32 %v1367_v48, %v1285_v5  ;;  %v1409_v51 = vadd.f32 %v1408_v49, %v1326_v12  ;;  %v1369_v52 = vpop.f32.mrb[26].mxu1  ;;  %v1410_v53 = vpop.f32.mrb[30].mxu0  ;;  %v4096_v48 = vld [vmem:[#allocation8 + $0x2c] ss:$16 sps:$4 sm:$0xff]  }
 0x992   :  { %v1413_v54 = vadd.f32 %v1366_v45, %v3802_v40  ;;  %v1370_v55 = vpop.f32.mrb[27].mxu1  ;;  %v1411_v56 = vpop.f32.mrb[31].mxu0  ;;  %v1415_v11 = vadd.f32 %v1407_v47, %v3813_v46  ;;  %v4092_v47 = vld [vmem:[#allocation8 + $0x8] ss:$16 sps:$4 sm:$0xff]   ;;  %v4102_v49 = vld [vmem:[#allocation8 + $0x4c] ss:$16 sps:$4 sm:$0xff]  }
 0x993   :  { %v1414_v57 = vadd.f32 %v1368_v50, %v3804_v16  ;;  %v1416_v63 = vadd.f32 %v1409_v51, %v3809_v24  ;;  %v4105_v50 = vld [vmem:[#allocation8 + $0x48] ss:$16 sps:$4 sm:$0xff]   ;;  %v4108_v51 = vld [vmem:[#allocation8 + $0x6c] ss:$16 sps:$4 sm:$0xff]  }
 0x994   :  { %v2572_v58 = vmul.f32 -1.442695, %v1413_v54  ;;  %v4111_v52 = vld [vmem:[#allocation8 + $0x68] ss:$16 sps:$4 sm:$0xff]   ;;  %v4114_v53 = vld [vmem:[#allocation8 + $0x8c] ss:$16 sps:$4 sm:$0xff]  }
 0x995   :  { %v2573_v59 = vmul.f32 -1.442695, %v1414_v57  ;;  %v2574_v60 = vmul.f32 -1.442695, %v1416_v63  ;;  %v4117_v54 = vld [vmem:[#allocation8 + $0x88] ss:$16 sps:$4 sm:$0xff]  }
 0x996   :  { %2946 = vpow2.f32 %v2572_v58  ;;  %v4120_v55 = vld [vmem:[#allocation8 + $0xac] ss:$16 sps:$4 sm:$0xff]   ;;  %v4123_v56 = vld [vmem:[#allocation8 + $0xa8] ss:$16 sps:$4 sm:$0xff]  }
 0x997   :  { %2948 = vpow2.f32 %v2573_v59  ;;  %v4126_v57 = vld [vmem:[#allocation8 + $0xcc] ss:$16 sps:$4 sm:$0xff]   ;;  %v4129_v58 = vld [vmem:[#allocation8 + $0xc8] ss:$16 sps:$4 sm:$0xff]  }
 0x998   :  { %2950 = vpow2.f32 %v2574_v60  ;;  %v4132_v59 = vld [vmem:[#allocation8 + $0xec] ss:$16 sps:$4 sm:$0xff]   ;;  %v4135_v63 = vld [vmem:[#allocation8 + $0xe8] ss:$16 sps:$4 sm:$0xff]  }
 0x999   :  { %2952 = vtanh.f32 %v1415_v11  ;;  %v4138_v60 = vld [vmem:[#allocation7 + $0xc] ss:$16 sps:$4 sm:$0xff]  }
 0x9a0   :  { %v2947_v35 = vpop.eup %2946 }
 0x9a1   :  { %v2949_v17 = vpop.eup %2948  ;;  %v1420_v23 = vadd.f32 1.0, %v2947_v35  ;;  %v1501_v35 = vld [vmem:[#allocation11 + $0x10] sm:$0xff] }
 0x9a2   :  { %v1426_v29 = vadd.f32 1.0, %v2949_v17  ;;  %v2951_v37 = vpop.eup %2950 }
 0x9a3   :  { %2954 = vrcp.f32 %v1420_v23  ;;  %v2953_v18 = vpop.eup %2952  ;;  %v1433_v31 = vadd.f32 1.0, %v2951_v37 }
 0x9a4   :  { %2956 = vrcp.f32 %v1426_v29 }
 0x9a5   :  { %2958 = vrcp.f32 %v1433_v31 }
 0x9ad   :  { %v2955_v1 = vpop.eup %2954 }
 0x9ae   :  { %v2957_v5 = vpop.eup %2956  ;;  %v1437_v12 = vmul.f32 %v2955_v1, %v2953_v18 }
 0x9af   :  { %v1436_v26 = vmul.f32 %v2957_v5, %v3931_v0  ;;  %v2959_v7 = vpop.eup %2958  ;;  %v4099_v0 = vld [vmem:[#allocation8 + $0x28] ss:$16 sps:$4 sm:$0xff]  }
 0x9b1   :  { %v4086_v30 = vadd.f32 %v1437_v12, %v1436_v26 }
 0x9b3   :  { %2960 = vtanh.f32 %v4086_v30 }
 0x9bd   :  { %v2961_v33 = vpop.eup %2960 }
 0x9be   :  { %v1440_v44 = vmul.f32 %v2961_v33, %v2959_v7 }
 0x9c0   :  { %v4089_v45 = vpack.c.bf16 %v1440_v44, %v1440_v44 }
 0x9c2   :  { %2720 = vmatmul.mubr.bf16.vlgmr.msra.gmra.mrb[28].mxu1 %v4089_v45 }
 0x9c3   :  { %1571 = vmatpush1.bf16.msra.mxu1 %v4092_v47  ;;  %1602 = vmatprep.mubr.bf16.mxu1 %v4841_v3 }
 0x9c4   :  { %1572 = vmatprep.subr.bf16.mxu1 %v4096_v48 }
 0x9c7   :  { %1573 = vmatpush1.bf16.msra.mxu1 %v4099_v0 }
 0x9c8   :  { %1574 = vmatprep.subr.bf16.mxu1 %v4102_v49 }
 0x9cb   :  { %1575 = vmatpush1.bf16.msra.mxu1 %v4105_v50 }
 0x9cc   :  { %1576 = vmatprep.subr.bf16.mxu1 %v4108_v51 }
 0x9cf   :  { %1577 = vmatpush1.bf16.msra.mxu1 %v4111_v52 }
 0x9d0   :  { %1578 = vmatprep.subr.bf16.mxu1 %v4114_v53 }
 0x9d3   :  { %1579 = vmatpush1.bf16.msra.mxu1 %v4117_v54 }
 0x9d4   :  { %1580 = vmatprep.subr.bf16.mxu1 %v4120_v55 }
 0x9d7   :  { %1581 = vmatpush1.bf16.msra.mxu1 %v4123_v56 }
 0x9d8   :  { %1582 = vmatprep.subr.bf16.mxu1 %v4126_v57 }
 0x9db   :  { %1583 = vmatpush1.bf16.msra.mxu1 %v4129_v58 }
 0x9dc   :  { %1584 = vmatprep.subr.bf16.mxu1 %v4132_v59 }
 0x9df   :  { %1585 = vmatpush1.bf16.msra.mxu1 %v4135_v63 }
 0x9e0   :  { %1652 = vmatprep.subr.bf16.mxu1 %v4138_v60 }
 0xa95   :  { %v1476_v11 = vpop.f32.mrb[28].mxu1 }
 0xa96   :  { %v4142_v17 = vadd.f32 %v3842_v28, %v1476_v11  ;;  %v2721_v23 = vpop.f32.mrb[29].mxu1 }
 0xa97   :  { %v1479_v29 = vpop.f32.mrb[30].mxu1 }
 0xa98   :  { %4933 = vst [vmem:[#allocation45_spill] sm:$0xff] %v4142_v17  ;;  %v2722_v37 = vpop.f32.mrb[31].mxu1  ;;  %v1502_v18 = vadd.f32 %v1501_v35, %v4142_v17  ;;  %v4207_v17 = vld [vmem:[#allocation7 + $0x80] ss:$16 sps:$4 sm:$0xff]  }
 0xa99   :  { %4939 = vst [vmem:[#allocation50_spill] sm:$0xff] %v4207_v17 }
 0xa9a   :  { %1503 = vmax.xlane.f32.xlu0 %v1502_v18 }
 0xb27   :  { %v1504_v1 = vpop.xlane.xlu0 %1503 }
 0xb28   :  { %vm1505_vm7 = vcmp.eq.f32.partialorder %v1502_v18, %v1504_v1 }
 0xb29   :  { %v1506_v5 = vsel %vm1505_vm7, %v3611_v36, 128 }
 0xb2a   :  { %v1508_v12 = vshra.s32 %v1506_v5, 16  ;;  %v1507_v26 = vand.u32 65535, %v1506_v5  ;;  %v4157_v5 = vld [vmem:[#allocation7] ss:$16 sps:$4 sm:$0xff]  }
 0xb2c   :  { %v1510_v31 = vcvt.s32.f32 %v1508_v12  ;;  %v1509_v33 = vcvt.s32.f32 %v1507_v26  ;;  %v4160_v12 = vld [vmem:[#allocation7 + $0x8] ss:$16 sps:$4 sm:$0xff]  }
 0xb2d   :  { %v4174_v26 = vld [vmem:[#allocation7 + $0x28] ss:$16 sps:$4 sm:$0xff]  }
 0xb2e   :  { %1511 = vmin.xlane.f32.xlu1 %v1510_v31 }
 0xbbb   :  { %v1512_v7 = vpop.xlane.xlu1 %1511 }
 0xbbc   :  { %vm1513_vm8 = vcmp.eq.f32.partialorder %v1510_v31, %v1512_v7  ;;  %v1518_v28 = vcvt.f32.s32 %v1512_v7  ;;  %v4163_v31 = vld [vmem:[#allocation7 + $0x24] ss:$16 sps:$4 sm:$0xff]  }
 0xbbd   :  { %v1514_v44 = vsel %vm1513_vm8, %v1509_v33, inf  ;;  %v4177_v7 = vld [vmem:[#allocation7 + $0x44] ss:$16 sps:$4 sm:$0xff]   ;;  %v4180_v33 = vld [vmem:[#allocation7 + $0x4c] ss:$16 sps:$4 sm:$0xff]  }
 0xbbe   :  { %1515 = vmin.xlane.f32.xlu0 %v1514_v44  ;;  %v1519_v23 = vshll.u32 %v1518_v28, 16  ;;  %v4183_v44 = vld [vmem:[#allocation7 + $0x40] ss:$16 sps:$4 sm:$0xff]   ;;  %v4186_v28 = vld [vmem:[#allocation7 + $0x48] ss:$16 sps:$4 sm:$0xff]  }
 0xc4b   :  { %v1516_v11 = vpop.xlane.xlu0 %1515 }
 0xc4c   :  { %v1517_v29 = vcvt.f32.s32 %v1516_v11  ;;  %v4189_v11 = vld [vmem:[#allocation7 + $0x64] ss:$16 sps:$4 sm:$0xff]  }
 0xc4e   :  { %v1520_v37 = vadd.s32 %v1519_v23, %v1517_v29  ;;  %v4192_v23 = vld [vmem:[#allocation7 + $0x6c] ss:$16 sps:$4 sm:$0xff]   ;;  %v4195_v29 = vld [vmem:[#allocation7 + $0x60] ss:$16 sps:$4 sm:$0xff]  }
 0xc4f   :  { %4934 = vst [vmem:[#allocation47_spill] sm:$0xff] %v4192_v23  ;;  %4935 = vst [vmem:[#allocation46_spill] sm:$0xff] %v4195_v29 }
 0xc50   :  { %vm1521_vm11 = vcmp.eq.s32.totalorder %v1520_v37, 1  ;;  %v2376_v35 = vrot.slane %v1520_v37, %v3961_v42  ;;  %vm1525_vm12 = vcmp.eq.s32.totalorder %v3611_v36, %v1520_v37  ;;  %v4198_v37 = vld [vmem:[#allocation7 + $0x68] ss:$16 sps:$4 sm:$0xff]  }
 0xc51   :  { %vm1523_vm13 = vmand %vm1521_vm11, %vm1522_vm10  ;;  %4936 = vst [vmem:[#allocation48_spill] sm:$0xff] %v4198_v37 }
 0xc52   :  { %v4150_v18 = vsel %vm1523_vm13, 4, %v3968_v38  ;;  %vm2576_vm14 = vmpackc.low %vm1525_vm12, %vm1525_vm12  ;;  %v4153_v1 = vsel %vm2393_vm9, %v3970_v62, %v2376_v35  ;;  %v4166_v38 = vld [vmem:[#allocation7 + $0x2c] ss:$16 sps:$4 sm:$0xff]   ;;  %v4171_v62 = vld [vmem:[#allocation7 + $0x20] ss:$16 sps:$4 sm:$0xff]  }
 0xc53   :  { %2577 = vmatmul.mubr.msk.bf16.vlgmr.msra.gmra.mrb[32].mxu0 %vm2576_vm14, %v4852_v9  ;;  %2579 = vmatmul.mubr.msk.bf16.vlgmr.msra.gmra.mrb[32].mxu1 %vm2576_vm14, %v4852_v9  ;;  %v4201_v35 = vld [vmem:[#allocation7 + $0x84] ss:$16 sps:$4 sm:$0xff]   ;;  %vm1802_vm4 = vcmp.eq.s32.totalorder %v4150_v18, 7 }
 0xc54   :  { %1612 = vmatpush1.bf16.msra.mxu0 %v4157_v5  ;;  %1653 = vmatpush1.bf16.msra.mxu1 %v4160_v12  ;;  %4937 = vst [vmem:[#allocation49_spill] sm:$0xff] %v4201_v35 }
 0xc55   :  { %1613 = vmatprep.subr.bf16.mxu0 %v4163_v31  ;;  %1654 = vmatprep.subr.bf16.mxu1 %v4166_v38 }
 0xc56   :  { %1643 = vmatprep.mubr.bf16.mxu0 %v4841_v3  ;;  %1684 = vmatprep.mubr.bf16.mxu1 %v4841_v3 }
 0xc58   :  { %1614 = vmatpush1.bf16.msra.mxu0 %v4171_v62  ;;  %1655 = vmatpush1.bf16.msra.mxu1 %v4174_v26 }
 0xc59   :  { %1615 = vmatprep.subr.bf16.mxu0 %v4177_v7  ;;  %1656 = vmatprep.subr.bf16.mxu1 %v4180_v33 }
 0xc5c   :  { %1616 = vmatpush1.bf16.msra.mxu0 %v4183_v44  ;;  %1657 = vmatpush1.bf16.msra.mxu1 %v4186_v28 }
 0xc5d   :  { %1617 = vmatprep.subr.bf16.mxu0 %v4189_v11  ;;  %1658 = vmatprep.subr.bf16.mxu1 %v4192_v23  ;;  %v4210_v23 = vld [vmem:[#allocation7 + $0x88] ss:$16 sps:$4 sm:$0xff]  }
 0xc5e   :  { %4940 = vst [vmem:[#allocation52_spill] sm:$0xff] %v4210_v23 }
 0xc60   :  { %1618 = vmatpush1.bf16.msra.mxu0 %v4195_v29  ;;  %1659 = vmatpush1.bf16.msra.mxu1 %v4198_v37  ;;  %v4213_v29 = vld [vmem:[#allocation7 + $0xa4] ss:$16 sps:$4 sm:$0xff]   ;;  %v4216_v37 = vld [vmem:[#allocation7 + $0xac] ss:$16 sps:$4 sm:$0xff]  }
 0xc61   :  { %1619 = vmatprep.subr.bf16.mxu0 %v4201_v35  ;;  %1660 = vmatprep.subr.bf16.mxu1 %v4204_v14  ;;  %4941 = vst [vmem:[#allocation53_spill] sm:$0xff] %v4213_v29  ;;  %4942 = vst [vmem:[#allocation54_spill] sm:$0xff] %v4216_v37  ;;  %v4219_v35 = vld [vmem:[#allocation7 + $0xa0] ss:$16 sps:$4 sm:$0xff]   ;;  %v4222_v14 = vld [vmem:[#allocation7 + $0xa8] ss:$16 sps:$4 sm:$0xff]  }
 0xc62   :  { %4943 = vst [vmem:[#allocation55_spill] sm:$0xff] %v4219_v35  ;;  %4944 = vst [vmem:[#allocation56_spill] sm:$0xff] %v4222_v14 }
 0xc64   :  { %1620 = vmatpush1.bf16.msra.mxu0 %v4207_v17  ;;  %1661 = vmatpush1.bf16.msra.mxu1 %v4210_v23  ;;  %v4225_v17 = vld [vmem:[#allocation7 + $0xc4] ss:$16 sps:$4 sm:$0xff]   ;;  %v4228_v23 = vld [vmem:[#allocation7 + $0xcc] ss:$16 sps:$4 sm:$0xff]  }
 0xc65   :  { %1621 = vmatprep.subr.bf16.mxu0 %v4213_v29  ;;  %1662 = vmatprep.subr.bf16.mxu1 %v4216_v37  ;;  %4945 = vst [vmem:[#allocation57_spill] sm:$0xff] %v4225_v17  ;;  %4946 = vst [vmem:[#allocation58_spill] sm:$0xff] %v4228_v23  ;;  %v4231_v29 = vld [vmem:[#allocation7 + $0xc0] ss:$16 sps:$4 sm:$0xff]   ;;  %v4234_v37 = vld [vmem:[#allocation7 + $0xc8] ss:$16 sps:$4 sm:$0xff]  }
 0xc66   :  { %4947 = vst [vmem:[#allocation59_spill] sm:$0xff] %v4231_v29  ;;  %4948 = vst [vmem:[#allocation60_spill] sm:$0xff] %v4234_v37 }
 0xc68   :  { %1622 = vmatpush1.bf16.msra.mxu0 %v4219_v35  ;;  %1663 = vmatpush1.bf16.msra.mxu1 %v4222_v14  ;;  %v4237_v35 = vld [vmem:[#allocation7 + $0xe4] ss:$16 sps:$4 sm:$0xff]   ;;  %v4240_v14 = vld [vmem:[#allocation7 + $0xec] ss:$16 sps:$4 sm:$0xff]  }
 0xc69   :  { %1623 = vmatprep.subr.bf16.mxu0 %v4225_v17  ;;  %1664 = vmatprep.subr.bf16.mxu1 %v4228_v23  ;;  %4949 = vst [vmem:[#allocation61_spill] sm:$0xff] %v4237_v35  ;;  %4950 = vst [vmem:[#allocation62_spill] sm:$0xff] %v4240_v14  ;;  %v4243_v17 = vld [vmem:[#allocation7 + $0xe0] ss:$16 sps:$4 sm:$0xff]   ;;  %v4246_v23 = vld [vmem:[#allocation7 + $0xe8] ss:$16 sps:$4 sm:$0xff]  }
 0xc6a   :  { %4951 = vst [vmem:[#allocation63_spill] sm:$0xff] %v4243_v17  ;;  %4952 = vst [vmem:[#allocation64_spill] sm:$0xff] %v4246_v23 }
 0xc6c   :  { %1624 = vmatpush1.bf16.msra.mxu0 %v4231_v29  ;;  %1665 = vmatpush1.bf16.msra.mxu1 %v4234_v37 }
 0xc6d   :  { %1625 = vmatprep.subr.bf16.mxu0 %v4237_v35  ;;  %1666 = vmatprep.subr.bf16.mxu1 %v4240_v14  ;;  %v4253_v35 = vld [vmem:[#allocation10] sm:$0xff]  }
 0xc6e   :  { %4953 = vst [vmem:[#allocation65_spill] sm:$0xff] %v4253_v35 }
 0xc70   :  { %1626 = vmatpush1.bf16.msra.mxu0 %v4243_v17  ;;  %1667 = vmatpush1.bf16.msra.mxu1 %v4246_v23 }
 0xc71   :  { %2723 = vmatprep.subr.bf16.mxu0 %v4906_v8  ;;  %1809 = vmatprep.subr.bf16.mxu1 %v4007_v61  ;;  %v4262_v61 = vld [vmem:[#allocation10 + $0x8] sm:$0xff]  }
 0xc72   :  { %4954 = vst [vmem:[#allocation66_spill] sm:$0xff] %v4262_v61 }
 0xc73   :  { %1644 = vmatmul.mubr.bf16.vlgmr.msra.gmra.mrb[36].mxu0 %v4089_v45  ;;  %1685 = vmatmul.mubr.bf16.vlgmr.msra.gmra.mrb[36].mxu1 %v4089_v45  ;;  %v4268_v45 = vld [vmem:[#allocation10 + $0x10] sm:$0xff]  }
 0xc74   :  { %2724 = vmatpush3.bf16.msra.mxu0 %v4253_v35  ;;  %2739 = vmatprep.mubr.msk.bf16.mxu0 %vm3366_vm0, %v4906_v8  ;;  %4955 = vst [vmem:[#allocation68_spill] sm:$0xff] %v4268_v45 }
 0xc75   :  { %2725 = vmatprep.subr.bf16.mxu0 %v4906_v8  ;;  %1810 = vmatpush1.bf16.msra.mxu1 %v4016_v15 }
 0xc76   :  { %1811 = vmatprep.subr.bf16.mxu1 %v4019_v20  ;;  %1841 = vmatprep.mubr.bf16.mxu1 %v4841_v3  ;;  %v4274_v20 = vld [vmem:[#allocation10 + $0x18] sm:$0xff]  }
 0xc77   :  { %4956 = vst [vmem:[#allocation69_spill] sm:$0xff] %v4274_v20 }
 0xc78   :  { %2726 = vmatpush3.bf16.msra.mxu0 %v4262_v61 }
 0xc79   :  { %2727 = vmatprep.subr.bf16.mxu0 %v4906_v8  ;;  %1812 = vmatpush1.bf16.msra.mxu1 %v4025_v6 }
 0xc7a   :  { %1813 = vmatprep.subr.bf16.mxu1 %v4028_v2  ;;  %v4280_v2 = vld [vmem:[#allocation10 + $0x20] sm:$0xff]  }
 0xc7b   :  { %4957 = vst [vmem:[#allocation70_spill] sm:$0xff] %v4280_v2 }
 0xc7c   :  { %2728 = vmatpush3.bf16.msra.mxu0 %v4268_v45 }
 0xc7d   :  { %2729 = vmatprep.subr.bf16.mxu0 %v4906_v8  ;;  %1814 = vmatpush1.bf16.msra.mxu1 %v4033_v22 }
 0xc7e   :  { %1815 = vmatprep.subr.bf16.mxu1 %v4036_v4  ;;  %v4286_v4 = vld [vmem:[#allocation10 + $0x28] sm:$0xff]  }
 0xc7f   :  { %4958 = vst [vmem:[#allocation71_spill] sm:$0xff] %v4286_v4 }
 0xc80   :  { %2730 = vmatpush3.bf16.msra.mxu0 %v4274_v20 }
 0xc81   :  { %2731 = vmatprep.subr.bf16.mxu0 %v4906_v8  ;;  %1816 = vmatpush1.bf16.msra.mxu1 %v4041_v10 }
 0xc82   :  { %1817 = vmatprep.subr.bf16.mxu1 %v4044_v13  ;;  %v4292_v13 = vld [vmem:[#allocation10 + $0x30] sm:$0xff]  }
 0xc83   :  { %4959 = vst [vmem:[#allocation72_spill] sm:$0xff] %v4292_v13 }
 0xc84   :  { %2732 = vmatpush3.bf16.msra.mxu0 %v4280_v2 }
 0xc85   :  { %2733 = vmatprep.subr.bf16.mxu0 %v4906_v8  ;;  %1818 = vmatpush1.bf16.msra.mxu1 %v4049_v19 }
 0xc86   :  { %1819 = vmatprep.subr.bf16.mxu1 %v4052_v21  ;;  %v4298_v21 = vld [vmem:[#allocation10 + $0x38] sm:$0xff]  }
 0xc87   :  { %4960 = vst [vmem:[#allocation73_spill] sm:$0xff] %v4298_v21 }
 0xc88   :  { %2734 = vmatpush3.bf16.msra.mxu0 %v4286_v4 }
 0xc89   :  { %2735 = vmatprep.subr.bf16.mxu0 %v4906_v8  ;;  %1820 = vmatpush1.bf16.msra.mxu1 %v4057_v25 }
 0xc8a   :  { %1821 = vmatprep.subr.bf16.mxu1 %v4060_v27 }
 0xc8c   :  { %2736 = vmatpush3.bf16.msra.mxu0 %v4292_v13 }
 0xc8d   :  { %2737 = vmatprep.subr.bf16.mxu0 %v4906_v8  ;;  %1822 = vmatpush1.bf16.msra.mxu1 %v4065_v32 }
 0xc8e   :  { %1823 = vmatprep.subr.bf16.mxu1 %v4068_v34 }
 0xc90   :  { %2738 = vmatpush3.bf16.msra.mxu0 %v4298_v21 }
 0xc91   :  { %1850 = vmatprep.subr.bf16.mxu0 %v4072_v39  ;;  %1824 = vmatpush1.bf16.msra.mxu1 %v4075_v41 }
 0xc92   :  { %1891 = vmatprep.subr.bf16.mxu1 %v4078_v43 }
 0xd26   :  { %v1563_v27 = vpop.f32.mrb[32].mxu0  ;;  %v1604_v25 = vpop.f32.mrb[32].mxu1 }
 0xd27   :  { %v1565_v4 = vpop.f32.mrb[33].mxu0  ;;  %v1606_v13 = vpop.f32.mrb[33].mxu1 }
 0xd28   :  { %v1567_v19 = vpop.f32.mrb[34].mxu0  ;;  %v1608_v2 = vpop.f32.mrb[34].mxu1 }
 0xd29   :  { %v1568_v10 = vpop.f32.mrb[35].mxu0  ;;  %v1609_v32 = vpop.f32.mrb[35].mxu1 }
 0xd46   :  { %v1645_v20 = vpop.f32.mrb[36].mxu0  ;;  %v1686_v34 = vpop.f32.mrb[36].mxu1 }
 0xd47   :  { %v1646_v22 = vadd.f32 %v1645_v20, %v1563_v27  ;;  %v1687_v45 = vadd.f32 %v1686_v34, %v1604_v25  ;;  %v1647_v6 = vpop.f32.mrb[37].mxu0  ;;  %v1688_v21 = vpop.f32.mrb[37].mxu1 }
 0xd48   :  { %v1648_v61 = vadd.f32 %v1647_v6, %v1565_v4  ;;  %v1689_v39 = vadd.f32 %v1688_v21, %v1606_v13  ;;  %v1649_v15 = vpop.f32.mrb[38].mxu0  ;;  %v1690_v41 = vpop.f32.mrb[38].mxu1 }
 0xd49   :  { %v1693_v43 = vadd.f32 %v1646_v22, %v3802_v40  ;;  %v1650_v35 = vpop.f32.mrb[39].mxu0  ;;  %v1691_v8 = vpop.f32.mrb[39].mxu1  ;;  %v1695_v25 = vadd.f32 %v1687_v45, %v3813_v46  ;;  %v1781_v45 = vld [vmem:[#allocation11 + $0x18] sm:$0xff] }
 0xd4a   :  { %v1694_v23 = vadd.f32 %v1648_v61, %v3804_v16  ;;  %v1696_v10 = vadd.f32 %v1689_v39, %v3809_v24 }
 0xd4b   :  { %v2580_v19 = vmul.f32 -1.442695, %v1693_v43 }
 0xd4c   :  { %v2581_v2 = vmul.f32 -1.442695, %v1694_v23  ;;  %v2582_v20 = vmul.f32 -1.442695, %v1696_v10 }
 0xd4d   :  { %2962 = vpow2.f32 %v2580_v19  ;;  %v4335_v19 = vld [vmem:[%s4655_s7] ss:$0 sm:$0xff]  ;;  %s3372_s7 = smov [#allocation17]  }
 0xd4e   :  { %2964 = vpow2.f32 %v2581_v2  ;;  %s2452_s16 = sshll.u32 %s3372_s7, 4  ;;  %s2453_s16 = int_to_ptr.vmem [resolvable:$true] %s2452_s16 }
 0xd4f   :  { %2966 = vpow2.f32 %v2582_v20  ;;  %s3251_s17 = scalar_lea.vmem %s2453_s16, 128  ;;  %p3256_p7 = scmp.lt.s32.totalorder %s2453_s16, %s2453_s16 }
 0xd50   :  { %2968 = vtanh.f32 %v1695_v25  ;;  %p3252_p6 = scmp.ne.s32.totalorder %s2453_s16, %s3251_s17  ;;  %p3257_p8 = scmp.lt.s32.totalorder %s3251_s17, %s3251_s17 }
 0xd52   :  { %p3258_p9 = por %p3257_p8, %p3256_p7 }
 0xd54   :  { %p3259_p10 = pnand %p3258_p9, %p3252_p6 }
 0xd57   :  { %v2963_v27 = vpop.eup %2962 }
 0xd58   :  { %v2965_v6 = vpop.eup %2964  ;;  %v1700_v4 = vadd.f32 1.0, %v2963_v27 }
 0xd59   :  { %v1706_v15 = vadd.f32 1.0, %v2965_v6  ;;  %v2967_v8 = vpop.eup %2966 }
 0xd5a   :  { %2970 = vrcp.f32 %v1700_v4  ;;  %v2969_v22 = vpop.eup %2968  ;;  %v1713_v32 = vadd.f32 1.0, %v2967_v8 }
 0xd5b   :  { %2972 = vrcp.f32 %v1706_v15 }
 0xd5c   :  { %2974 = vrcp.f32 %v1713_v32 }
 0xd64   :  { %v2971_v61 = vpop.eup %2970 }
 0xd65   :  { %v2973_v13 = vpop.eup %2972  ;;  %v1717_v21 = vmul.f32 %v2971_v61, %v2969_v22 }
 0xd66   :  { %v1716_v34 = vmul.f32 %v2973_v13, %v4086_v30  ;;  %v2975_v41 = vpop.eup %2974 }
 0xd68   :  { %v4309_v39 = vadd.f32 %v1717_v21, %v1716_v34 }
 0xd6a   :  { %2976 = vtanh.f32 %v4309_v39 }
 0xd74   :  { %v2977_v43 = vpop.eup %2976 }
 0xd75   :  { %v1720_v23 = vmul.f32 %v2977_v43, %v2975_v41 }
 0xd77   :  { %v4312_v35 = vpack.c.bf16 %v1720_v23, %v1720_v23 }
 0xd79   :  { %2740 = vmatmul.mubr.bf16.vlgmr.msra.gmra.mrb[40].mxu0 %v4312_v35 }
 0xd7a   :  { %1851 = vmatpush1.bf16.msra.mxu0 %v4092_v47  ;;  %1882 = vmatprep.mubr.bf16.mxu0 %v4841_v3 }
 0xd7b   :  { %1852 = vmatprep.subr.bf16.mxu0 %v4096_v48 }
 0xd7e   :  { %1853 = vmatpush1.bf16.msra.mxu0 %v4099_v0 }
 0xd7f   :  { %1854 = vmatprep.subr.bf16.mxu0 %v4102_v49 }
 0xd82   :  { %1855 = vmatpush1.bf16.msra.mxu0 %v4105_v50 }
 0xd83   :  { %1856 = vmatprep.subr.bf16.mxu0 %v4108_v51 }
 0xd86   :  { %1857 = vmatpush1.bf16.msra.mxu0 %v4111_v52 }
 0xd87   :  { %1858 = vmatprep.subr.bf16.mxu0 %v4114_v53 }
 0xd8a   :  { %1859 = vmatpush1.bf16.msra.mxu0 %v4117_v54 }
 0xd8b   :  { %1860 = vmatprep.subr.bf16.mxu0 %v4120_v55 }
 0xd8e   :  { %1861 = vmatpush1.bf16.msra.mxu0 %v4123_v56 }
 0xd8f   :  { %1862 = vmatprep.subr.bf16.mxu0 %v4126_v57 }
 0xd92   :  { %1863 = vmatpush1.bf16.msra.mxu0 %v4129_v58 }
 0xd93   :  { %1864 = vmatprep.subr.bf16.mxu0 %v4132_v59 }
 0xd96   :  { %1865 = vmatpush1.bf16.msra.mxu0 %v4135_v63 }
 0xd97   :  { %1932 = vmatprep.subr.bf16.mxu0 %v4138_v60 }
 0xe4c   :  { %v1756_v30 = vpop.f32.mrb[40].mxu0 }
 0xe4d   :  { %v4338_v2 = vadd.f32 %v4335_v19, %v1756_v30  ;;  %v2741_v10 = vpop.f32.mrb[41].mxu0 }
 0xe4e   :  { %v1759_v20 = vpop.f32.mrb[42].mxu0 }
 0xe4f   :  { %v2742_v25 = vpop.f32.mrb[43].mxu0  ;;  %v1782_v27 = vadd.f32 %v1781_v45, %v4338_v2  ;;  %v4963_v20 = vld [vmem:[#allocation48_spill] sm:$0xff] }
 0xe50   :  { %v4964_v25 = vld [vmem:[#allocation49_spill] sm:$0xff] }
 0xe51   :  { %1783 = vmax.xlane.f32.xlu1 %v1782_v27 }
 0xede   :  { %v1784_v6 = vpop.xlane.xlu1 %1783 }
 0xedf   :  { %vm1785_vm15 = vcmp.eq.f32.partialorder %v1782_v27, %v1784_v6  ;;  %v4965_v27 = vld [vmem:[#allocation51_spill] sm:$0xff]  ;;  %v4966_v6 = vld [vmem:[#allocation50_spill] sm:$0xff] }
 0xee0   :  { %v1786_v4 = vsel %vm1785_vm15, %v3611_v36, 128 }
 0xee1   :  { %v1788_v15 = vshra.s32 %v1786_v4, 16  ;;  %v1787_v22 = vand.u32 65535, %v1786_v4  ;;  %v4967_v4 = vld [vmem:[#allocation52_spill] sm:$0xff] }
 0xee3   :  { %v1790_v8 = vcvt.s32.f32 %v1788_v15  ;;  %v1789_v13 = vcvt.s32.f32 %v1787_v22  ;;  %v4968_v15 = vld [vmem:[#allocation53_spill] sm:$0xff]  ;;  %v4970_v22 = vld [vmem:[#allocation55_spill] sm:$0xff] }
 0xee5   :  { %1791 = vmin.xlane.f32.xlu0 %v1790_v8 }
 0xf72   :  { %v1792_v61 = vpop.xlane.xlu0 %1791 }
 0xf73   :  { %vm1793_vm2 = vcmp.eq.f32.partialorder %v1790_v8, %v1792_v61  ;;  %v1798_v32 = vcvt.f32.s32 %v1792_v61  ;;  %v4969_v8 = vld [vmem:[#allocation54_spill] sm:$0xff]  ;;  %v4971_v61 = vld [vmem:[#allocation56_spill] sm:$0xff] }
 0xf74   :  { %v1794_v21 = vsel %vm1793_vm2, %v1789_v13, inf  ;;  %v4972_v13 = vld [vmem:[#allocation57_spill] sm:$0xff] }
 0xf75   :  { %1795 = vmin.xlane.f32.xlu1 %v1794_v21  ;;  %v1799_v41 = vshll.u32 %v1798_v32, 16  ;;  %v4973_v21 = vld [vmem:[#allocation58_spill] sm:$0xff]  ;;  %v4974_v32 = vld [vmem:[#allocation61_spill] sm:$0xff] }
0x1002   :  { %v1796_v34 = vpop.xlane.xlu1 %1795 }
0x1003   :  { %v1797_v43 = vcvt.f32.s32 %v1796_v34  ;;  %v4975_v34 = vld [vmem:[#allocation64_spill] sm:$0xff] }
0x1005   :  { %v1800_v23 = vadd.s32 %v1799_v41, %v1797_v43  ;;  %v4976_v41 = vmov 0.0   ;;  %v4977_v43 = vld [vmem:[#allocation27_spill] sm:$0xff] }
0x1007   :  { %vm1801_vm5 = vcmp.eq.s32.totalorder %v1800_v23, 1  ;;  %v2380_v30 = vrot.slane %v1800_v23, %v3961_v42  ;;  %vm1805_vm6 = vcmp.eq.s32.totalorder %v3611_v36, %v1800_v23  ;;  %v4978_v23 = vld [vmem:[#allocation65_spill] sm:$0xff] }
0x1008   :  { %vm1803_vm7 = vmand %vm1801_vm5, %vm1802_vm4 }
0x1009   :  { %v4346_v45 = vsel %vm1803_vm7, 5, %v4150_v18  ;;  %vm2584_vm8 = vmpackc.low %vm1805_vm6, %vm1805_vm6  ;;  %v4349_v10 = vsel %vm2395_vm3, %v4153_v1, %v2380_v30  ;;  %v4961_v18 = vld [vmem:[#allocation47_spill] sm:$0xff]  ;;  %v4962_v1 = vld [vmem:[#allocation46_spill] sm:$0xff] }
0x100a   :  { %2585 = vmatmul.mubr.msk.bf16.vlgmr.msra.gmra.mrb[40].mxu1 %vm2584_vm8, %v4852_v9  ;;  %2587 = vmatmul.mubr.msk.bf16.vlgmr.msra.gmra.mrb[44].mxu0 %vm2584_vm8, %v4852_v9  ;;  %v4979_v30 = vld [vmem:[#allocation29_spill] sm:$0xff]  ;;  %vm2082_vm11 = vcmp.eq.s32.totalorder %v4346_v45, 7 }
0x100b   :  { %1892 = vmatpush1.bf16.msra.mxu1 %v4157_v5  ;;  %1933 = vmatpush1.bf16.msra.mxu0 %v4160_v12 }
0x100c   :  { %1893 = vmatprep.subr.bf16.mxu1 %v4163_v31  ;;  %1934 = vmatprep.subr.bf16.mxu0 %v4166_v38 }
0x100d   :  { %1923 = vmatprep.mubr.bf16.mxu1 %v4841_v3  ;;  %1964 = vmatprep.mubr.bf16.mxu0 %v4841_v3 }
0x100f   :  { %1894 = vmatpush1.bf16.msra.mxu1 %v4171_v62  ;;  %1935 = vmatpush1.bf16.msra.mxu0 %v4174_v26 }
0x1010   :  { %1895 = vmatprep.subr.bf16.mxu1 %v4177_v7  ;;  %1936 = vmatprep.subr.bf16.mxu0 %v4180_v33 }
0x1013   :  { %1896 = vmatpush1.bf16.msra.mxu1 %v4183_v44  ;;  %1937 = vmatpush1.bf16.msra.mxu0 %v4186_v28 }
0x1014   :  { %1897 = vmatprep.subr.bf16.mxu1 %v4189_v11  ;;  %1938 = vmatprep.subr.bf16.mxu0 %v4961_v18 }
0x1017   :  { %1898 = vmatpush1.bf16.msra.mxu1 %v4962_v1  ;;  %1939 = vmatpush1.bf16.msra.mxu0 %v4963_v20 }
0x1018   :  { %1899 = vmatprep.subr.bf16.mxu1 %v4964_v25  ;;  %1940 = vmatprep.subr.bf16.mxu0 %v4965_v27 }
0x101b   :  { %1900 = vmatpush1.bf16.msra.mxu1 %v4966_v6  ;;  %1941 = vmatpush1.bf16.msra.mxu0 %v4967_v4 }
0x101c   :  { %1901 = vmatprep.subr.bf16.mxu1 %v4968_v15  ;;  %1942 = vmatprep.subr.bf16.mxu0 %v4969_v8 }
0x101f   :  { %1902 = vmatpush1.bf16.msra.mxu1 %v4970_v22  ;;  %1943 = vmatpush1.bf16.msra.mxu0 %v4971_v61 }
0x1020   :  { %1903 = vmatprep.subr.bf16.mxu1 %v4972_v13  ;;  %1944 = vmatprep.subr.bf16.mxu0 %v4973_v21 }
0x1023   :  { %1904 = vmatpush1.bf16.msra.mxu1 %v4231_v29  ;;  %1945 = vmatpush1.bf16.msra.mxu0 %v4234_v37  ;;  %v4990_v37 = vld [vmem:[#allocation70_spill] sm:$0xff] }
0x1024   :  { %1905 = vmatprep.subr.bf16.mxu1 %v4974_v32  ;;  %1946 = vmatprep.subr.bf16.mxu0 %v4240_v14  ;;  %v4985_v14 = vld [vmem:[#allocation33_spill] sm:$0xff]  ;;  %v4986_v32 = vld [vmem:[#allocation34_spill] sm:$0xff] }
0x1027   :  { %1906 = vmatpush1.bf16.msra.mxu1 %v4243_v17  ;;  %1947 = vmatpush1.bf16.msra.mxu0 %v4975_v34  ;;  %v4980_v17 = vld [vmem:[#allocation30_spill] sm:$0xff] }
0x1028   :  { %2743 = vmatprep.subr.bf16.mxu1 %v4976_v41  ;;  %2089 = vmatprep.subr.bf16.mxu0 %v4977_v43  ;;  %v4981_v34 = vld [vmem:[#allocation66_spill] sm:$0xff]  ;;  %v4982_v43 = vld [vmem:[#allocation31_spill] sm:$0xff] }
0x102a   :  { %1924 = vmatmul.mubr.bf16.vlgmr.msra.gmra.mrb[44].mxu1 %v4312_v35  ;;  %1965 = vmatmul.mubr.bf16.vlgmr.msra.gmra.mrb[48].mxu0 %v4312_v35  ;;  %v4983_v35 = vld [vmem:[#allocation32_spill] sm:$0xff] }
0x102b   :  { %2744 = vmatpush3.bf16.msra.mxu1 %v4978_v23  ;;  %2759 = vmatprep.mubr.msk.bf16.mxu1 %vm3366_vm0, %v4976_v41  ;;  %v4984_v23 = vld [vmem:[#allocation68_spill] sm:$0xff] }
0x102c   :  { %2745 = vmatprep.subr.bf16.mxu1 %v4976_v41  ;;  %2090 = vmatpush1.bf16.msra.mxu0 %v4979_v30  ;;  %v4987_v30 = vld [vmem:[#allocation69_spill] sm:$0xff] }
0x102d   :  { %2091 = vmatprep.subr.bf16.mxu0 %v4980_v17  ;;  %2121 = vmatprep.mubr.bf16.mxu0 %v4841_v3  ;;  %v4988_v17 = vld [vmem:[#allocation35_spill] sm:$0xff] }
0x102f   :  { %2746 = vmatpush3.bf16.msra.mxu1 %v4981_v34  ;;  %v4989_v34 = vld [vmem:[#allocation36_spill] sm:$0xff] }
0x1030   :  { %2747 = vmatprep.subr.bf16.mxu1 %v4976_v41  ;;  %2092 = vmatpush1.bf16.msra.mxu0 %v4982_v43  ;;  %v4991_v43 = vld [vmem:[#allocation37_spill] sm:$0xff] }
0x1031   :  { %2093 = vmatprep.subr.bf16.mxu0 %v4983_v35  ;;  %v4992_v35 = vld [vmem:[#allocation38_spill] sm:$0xff] }
0x1033   :  { %2748 = vmatpush3.bf16.msra.mxu1 %v4984_v23  ;;  %v4993_v23 = vld [vmem:[#allocation71_spill] sm:$0xff] }
0x1034   :  { %2749 = vmatprep.subr.bf16.mxu1 %v4976_v41  ;;  %2094 = vmatpush1.bf16.msra.mxu0 %v4985_v14  ;;  %v4994_v14 = vld [vmem:[#allocation39_spill] sm:$0xff] }
0x1035   :  { %2095 = vmatprep.subr.bf16.mxu0 %v4986_v32  ;;  %v4995_v32 = vld [vmem:[#allocation40_spill] sm:$0xff] }
0x1037   :  { %2750 = vmatpush3.bf16.msra.mxu1 %v4987_v30  ;;  %v4996_v30 = vld [vmem:[#allocation72_spill] sm:$0xff] }
0x1038   :  { %2751 = vmatprep.subr.bf16.mxu1 %v4976_v41  ;;  %2096 = vmatpush1.bf16.msra.mxu0 %v4988_v17  ;;  %v4998_v17 = vld [vmem:[#allocation28_spill] sm:$0xff] }
0x1039   :  { %2097 = vmatprep.subr.bf16.mxu0 %v4989_v34  ;;  %v4997_v34 = vld [vmem:[#allocation41_spill] sm:$0xff] }
0x103b   :  { %2752 = vmatpush3.bf16.msra.mxu1 %v4990_v37  ;;  %v4999_v37 = vld [vmem:[#allocation73_spill] sm:$0xff] }
0x103c   :  { %2753 = vmatprep.subr.bf16.mxu1 %v4976_v41  ;;  %2098 = vmatpush1.bf16.msra.mxu0 %v4991_v43  ;;  %v5000_v43 = vld [vmem:[#allocation42_spill] sm:$0xff] }
0x103d   :  { %2099 = vmatprep.subr.bf16.mxu0 %v4992_v35  ;;  %v5001_v35 = vld [vmem:[#allocation43_spill] sm:$0xff] }
0x103f   :  { %2754 = vmatpush3.bf16.msra.mxu1 %v4993_v23  ;;  %v5002_v23 = vld [vmem:[#allocation44_spill] sm:$0xff] }
0x1040   :  { %2755 = vmatprep.subr.bf16.mxu1 %v4976_v41  ;;  %2100 = vmatpush1.bf16.msra.mxu0 %v4994_v14 }
0x1041   :  { %2101 = vmatprep.subr.bf16.mxu0 %v4995_v32 }
0x1043   :  { %2756 = vmatpush3.bf16.msra.mxu1 %v4996_v30 }
0x1044   :  { %2757 = vmatprep.subr.bf16.mxu1 %v4976_v41  ;;  %2102 = vmatpush1.bf16.msra.mxu0 %v4997_v34 }
0x1045   :  { %2103 = vmatprep.subr.bf16.mxu0 %v4998_v17 }
0x1047   :  { %2758 = vmatpush3.bf16.msra.mxu1 %v4999_v37 }
0x1048   :  { %2130 = vmatprep.subr.bf16.mxu1 %v5000_v43  ;;  %2104 = vmatpush1.bf16.msra.mxu0 %v5001_v35 }
0x1049   :  { %2171 = vmatprep.subr.bf16.mxu0 %v5002_v23 }
0x10dd   :  { %v1843_v29 = vpop.f32.mrb[40].mxu1  ;;  %v1884_v14 = vpop.f32.mrb[44].mxu0 }
0x10de   :  { %v1845_v21 = vpop.f32.mrb[41].mxu1  ;;  %v1886_v32 = vpop.f32.mrb[45].mxu0 }
0x10df   :  { %v1847_v13 = vpop.f32.mrb[42].mxu1  ;;  %v1888_v30 = vpop.f32.mrb[46].mxu0 }
0x10e0   :  { %v1848_v61 = vpop.f32.mrb[43].mxu1  ;;  %v1889_v41 = vpop.f32.mrb[47].mxu0 }
0x10fd   :  { %v1925_v22 = vpop.f32.mrb[44].mxu1  ;;  %v1966_v34 = vpop.f32.mrb[48].mxu0 }
0x10fe   :  { %v1926_v8 = vadd.f32 %v1925_v22, %v1843_v29  ;;  %v1967_v17 = vadd.f32 %v1966_v34, %v1884_v14  ;;  %v1927_v15 = vpop.f32.mrb[45].mxu1  ;;  %v1968_v37 = vpop.f32.mrb[49].mxu0 }
0x10ff   :  { %v1928_v4 = vadd.f32 %v1927_v15, %v1845_v21  ;;  %v1969_v43 = vadd.f32 %v1968_v37, %v1886_v32  ;;  %v1929_v6 = vpop.f32.mrb[46].mxu1  ;;  %v1970_v35 = vpop.f32.mrb[50].mxu0 }
0x1100   :  { %v1973_v23 = vadd.f32 %v1926_v8, %v3802_v40  ;;  %v1930_v27 = vpop.f32.mrb[47].mxu1  ;;  %v1971_v25 = vpop.f32.mrb[51].mxu0  ;;  %v1975_v22 = vadd.f32 %v1967_v17, %v3813_v46 }
0x1101   :  { %v1974_v20 = vadd.f32 %v1928_v4, %v3804_v16  ;;  %v1976_v61 = vadd.f32 %v1969_v43, %v3809_v24 }
0x1102   :  { %v2588_v13 = vmul.f32 -1.442695, %v1973_v23  ;;  %v5005_v23 = vld [vmem:[#allocation26_spill] sm:$0xff] }
0x1103   :  { %v2589_v30 = vmul.f32 -1.442695, %v1974_v20  ;;  %v2590_v29 = vmul.f32 -1.442695, %v1976_v61 }
0x1104   :  { %2978 = vpow2.f32 %v2588_v13 }
0x1105   :  { %2980 = vpow2.f32 %v2589_v30 }
0x1106   :  { %2982 = vpow2.f32 %v2590_v29 }
0x1107   :  { %2984 = vtanh.f32 %v1975_v22 }
0x110e   :  { %v2979_v41 = vpop.eup %2978 }
0x110f   :  { %v2981_v15 = vpop.eup %2980  ;;  %v1980_v37 = vadd.f32 1.0, %v2979_v41 }
0x1110   :  { %v1986_v6 = vadd.f32 1.0, %v2981_v15  ;;  %v2983_v25 = vpop.eup %2982 }
0x1111   :  { %2986 = vrcp.f32 %v1980_v37  ;;  %v2985_v27 = vpop.eup %2984  ;;  %v1993_v21 = vadd.f32 1.0, %v2983_v25  ;;  %v5024_v25 = vld [vmem:[#allocation65_spill] sm:$0xff] }
0x1112   :  { %2988 = vrcp.f32 %v1986_v6  ;;  %v5023_v6 = vmov 0.0  }
0x1113   :  { %2990 = vrcp.f32 %v1993_v21  ;;  %v5029_v21 = vld [vmem:[#allocation71_spill] sm:$0xff] }
0x111b   :  { %v2987_v4 = vpop.eup %2986 }
0x111c   :  { %v2989_v8 = vpop.eup %2988  ;;  %v1997_v20 = vmul.f32 %v2987_v4, %v2985_v27  ;;  %v5025_v27 = vld [vmem:[#allocation66_spill] sm:$0xff]  ;;  %v5026_v4 = vld [vmem:[#allocation68_spill] sm:$0xff] }
0x111d   :  { %v1996_v14 = vmul.f32 %v2989_v8, %v4309_v39  ;;  %v2991_v34 = vpop.eup %2990  ;;  %v5027_v8 = vld [vmem:[#allocation69_spill] sm:$0xff] }
0x111f   :  { %v4429_v32 = vadd.f32 %v1997_v20, %v1996_v14  ;;  %v5028_v20 = vld [vmem:[#allocation70_spill] sm:$0xff]  ;;  %v5030_v14 = vld [vmem:[#allocation72_spill] sm:$0xff] }
0x1121   :  { %2992 = vtanh.f32 %v4429_v32 }
0x112b   :  { %v2993_v17 = vpop.eup %2992 }
0x112c   :  { %v2000_v43 = vmul.f32 %v2993_v17, %v2991_v34  ;;  %v5031_v34 = vld [vmem:[#allocation73_spill] sm:$0xff] }
0x112e   :  { %v4432_v35 = vpack.c.bf16 %v2000_v43, %v2000_v43 }
0x1130   :  { %2760 = vmatmul.mubr.bf16.vlgmr.msra.gmra.mrb[48].mxu1 %v4432_v35 }
0x1131   :  { %2131 = vmatpush1.bf16.msra.mxu1 %v4092_v47  ;;  %2162 = vmatprep.mubr.bf16.mxu1 %v4841_v3 }
0x1132   :  { %2132 = vmatprep.subr.bf16.mxu1 %v4096_v48  ;;  %v2061_v48 = vld [vmem:[#allocation11 + $0x20] sm:$0xff] }
0x1135   :  { %2133 = vmatpush1.bf16.msra.mxu1 %v4099_v0 }
0x1136   :  { %2134 = vmatprep.subr.bf16.mxu1 %v4102_v49 }
0x1139   :  { %2135 = vmatpush1.bf16.msra.mxu1 %v4105_v50 }
0x113a   :  { %2136 = vmatprep.subr.bf16.mxu1 %v4108_v51 }
0x113d   :  { %2137 = vmatpush1.bf16.msra.mxu1 %v4111_v52 }
0x113e   :  { %2138 = vmatprep.subr.bf16.mxu1 %v4114_v53 }
0x1141   :  { %2139 = vmatpush1.bf16.msra.mxu1 %v4117_v54 }
0x1142   :  { %2140 = vmatprep.subr.bf16.mxu1 %v4120_v55 }
0x1145   :  { %2141 = vmatpush1.bf16.msra.mxu1 %v4123_v56 }
0x1146   :  { %2142 = vmatprep.subr.bf16.mxu1 %v4126_v57  ;;  %v5003_v57 = vld [vmem:[#allocation67_spill] sm:$0xff] }
0x1149   :  { %2143 = vmatpush1.bf16.msra.mxu1 %v4129_v58  ;;  %v5004_v58 = vld [vmem:[#allocation45_spill] sm:$0xff] }
0x114a   :  { %2144 = vmatprep.subr.bf16.mxu1 %v4132_v59 }
0x114d   :  { %2145 = vmatpush1.bf16.msra.mxu1 %v4135_v63 }
0x114e   :  { %2212 = vmatprep.subr.bf16.mxu1 %v4138_v60 }
0x1203   :  { %v2036_v47 = vpop.f32.mrb[48].mxu1 }
0x1204   :  { %v4453_v0 = vadd.f32 %v4335_v19, %v2036_v47  ;;  %v2761_v49 = vpop.f32.mrb[49].mxu1 }
0x1205   :  { %v2039_v50 = vpop.f32.mrb[50].mxu1 }
0x1206   :  { %v2762_v51 = vpop.f32.mrb[51].mxu1  ;;  %v2062_v52 = vadd.f32 %v2061_v48, %v4453_v0 }
0x1208   :  { %2063 = vmax.xlane.f32.xlu0 %v2062_v52 }
0x1295   :  { %v2064_v53 = vpop.xlane.xlu0 %2063 }
0x1296   :  { %vm2065_vm9 = vcmp.eq.f32.partialorder %v2062_v52, %v2064_v53 }
0x1297   :  { %v2066_v54 = vsel %vm2065_vm9, %v3611_v36, 128 }
0x1298   :  { %v2068_v55 = vshra.s32 %v2066_v54, 16  ;;  %v2067_v59 = vand.u32 65535, %v2066_v54 }
0x129a   :  { %v2070_v56 = vcvt.s32.f32 %v2068_v55  ;;  %v2069_v60 = vcvt.s32.f32 %v2067_v59 }
0x129c   :  { %2071 = vmin.xlane.f32.xlu1 %v2070_v56 }
0x12a0   :  { %925 = vmax.xlane.f32.xlu1 %v5003_v57 }
0x12a4   :  { %1482 = vmax.xlane.f32.xlu1 %v5004_v58 }
0x12a8   :  { %2042 = vmax.xlane.f32.xlu1 %v4453_v0 }
0x1329   :  { %v2072_v63 = vpop.xlane.xlu1 %2071 }
0x132a   :  { %vm2073_vm10 = vcmp.eq.f32.partialorder %v2070_v56, %v2072_v63  ;;  %v2078_v13 = vcvt.f32.s32 %v2072_v63 }
0x132b   :  { %v2074_v39 = vsel %vm2073_vm10, %v2069_v60, inf }
0x132c   :  { %2075 = vmin.xlane.f32.xlu0 %v2074_v39  ;;  %v2079_v61 = vshll.u32 %v2078_v13, 16 }
0x1330   :  { %1202 = vmax.xlane.f32.xlu0 %v5005_v23 }
0x1334   :  { %1762 = vmax.xlane.f32.xlu0 %v4338_v2 }
0x13b9   :  { %v2076_v30 = vpop.xlane.xlu0 %2075 }
0x13ba   :  { %v2077_v29 = vcvt.f32.s32 %v2076_v30 }
0x13bc   :  { %v2080_v22 = vadd.s32 %v2079_v61, %v2077_v29 }
0x13be   :  { %vm2081_vm12 = vcmp.eq.s32.totalorder %v2080_v22, 1  ;;  %v2384_v41 = vrot.slane %v2080_v22, %v3961_v42  ;;  %vm2085_vm13 = vcmp.eq.s32.totalorder %v3611_v36, %v2080_v22 }
0x13bf   :  { %vm2083_vm14 = vmand %vm2081_vm12, %vm2082_vm11 }
0x13c0   :  { %vm2592_vm15 = vmpackc.low %vm2085_vm13, %vm2085_vm13  ;;  %v4466_v15 = vsel %vm2083_vm14, 6, %v4346_v45  ;;  %v4470_v37 = vsel %vm134_vm1, %v4349_v10, %v2384_v41  ;;  %v5019_v45 = vld [vmem:[#allocation61_spill] sm:$0xff]  ;;  %v5020_v10 = vld [vmem:[#allocation62_spill] sm:$0xff] }
0x13c1   :  { %2593 = vmatmul.mubr.msk.bf16.vlgmr.msra.gmra.mrb[52].mxu0 %vm2592_vm15, %v4852_v9  ;;  %2595 = vmatmul.mubr.msk.bf16.vlgmr.msra.gmra.mrb[52].mxu1 %vm2592_vm15, %v4852_v9  ;;  %v5006_v9 = vld [vmem:[#allocation48_spill] sm:$0xff] }
0x13c2   :  { %2172 = vmatpush1.bf16.msra.mxu0 %v4157_v5  ;;  %2213 = vmatpush1.bf16.msra.mxu1 %v4160_v12  ;;  %v5008_v5 = vld [vmem:[#allocation51_spill] sm:$0xff]  ;;  %v5009_v12 = vld [vmem:[#allocation50_spill] sm:$0xff] }
0x13c3   :  { %2173 = vmatprep.subr.bf16.mxu0 %v4163_v31  ;;  %2214 = vmatprep.subr.bf16.mxu1 %v4166_v38  ;;  %v5010_v31 = vld [vmem:[#allocation52_spill] sm:$0xff]  ;;  %v5011_v38 = vld [vmem:[#allocation53_spill] sm:$0xff] }
0x13c4   :  { %2203 = vmatprep.mubr.bf16.mxu0 %v4841_v3  ;;  %2244 = vmatprep.mubr.bf16.mxu1 %v4841_v3  ;;  %v5007_v3 = vld [vmem:[#allocation49_spill] sm:$0xff] }
0x13c6   :  { %2174 = vmatpush1.bf16.msra.mxu0 %v4171_v62  ;;  %2215 = vmatpush1.bf16.msra.mxu1 %v4174_v26  ;;  %v5012_v62 = vld [vmem:[#allocation54_spill] sm:$0xff]  ;;  %v5013_v26 = vld [vmem:[#allocation55_spill] sm:$0xff] }
0x13c7   :  { %2175 = vmatprep.subr.bf16.mxu0 %v4177_v7  ;;  %2216 = vmatprep.subr.bf16.mxu1 %v4180_v33  ;;  %v5014_v7 = vld [vmem:[#allocation56_spill] sm:$0xff]  ;;  %v5015_v33 = vld [vmem:[#allocation57_spill] sm:$0xff] }
0x13ca   :  { %2176 = vmatpush1.bf16.msra.mxu0 %v4183_v44  ;;  %2217 = vmatpush1.bf16.msra.mxu1 %v4186_v28  ;;  %v5016_v44 = vld [vmem:[#allocation58_spill] sm:$0xff]  ;;  %v5017_v28 = vld [vmem:[#allocation59_spill] sm:$0xff] }
0x13cb   :  { %2177 = vmatprep.subr.bf16.mxu0 %v4189_v11  ;;  %2218 = vmatprep.subr.bf16.mxu1 %v4961_v18  ;;  %v5018_v11 = vld [vmem:[#allocation60_spill] sm:$0xff]  ;;  %v5021_v18 = vld [vmem:[#allocation63_spill] sm:$0xff] }
0x13ce   :  { %2178 = vmatpush1.bf16.msra.mxu0 %v4962_v1  ;;  %2219 = vmatpush1.bf16.msra.mxu1 %v5006_v9  ;;  %v5022_v1 = vld [vmem:[#allocation64_spill] sm:$0xff] }
0x13cf   :  { %2179 = vmatprep.subr.bf16.mxu0 %v5007_v3  ;;  %2220 = vmatprep.subr.bf16.mxu1 %v5008_v5 }
0x13d2   :  { %2180 = vmatpush1.bf16.msra.mxu0 %v5009_v12  ;;  %2221 = vmatpush1.bf16.msra.mxu1 %v5010_v31 }
0x13d3   :  { %2181 = vmatprep.subr.bf16.mxu0 %v5011_v38  ;;  %2222 = vmatprep.subr.bf16.mxu1 %v5012_v62 }
0x13d6   :  { %2182 = vmatpush1.bf16.msra.mxu0 %v5013_v26  ;;  %2223 = vmatpush1.bf16.msra.mxu1 %v5014_v7 }
0x13d7   :  { %2183 = vmatprep.subr.bf16.mxu0 %v5015_v33  ;;  %2224 = vmatprep.subr.bf16.mxu1 %v5016_v44 }
0x13da   :  { %2184 = vmatpush1.bf16.msra.mxu0 %v5017_v28  ;;  %2225 = vmatpush1.bf16.msra.mxu1 %v5018_v11 }
0x13db   :  { %2185 = vmatprep.subr.bf16.mxu0 %v5019_v45  ;;  %2226 = vmatprep.subr.bf16.mxu1 %v5020_v10 }
0x13de   :  { %2186 = vmatpush1.bf16.msra.mxu0 %v5021_v18  ;;  %2227 = vmatpush1.bf16.msra.mxu1 %v5022_v1  ;;  %v4531_v1 = vpop.xlane.xlu1 %925 }
0x13df   :  { %2763 = vmatprep.subr.bf16.mxu0 %v5023_v6 }
0x13e1   :  { %2204 = vmatmul.mubr.bf16.vlgmr.msra.gmra.mrb[56].mxu0 %v4432_v35  ;;  %2245 = vmatmul.mubr.bf16.vlgmr.msra.gmra.mrb[56].mxu1 %v4432_v35 }
0x13e2   :  { %2764 = vmatpush3.bf16.msra.mxu0 %v5024_v25  ;;  %2779 = vmatprep.mubr.msk.bf16.mxu0 %vm3366_vm0, %v5023_v6  ;;  %v4535_v25 = vpop.xlane.xlu1 %1482 }
0x13e3   :  { %2765 = vmatprep.subr.bf16.mxu0 %v5023_v6 }
0x13e6   :  { %2766 = vmatpush3.bf16.msra.mxu0 %v5025_v27  ;;  %v927_v27 = vsub.f32 %v5003_v57, %v4531_v1 }
0x13e7   :  { %2767 = vmatprep.subr.bf16.mxu0 %v5023_v6 }
0x13ea   :  { %2768 = vmatpush3.bf16.msra.mxu0 %v5026_v4 }
0x13eb   :  { %2769 = vmatprep.subr.bf16.mxu0 %v5023_v6 }
0x13ee   :  { %2770 = vmatpush3.bf16.msra.mxu0 %v5027_v8  ;;  %v928_v8 = vmul.f32 1.442695, %v927_v27 }
0x13ef   :  { %2771 = vmatprep.subr.bf16.mxu0 %v5023_v6 }
0x13f2   :  { %2772 = vmatpush3.bf16.msra.mxu0 %v5028_v20  ;;  %v1484_v20 = vsub.f32 %v5004_v58, %v4535_v25 }
0x13f3   :  { %2773 = vmatprep.subr.bf16.mxu0 %v5023_v6 }
0x13f6   :  { %2774 = vmatpush3.bf16.msra.mxu0 %v5029_v21  ;;  %v4545_v21 = vpop.xlane.xlu1 %2042 }
0x13f7   :  { %2775 = vmatprep.subr.bf16.mxu0 %v5023_v6 }
0x13fa   :  { %2776 = vmatpush3.bf16.msra.mxu0 %v5030_v14 }
0x13fb   :  { %2777 = vmatprep.subr.bf16.mxu0 %v5023_v6  ;;  %v4533_v6 = vpop.xlane.xlu0 %1202 }
0x13fe   :  { %2778 = vmatpush3.bf16.msra.mxu0 %v5031_v34 }
0x13ff   :  { %v4541_v4 = vpop.xlane.xlu0 %1762 }
0x1400   :  { %v1764_v34 = vsub.f32 %v4338_v2, %v4541_v4 }
0x1494   :  { %v2123_v17 = vpop.f32.mrb[52].mxu0  ;;  %v2164_v43 = vpop.f32.mrb[52].mxu1 }
0x1495   :  { %v2125_v35 = vpop.f32.mrb[53].mxu0  ;;  %v2166_v47 = vpop.f32.mrb[53].mxu1 }
0x1496   :  { %v2127_v48 = vpop.f32.mrb[54].mxu0  ;;  %v2168_v49 = vpop.f32.mrb[54].mxu1 }
0x1497   :  { %v2128_v50 = vpop.f32.mrb[55].mxu0  ;;  %v2169_v51 = vpop.f32.mrb[55].mxu1  ;;  %v2341_v49 = vld [vmem:[#allocation11 + $0x28] sm:$0xff] }
0x14b4   :  { %v2205_v52 = vpop.f32.mrb[56].mxu0  ;;  %v2246_v53 = vpop.f32.mrb[56].mxu1 }
0x14b5   :  { %v2206_v54 = vadd.f32 %v2205_v52, %v2123_v17  ;;  %v2247_v55 = vadd.f32 %v2246_v53, %v2164_v43  ;;  %v2207_v56 = vpop.f32.mrb[57].mxu0  ;;  %v2248_v59 = vpop.f32.mrb[57].mxu1  ;;  %v1485_v17 = vmul.f32 1.442695, %v1484_v20  ;;  %v2044_v43 = vsub.f32 %v4453_v0, %v4545_v21 }
0x14b6   :  { %v2208_v63 = vadd.f32 %v2207_v56, %v2125_v35  ;;  %v2249_v60 = vadd.f32 %v2248_v59, %v2166_v47  ;;  %v2209_v39 = vpop.f32.mrb[58].mxu0  ;;  %v2250_v13 = vpop.f32.mrb[58].mxu1  ;;  %v1765_v35 = vmul.f32 1.442695, %v1764_v34 }
0x14b7   :  { %v2253_v30 = vadd.f32 %v2206_v54, %v3802_v40  ;;  %v2210_v61 = vpop.f32.mrb[59].mxu0  ;;  %v2251_v29 = vpop.f32.mrb[59].mxu1  ;;  %v2255_v12 = vadd.f32 %v2247_v55, %v3813_v46  ;;  %v2045_v47 = vmul.f32 1.442695, %v2044_v43 }
0x14b8   :  { %v2254_v22 = vadd.f32 %v2208_v63, %v3804_v16  ;;  %v2256_v3 = vadd.f32 %v2249_v60, %v3809_v24 }
0x14b9   :  { %v2596_v41 = vmul.f32 -1.442695, %v2253_v30 }
0x14ba   :  { %v2597_v9 = vmul.f32 -1.442695, %v2254_v22  ;;  %v2598_v5 = vmul.f32 -1.442695, %v2256_v3 }
0x14bb   :  { %2994 = vpow2.f32 %v2596_v41 }
0x14bc   :  { %2996 = vpow2.f32 %v2597_v9 }
0x14bd   :  { %2998 = vpow2.f32 %v2598_v5 }
0x14be   :  { %3000 = vtanh.f32 %v2255_v12 }
0x14c5   :  { %v2995_v31 = vpop.eup %2994 }
0x14c6   :  { %v2997_v38 = vpop.eup %2996  ;;  %v2260_v62 = vadd.f32 1.0, %v2995_v31 }
0x14c7   :  { %v2266_v26 = vadd.f32 1.0, %v2997_v38  ;;  %v2999_v40 = vpop.eup %2998 }
0x14c8   :  { %3002 = vrcp.f32 %v2260_v62  ;;  %v3001_v7 = vpop.eup %3000  ;;  %v2273_v28 = vadd.f32 1.0, %v2999_v40 }
0x14c9   :  { %3004 = vrcp.f32 %v2266_v26 }
0x14ca   :  { %3006 = vrcp.f32 %v2273_v28 }
0x14d2   :  { %v3003_v16 = vpop.eup %3002 }
0x14d3   :  { %v3005_v33 = vpop.eup %3004  ;;  %v2277_v44 = vmul.f32 %v3003_v16, %v3001_v7 }
0x14d4   :  { %v2276_v11 = vmul.f32 %v3005_v33, %v4429_v32  ;;  %v3007_v46 = vpop.eup %3006  ;;  %v1204_v32 = vsub.f32 %v5005_v23, %v4533_v6 }
0x14d6   :  { %v2278_v24 = vadd.f32 %v2277_v44, %v2276_v11  ;;  %v1205_v14 = vmul.f32 1.442695, %v1204_v32 }
0x14d8   :  { %3008 = vtanh.f32 %v2278_v24 }
0x14d9   :  { %3010 = vpow2.f32 %v928_v8 }
0x14da   :  { %3012 = vpow2.f32 %v1205_v14 }
0x14db   :  { %3014 = vpow2.f32 %v1485_v17 }
0x14dc   :  { %3016 = vpow2.f32 %v1765_v35 }
0x14dd   :  { %3018 = vpow2.f32 %v2045_v47 }
0x14e2   :  { %v3009_v45 = vpop.eup %3008 }
0x14e3   :  { %v2280_v10 = vmul.f32 %v3009_v45, %v3007_v46  ;;  %v3011_v55 = vpop.eup %3010 }
0x14e4   :  { %v3013_v56 = vpop.eup %3012 }
0x14e5   :  { %v2281_v18 = vpack.c.bf16 %v2280_v10, %v2280_v10  ;;  %v3015_v59 = vpop.eup %3014 }
0x14e6   :  { %v3017_v63 = vpop.eup %3016 }
0x14e7   :  { %2780 = vmatmul.mubr.bf16.vlgmr.msra.gmra.mrb[60].mxu0 %v2281_v18 }
0x15ba   :  { %v2316_v48 = vpop.f32.mrb[60].mxu0 }
0x15bb   :  { %v4552_v50 = vadd.f32 %v4335_v19, %v2316_v48  ;;  %v2781_v51 = vpop.f32.mrb[61].mxu0  ;;  %v3019_v19 = vpop.eup %3018 }
0x15bc   :  { %v2319_v52 = vpop.f32.mrb[62].mxu0 }
0x15bd   :  { %2322 = vmax.xlane.f32.xlu0 %v4552_v50  ;;  %v2782_v53 = vpop.f32.mrb[63].mxu0  ;;  %v2342_v54 = vadd.f32 %v2341_v49, %v4552_v50 }
0x15bf   :  { %2343 = vmax.xlane.f32.xlu1 %v2342_v54 }
0x15c1   :  { %930 = vadd.xlane.f32.xlu0 %v3011_v55 }
0x15c3   :  { %1207 = vadd.xlane.f32.xlu1 %v3013_v56 }
0x15c5   :  { %1487 = vadd.xlane.f32.xlu0 %v3015_v59 }
0x15c7   :  { %1767 = vadd.xlane.f32.xlu1 %v3017_v63 }
0x15c9   :  { %2047 = vadd.xlane.f32.xlu0 %v3019_v19 }
0x164a   :  { %v4556_v60 = vpop.xlane.xlu0 %2322 }
0x164b   :  { %v2324_v39 = vsub.f32 %v4552_v50, %v4556_v60 }
0x164c   :  { %v2344_v13 = vpop.xlane.xlu1 %2343 }
0x164d   :  { %v2325_v30 = vmul.f32 1.442695, %v2324_v39  ;;  %vm2345_vm0 = vcmp.eq.f32.partialorder %v2342_v54, %v2344_v13 }
0x164e   :  { %v2346_v61 = vsel %vm2345_vm0, %v3611_v36, 128  ;;  %v931_v29 = vpop.xlane.xlu0 %930 }
0x164f   :  { %3020 = vpow2.f32 %v2325_v30  ;;  %v2348_v22 = vshra.s32 %v2346_v61, 16 }
0x1650   :  { %3022 = vrcp.f32 %v931_v29  ;;  %v1208_v41 = vpop.xlane.xlu1 %1207 }
0x1651   :  { %v2350_v9 = vcvt.s32.f32 %v2348_v22  ;;  %3024 = vrcp.f32 %v1208_v41 }
0x1652   :  { %v1488_v3 = vpop.xlane.xlu0 %1487 }
0x1653   :  { %2351 = vmin.xlane.f32.xlu0 %v2350_v9  ;;  %3026 = vrcp.f32 %v1488_v3 }
0x1654   :  { %v4561_v5 = vpop.xlane.xlu1 %1767 }
0x1655   :  { %3028 = vrcp.f32 %v4561_v5 }
0x1656   :  { %v4564_v12 = vpop.xlane.xlu0 %2047 }
0x1657   :  { %3030 = vrcp.f32 %v4564_v12 }
0x1658   :  { %3032 = vlog2.f32 %v931_v29 }
0x1659   :  { %v3021_v31 = vpop.eup %3020  ;;  %3034 = vlog2.f32 %v1208_v41 }
0x165a   :  { %v3023_v36 = vpop.eup %3022  ;;  %2327 = vadd.xlane.f32.xlu1 %v3021_v31  ;;  %3036 = vlog2.f32 %v1488_v3 }
0x165b   :  { %v933_v38 = vmul.f32 %v3023_v36, %v3011_v55  ;;  %v3025_v62 = vpop.eup %3024 }
0x165c   :  { %v1210_v40 = vmul.f32 %v3025_v62, %v3013_v56 }
0x165d   :  { %v937_v26 = vmul.f32 %v933_v38, %v5003_v57  ;;  %v3027_v7 = vpop.eup %3026 }
0x165e   :  { %v1214_v16 = vmul.f32 %v1210_v40, %v5005_v23  ;;  %v1219_v33 = vadd.f32 %v1210_v40, %v933_v38  ;;  %v1490_v44 = vmul.f32 %v3027_v7, %v3015_v59  ;;  %v2347_v23 = vand.u32 65535, %v2346_v61 }
0x165f   :  { %938 = vadd.xlane.f32.xlu1 %v937_v26  ;;  %v3029_v28 = vpop.eup %3028 }
0x1660   :  { %1215 = vadd.xlane.f32.xlu0 %v1214_v16  ;;  %v1494_v11 = vmul.f32 %v1490_v44, %v5004_v58  ;;  %v1499_v24 = vadd.f32 %v1490_v44, %v1219_v33  ;;  %v1770_v46 = vmul.f32 %v3029_v28, %v3017_v63  ;;  %v2349_v20 = vcvt.s32.f32 %v2347_v23 }
0x1661   :  { %v3031_v45 = vpop.eup %3030 }
0x1662   :  { %v1774_v10 = vmul.f32 %v1770_v46, %v4338_v2  ;;  %v1779_v18 = vadd.f32 %v1770_v46, %v1499_v24  ;;  %v2050_v27 = vmul.f32 %v3031_v45, %v3019_v19  ;;  %v3033_v14 = vpop.eup %3032 }
0x1663   :  { %1495 = vadd.xlane.f32.xlu1 %v1494_v11  ;;  %v3035_v34 = vpop.eup %3034  ;;  %v935_v43 = vmul.f32 0.6931472, %v3033_v14 }
0x1664   :  { %1775 = vadd.xlane.f32.xlu0 %v1774_v10  ;;  %v2059_v57 = vadd.f32 %v2050_v27, %v1779_v18  ;;  %v2054_v32 = vmul.f32 %v2050_v27, %v4453_v0  ;;  %v3037_v2 = vpop.eup %3036  ;;  %v1212_v35 = vmul.f32 0.6931472, %v3035_v34 }
0x1665   :  { %v1492_v47 = vmul.f32 0.6931472, %v3037_v2  ;;  %v936_v0 = vadd.f32 %v935_v43, %v4531_v1 }
0x1666   :  { %v1213_v49 = vadd.f32 %v1212_v35, %v4533_v6 }
0x1667   :  { %v1493_v54 = vadd.f32 %v1492_v47, %v4535_v25 }
0x1668   :  { %2055 = vadd.xlane.f32.xlu0 %v2054_v32 }
0x16e0   :  { %v2352_v8 = vpop.xlane.xlu0 %2351 }
0x16e1   :  { %vm2353_vm1 = vcmp.eq.f32.partialorder %v2350_v9, %v2352_v8 }
0x16e2   :  { %v2354_v58 = vsel %vm2353_vm1, %v2349_v20, inf }
0x16e3   :  { %2355 = vmin.xlane.f32.xlu1 %v2354_v58 }
0x16e7   :  { %v2328_v17 = vpop.xlane.xlu1 %2327 }
0x16e8   :  { %3038 = vrcp.f32 %v2328_v17 }
0x16ec   :  { %v939_v48 = vpop.xlane.xlu1 %938 }
0x16ed   :  { %v1216_v51 = vpop.xlane.xlu0 %1215  ;;  %v940_v52 = vsub.f32 %v936_v0, %v939_v48 }
0x16ee   :  { %v1217_v53 = vsub.f32 %v1213_v49, %v1216_v51 }
0x16f0   :  { %v1496_v55 = vpop.xlane.xlu1 %1495  ;;  %v1218_v56 = vadd.f32 %v1217_v53, %v940_v52 }
0x16f1   :  { %v1497_v59 = vsub.f32 %v1493_v54, %v1496_v55 }
0x16f2   :  { %v3039_v63 = vpop.eup %3038 }
0x16f3   :  { %v4575_v19 = vadd.f32 %v1497_v59, %v1218_v56  ;;  %v2330_v39 = vmul.f32 %v3039_v63, %v3021_v31 }
0x16f5   :  { %v2334_v13 = vmul.f32 %v2330_v39, %v4552_v50  ;;  %v2339_v30 = vadd.f32 %v2330_v39, %v2059_v57 }
0x16f7   :  { %2335 = vadd.xlane.f32.xlu1 %v2334_v13  ;;  %2415 = vst [vmem:[#allocation17] sm:$0xff] %v2339_v30 }
0x16f8   :  { %3262 = shalt.err (!%p3259_p10)
}
0x16f9   :  { %s3263_s29 = scalar_lea.hbm %s4660_s12, 128 }
0x16fa   :  { %p3264_p11 = scmp.ne.s32.totalorder %s4660_s12, %s3263_s29  ;;  %p3267_p12 = scmp.lt.u32.totalorder %s3263_s29, %s4660_s12 }
0x16fc   :  { %p3269_p13 = pnand %p3267_p12, %p3264_p11 }
0x16fe   :  { %3272 = shalt.err (!%p3269_p13)
}
0x16ff   :  { %2455 = dma.vmem_to_hbm [thread:$0]  %s2453_s16, 128, %s4660_s12, [#allocation18]   ;;  %3040 = vlog2.f32 %v4561_v5  ;;  %v2358_v1 = vcvt.f32.s32 %v2352_v8  ;;  %vm2398_vm2 = vcmask 1045504   ;;  %vm2362_vm3 = vcmp.eq.s32.totalorder %v4466_v15, 7  ;;  %v1776_v5 = vpop.xlane.xlu0 %1775 }
0x1700   :  { %3042 = vlog2.f32 %v4564_v12  ;;  %s3373_s20 = smov [#allocation13]   ;;  %s3374_s26 = smov [#allocation14]   ;;  %vm2400_vm5 = vcmask 63488   ;;  %vm2406_vm7 = vcmask 57344  }
0x1701   :  { %v2359_v25 = vshll.u32 %v2358_v1, 16  ;;  %3044 = vlog2.f32 %v2328_v17  ;;  %s2422_s25 = sshll.u32 %s3373_s20, 4  ;;  %s2432_s12 = sshll.u32 %s3374_s26, 4  ;;  %s2423_s25 = int_to_ptr.vmem [resolvable:$true] %s2422_s25  ;;  %s4597_s12 = int_to_ptr.vmem [resolvable:$true] %s2432_s12 }
0x1702   :  { %s3273_s4 = scalar_lea.vmem %s2423_s25, 128  ;;  %p3278_p1 = scmp.lt.s32.totalorder %s2423_s25, %s2423_s25 }
0x1703   :  { %p3274_p0 = scmp.ne.s32.totalorder %s2423_s25, %s3273_s4  ;;  %p3279_p2 = scmp.lt.s32.totalorder %s3273_s4, %s3273_s4 }
0x1705   :  { %p3280_p3 = por %p3279_p2, %p3278_p1 }
0x1707   :  { %p3281_p4 = pnand %p3280_p3, %p3274_p0 }
0x1709   :  { %v3041_v22 = vpop.eup %3040 }
0x170a   :  { %v3043_v3 = vpop.eup %3042  ;;  %v1772_v31 = vmul.f32 0.6931472, %v3041_v22 }
0x1770   :  { %v2356_v6 = vpop.xlane.xlu1 %2355 }
0x1771   :  { %v2357_v50 = vcvt.f32.s32 %v2356_v6 }
0x1773   :  { %v2360_v61 = vadd.s32 %v2359_v25, %v2357_v50 }
0x1775   :  { %vm2361_vm4 = vcmp.eq.s32.totalorder %v2360_v61, 1  ;;  %v2388_v29 = vrot.slane %v2360_v61, %v3961_v42 }
0x1776   :  { %vm2363_vm6 = vmand %vm2361_vm4, %vm2362_vm3 }
0x1777   :  { %v2364_v41 = vsel %vm2363_vm6, 7, %v4466_v15  ;;  %v2399_v9 = vsel %vm2398_vm2, %v4470_v37, %v2388_v29 }
0x1778   :  { %v2405_v12 = vrot.slane %v2364_v41, %v3961_v42  ;;  %2401 = vst.msk [vmem:[#allocation13] sm:$0x7f] %vm2400_vm5, %v2399_v9 }
0x1779   :  { %3284 = shalt.err (!%p3281_p4)
}
0x177a   :  { %s3285_s30 = scalar_lea.hbm %s4657_s9, 128 }
0x177b   :  { %p3286_p5 = scmp.ne.s32.totalorder %s4657_s9, %s3285_s30  ;;  %p3289_p6 = scmp.lt.u32.totalorder %s3285_s30, %s4657_s9 }
0x177d   :  { %p3291_p7 = pnand %p3289_p6, %p3286_p5 }
0x177f   :  { %3294 = shalt.err (!%p3291_p7)
}
0x1780   :  { %2425 = dma.vmem_to_hbm [thread:$0]  %s2423_s25, 128, %s4657_s9, [#allocation4]   ;;  %2407 = vst.msk [vmem:[#allocation14] sm:$0x1] %vm2406_vm7, %v2405_v12  ;;  %v2052_v15 = vmul.f32 0.6931472, %v3043_v3 }
0x1781   :  { %s3295_s1 = scalar_lea.vmem %s4597_s12, 16  ;;  %s3299_s15 = scalar_lea.vmem %s4597_s12, 32 }
0x1782   :  { %p3296_p8 = scmp.ne.s32.totalorder %s4597_s12, %s3295_s1  ;;  %p3300_p9 = scmp.lt.s32.totalorder %s4597_s12, %s4597_s12 }
0x1783   :  { %p3301_p10 = scmp.lt.s32.totalorder %s3299_s15, %s3295_s1 }
0x1785   :  { %p3302_p11 = por %p3301_p10, %p3300_p9 }
0x1787   :  { %p3303_p12 = pnand %p3302_p11, %p3296_p8 }
0x1789   :  { %3306 = shalt.err (!%p3303_p12)
}
0x178a   :  { %s3307_s17 = scalar_lea.hbm %s4658_s10, 16 }
0x178b   :  { %p3308_p13 = scmp.ne.s32.totalorder %s4658_s10, %s3307_s17  ;;  %p3311_p0 = scmp.lt.u32.totalorder %s3307_s17, %s4658_s10 }
0x178d   :  { %p3313_p1 = pnand %p3311_p0, %p3308_p13 }
0x178f   :  { %3316 = shalt.err (!%p3313_p1)
}
0x1790   :  { %2435 = dma.vmem_to_hbm [thread:$0]  %s4597_s12, 16, %s4658_s10, [#allocation15]   ;;  %v3045_v37 = vpop.eup %3044  ;;  %v1773_v36 = vadd.f32 %v1772_v31, %v4541_v4  ;;  %v2056_v38 = vpop.xlane.xlu0 %2055  ;;  %v2053_v26 = vadd.f32 %v2052_v15, %v4545_v21 }
0x1791   :  { %v2332_v40 = vmul.f32 0.6931472, %v3045_v37  ;;  %v2336_v44 = vpop.xlane.xlu1 %2335  ;;  %s3375_s21 = smov [#allocation16]  }
0x1792   :  { %v1777_v62 = vsub.f32 %v1773_v36, %v1776_v5  ;;  %v2057_v7 = vsub.f32 %v2053_v26, %v2056_v38  ;;  %s2442_s23 = sshll.u32 %s3375_s21, 4  ;;  %s2443_s23 = int_to_ptr.vmem [resolvable:$true] %s2442_s23 }
0x1793   :  { %v2333_v33 = vadd.f32 %v2332_v40, %v4556_v60  ;;  %s3317_s10 = scalar_lea.vmem %s2443_s23, 16  ;;  %s3321_s24 = scalar_lea.vmem %s2443_s23, 32 }
0x1794   :  { %v1778_v16 = vadd.f32 %v1777_v62, %v4575_v19  ;;  %p3318_p2 = scmp.ne.s32.totalorder %s2443_s23, %s3317_s10  ;;  %p3322_p3 = scmp.lt.s32.totalorder %s2443_s23, %s2443_s23 }
0x1795   :  { %v2337_v11 = vsub.f32 %v2333_v33, %v2336_v44  ;;  %p3323_p4 = scmp.lt.s32.totalorder %s3321_s24, %s3317_s10 }
0x1796   :  { %v2058_v28 = vadd.f32 %v2057_v7, %v1778_v16 }
0x1797   :  { %p3324_p5 = por %p3323_p4, %p3322_p3 }
0x1798   :  { %v2338_v24 = vadd.f32 %v2337_v11, %v2058_v28 }
0x1799   :  { %p3325_p6 = pnand %p3324_p5, %p3318_p2 }
0x179a   :  { %v2412_v46 = vrot.slane %v2338_v24, %v3961_v42 }
0x179c   :  { %2414 = vst.msk [vmem:[#allocation16] sm:$0x1] %vm2406_vm7, %v2412_v46 }
0x179d   :  { %3328 = shalt.err (!%p3325_p6)
}
0x179e   :  { %s3329_s25 = scalar_lea.hbm %s4659_s11, 16 }
0x179f   :  { %p3330_p7 = scmp.ne.s32.totalorder %s4659_s11, %s3329_s25  ;;  %p3333_p8 = scmp.lt.u32.totalorder %s3329_s25, %s4659_s11 }
0x17a1   :  { %p3335_p9 = pnand %p3333_p8, %p3330_p7 }
0x17a3   :  { %3338 = shalt.err (!%p3335_p9)
}
0x17a4   :  { %2445 = dma.vmem_to_hbm [thread:$0]  %s2443_s23, 16, %s4659_s11, [#allocation15]  }
0x17a5   :  { %3347 = dma.done.wait [#allocation4], 128  }
0x17a6   :  { %3348 = vsyncadd [#allocation4], 4294967168 }
0x17a7   :  { %3349 = dma.done.wait [#allocation15], 32  }
0x17a8   :  { %3350 = vsyncadd [#allocation15], 4294967264 }
0x17a9   :  { %3351 = dma.done.wait [#allocation18], 128  }
0x17aa   :  { %3352 = vsyncadd [#allocation18], 4294967168 }
0x17ab   :  { %2468 = vsyncpa [#allocation3], 1 }
0x17ac   :  { %2469 = vsyncpa [#allocation6], 1 }
0x17ad   :  { %2470 = vsyncpa [#allocation9], 1 }
0x17ae   :  { %2471 = vsyncpa [#allocation12], 1 }
0x17af   :  { %2472 = vsyncpa [#allocation4], 1 }
0x17b0   :  { %2473 = vsyncpa [#allocation15], 1 }
0x17b1   :  { %2474 = vsyncpa [#allocation18], 1 }

</bundles_post_ra>
